<compile_context>
chip_gen: v7x
topology: tpu7x:2x2x1
jax: 0.10.0
libtpu: 0.0.40
codegen_flags: <defaults>
</compile_context>

<pallas_src>
import functools

import numpy as np
import jax
import jax.numpy as jnp
from jax.experimental import pallas as pl
from jax.experimental.pallas import tpu as pltpu

# ----------------- "Config" -----------------
D_MODEL = 32
N_HEADS = 4
D_K = 8
D_V = 8
D_FF = 64
N_LAYERS = 2
PAD_IDX = 0
LN_EPS = 1e-5
NEG_INF = -1e9
VEC_W = 3 * D_MODEL   # width of the packed bias / LayerNorm "vector slab" rows (96)


# ----------------- In-kernel building blocks (all values are VMEM-resident) -----------------
def _layer_norm(x, gamma, beta):
    mu = jnp.mean(x, axis=-1, keepdims=True)
    var = jnp.mean(jnp.square(x - mu), axis=-1, keepdims=True)
    return (x - mu) * jax.lax.rsqrt(var + LN_EPS) * gamma + beta


def _mha_block(x_q, key_pad, causal, w_qkv, w_o, vec4, x_kv=None):
    """Multi-head attention + residual + post-LN.

    x_q:(Lq,D); x_kv:(Lk,D) or None for self-attention; key_pad:(1,Lk) 1.0 => PAD key.
    w_qkv:(D,3D)=[Wq|Wk|Wv]; w_o:(H*dv,D); vec4 rows = [b_qkv | b_o | ln_gamma | ln_beta].
    """
    D = D_MODEL
    Lq = x_q.shape[0]
    b_qkv = vec4[0:1, :3 * D]
    b_o = vec4[1:2, :D]
    ln_g = vec4[2:3, :D]
    ln_b = vec4[3:4, :D]

    if x_kv is None:                                   # self-attention: one fused QKV matmul
        qkv = jnp.dot(x_q, w_qkv, preferred_element_type=jnp.float32) + b_qkv
        q, k, v = qkv[:, :D], qkv[:, D:2 * D], qkv[:, 2 * D:]
    else:                                              # cross-attention: q and fused kv matmuls
        q = jnp.dot(x_q, w_qkv[:, :D], preferred_element_type=jnp.float32) + b_qkv[:, :D]
        kv = jnp.dot(x_kv, w_qkv[:, D:], preferred_element_type=jnp.float32) + b_qkv[:, D:]
        k, v = kv[:, :D], kv[:, D:]
    Lk = k.shape[0]

    scale = 1.0 / float(np.sqrt(D_K))
    s_parts = []
    for h in range(N_HEADS):
        qh = q[:, h * D_K:(h + 1) * D_K]
        kh = k[:, h * D_K:(h + 1) * D_K]
        s_parts.append(jax.lax.dot_general(qh, kh, (((1,), (1,)), ((), ())),
                                           preferred_element_type=jnp.float32))
    s = jnp.stack(s_parts, axis=0) * scale             # (H, Lq, Lk): single softmax chain
    masked = key_pad > 0.0                             # (1, Lk) broadcasts over (H, Lq, Lk)
    if causal:
        row = jax.lax.broadcasted_iota(jnp.int32, (N_HEADS, Lq, Lk), 1)
        col = jax.lax.broadcasted_iota(jnp.int32, (N_HEADS, Lq, Lk), 2)
        masked = masked | (col > row)
    s = jnp.where(masked, NEG_INF, s)
    s = s - jnp.max(s, axis=-1, keepdims=True)
    p = jnp.exp(s)
    p = p / jnp.sum(p, axis=-1, keepdims=True)         # exact softmax normalization

    out = b_o                                          # (1, D) broadcast-added below
    for h in range(N_HEADS):
        ctx_h = jnp.dot(p[h], v[:, h * D_V:(h + 1) * D_V],
                        preferred_element_type=jnp.float32)         # (Lq, dv)
        out = out + jnp.dot(ctx_h, w_o[h * D_V:(h + 1) * D_V, :],
                            preferred_element_type=jnp.float32)     # (Lq, D)
    return _layer_norm(out + x_q, ln_g, ln_b)


def _ffn_block(x, w1, w2, vec4):
    """Position-wise FFN + residual + post-LN. vec4 rows = [b1 | b2 | ln_gamma | ln_beta]."""
    b1 = vec4[0:1, :D_FF]
    b2 = vec4[1:2, :D_MODEL]
    ln_g = vec4[2:3, :D_MODEL]
    ln_b = vec4[3:4, :D_MODEL]
    h = jnp.maximum(jnp.dot(x, w1, preferred_element_type=jnp.float32) + b1, 0.0)
    out = jnp.dot(h, w2, preferred_element_type=jnp.float32) + b2
    return _layer_norm(out + x, ln_g, ln_b)


# ----------------- Fused whole-stack kernels -----------------
def _encoder_kernel(x_ref, kpad_ref, npm_ref,
                    wqkv_ref, wo_ref, w1_ref, w2_ref, vec_ref, o_ref):
    x = x_ref[0]                # (L, D)
    key_pad = kpad_ref[0]       # (1, L)
    npm = npm_ref[0]            # (L, 1)
    for l in range(N_LAYERS):   # unrolled: whole encoder stack in one kernel
        vec = vec_ref[l]        # (8, VEC_W)
        x = _mha_block(x, key_pad, False, wqkv_ref[l], wo_ref[l], vec[0:4]) * npm
        x = _ffn_block(x, w1_ref[l], w2_ref[l], vec[4:8]) * npm
    o_ref[0] = x


def _decoder_kernel(x_ref, enc_ref, src_kpad_ref, tgt_kpad_ref, npm_ref,
                    s_wqkv_ref, s_wo_ref, c_wqkv_ref, c_wo_ref,
                    w1_ref, w2_ref, vec_ref, wv_ref, o_ref):
    x = x_ref[0]                  # (Lq, D)
    enc = enc_ref[0]              # (Lk, D)
    src_kpad = src_kpad_ref[0]    # (1, Lk)
    tgt_kpad = tgt_kpad_ref[0]    # (1, Lq)
    npm = npm_ref[0]              # (Lq, 1)
    for l in range(N_LAYERS):     # unrolled: whole decoder stack in one kernel
        vec = vec_ref[l]          # (12, VEC_W)
        x = _mha_block(x, tgt_kpad, True, s_wqkv_ref[l], s_wo_ref[l], vec[0:4]) * npm
        x = _mha_block(x, src_kpad, False, c_wqkv_ref[l], c_wo_ref[l], vec[4:8],
                       x_kv=enc) * npm
        x = _ffn_block(x, w1_ref[l], w2_ref[l], vec[8:12]) * npm
    # Fused vocab projection: lane-dense (Lq, 128) store (Vpad is a multiple of 128).
    o_ref[0] = jnp.dot(x, wv_ref[...], preferred_element_type=jnp.float32)


# ----------------- pallas_call wrappers -----------------
def _full_spec(arr):
    zeros = (0,) * arr.ndim
    return pl.BlockSpec(arr.shape, lambda i, z=zeros: z)


def pallas_encoder(enc_p, enc_in, src_is_pad, src_not_pad):
    B, L, D = enc_in.shape
    weights = [enc_p["wqkv"], enc_p["wo"], enc_p["w1"], enc_p["w2"], enc_p["vec"]]
    in_specs = ([pl.BlockSpec((1, L, D), lambda i: (i, 0, 0)),
                 pl.BlockSpec((1, 1, L), lambda i: (i, 0, 0)),
                 pl.BlockSpec((1, L, 1), lambda i: (i, 0, 0))]
                + [_full_spec(w) for w in weights])
    return pl.pallas_call(
        _encoder_kernel,
        out_shape=jax.ShapeDtypeStruct((B, L, D), jnp.float32),
        grid=(B,),
        in_specs=in_specs,
        out_specs=pl.BlockSpec((1, L, D), lambda i: (i, 0, 0)),
        compiler_params=pltpu.CompilerParams(dimension_semantics=("parallel",)),
    )(enc_in, src_is_pad, src_not_pad, *weights)


def pallas_decoder(dec_p, dec_in, enc_out, src_is_pad, tgt_is_pad, tgt_not_pad, w_vocab):
    B, Lq, D = dec_in.shape
    Lk = enc_out.shape[1]
    Vp = w_vocab.shape[1]
    weights = [dec_p["s_wqkv"], dec_p["s_wo"], dec_p["c_wqkv"], dec_p["c_wo"],
               dec_p["w1"], dec_p["w2"], dec_p["vec"], w_vocab]
    in_specs = ([pl.BlockSpec((1, Lq, D), lambda i: (i, 0, 0)),
                 pl.BlockSpec((1, Lk, D), lambda i: (i, 0, 0)),
                 pl.BlockSpec((1, 1, Lk), lambda i: (i, 0, 0)),
                 pl.BlockSpec((1, 1, Lq), lambda i: (i, 0, 0)),
                 pl.BlockSpec((1, Lq, 1), lambda i: (i, 0, 0))]
                + [_full_spec(w) for w in weights])
    return pl.pallas_call(
        _decoder_kernel,
        out_shape=jax.ShapeDtypeStruct((B, Lq, Vp), jnp.float32),
        grid=(B,),
        in_specs=in_specs,
        out_specs=pl.BlockSpec((1, Lq, Vp), lambda i: (i, 0, 0)),
        compiler_params=pltpu.CompilerParams(dimension_semantics=("parallel",)),
    )(dec_in, enc_out, src_is_pad, tgt_is_pad, tgt_not_pad, *weights)


# ----------------- Tools / positional encoding (plain-JAX glue) -----------------
def seq_2_pos(seq):
    L = seq.shape[1]
    pos = jnp.arange(1, L + 1, dtype=jnp.int32)[None, :]
    return jnp.where(seq != PAD_IDX, pos, 0)


def sinusoid_table(n_pos, d_model):
    pos = np.arange(n_pos)[:, None].astype(np.float64)
    i = np.arange(d_model)[None, :].astype(np.float64)
    angle = pos / np.power(10000.0, 2.0 * (i // 2) / d_model)
    table = np.zeros((n_pos, d_model), np.float64)
    table[:, 0::2] = np.sin(angle[:, 0::2])
    table[:, 1::2] = np.cos(angle[:, 1::2])
    table[0] = 0.0  # pad position row
    return jnp.asarray(table, jnp.float32)


# ----------------- Model forward (one fused pallas_call per stack) -----------------
def encoder_forward(enc_p, src_seq):
    src_pos = seq_2_pos(src_seq)
    enc_in = enc_p["emb"][src_seq] + enc_p["pos_table"][src_pos]
    src_is_pad = (src_seq == PAD_IDX).astype(jnp.float32)[:, None, :]    # (B,1,L)
    src_not_pad = (src_seq != PAD_IDX).astype(jnp.float32)[:, :, None]   # (B,L,1)
    return pallas_encoder(enc_p, enc_in, src_is_pad, src_not_pad)


def decoder_forward(dec_p, tgt_seq, src_seq, enc_out, w_vocab_pad):
    tgt_pos = seq_2_pos(tgt_seq)
    dec_in = dec_p["emb"][tgt_seq] + dec_p["pos_table"][tgt_pos]
    src_is_pad = (src_seq == PAD_IDX).astype(jnp.float32)[:, None, :]    # (B,1,Lk)
    tgt_is_pad = (tgt_seq == PAD_IDX).astype(jnp.float32)[:, None, :]    # (B,1,Lq)
    tgt_not_pad = (tgt_seq != PAD_IDX).astype(jnp.float32)[:, :, None]   # (B,Lq,1)
    return pallas_decoder(dec_p, dec_in, enc_out, src_is_pad, tgt_is_pad,
                          tgt_not_pad, w_vocab_pad)


def transformer_forward(params, src_seq, tgt_seq, *, target_vocab):
    tgt_seq = tgt_seq[:, :-1]
    enc_out = encoder_forward(params["encoder"], src_seq)
    logits_pad = decoder_forward(params["decoder"], tgt_seq, src_seq, enc_out,
                                 params["word_prob_w_pad"])
    output = logits_pad[:, :, :target_vocab]          # slice padded lanes back
    B, Lq, V = output.shape
    pre_word = output.reshape(B * Lq, V)
    return pre_word, output


# ----------------- Deterministic parameter init (packed layouts) -----------------
def init_transformer(key, input_vocab, target_vocab, src_max_len, tgt_max_len):
    kiter = iter(jax.random.split(key, 128))

    def nrm(shape, scale=0.1):
        return (scale * jax.random.normal(next(kiter), shape)).astype(jnp.float32)

    def attn_pack():
        w_qkv = jnp.concatenate([nrm((D_MODEL, N_HEADS * D_K)),
                                 nrm((D_MODEL, N_HEADS * D_K)),
                                 nrm((D_MODEL, N_HEADS * D_V))], axis=1)   # (D, 3D)
        w_o = nrm((N_HEADS * D_V, D_MODEL))                                # (D, D)
        # vec rows: 0 b_qkv | 1 b_o | 2 ln_gamma | 3 ln_beta  (zero biases, unit gamma)
        vec = jnp.zeros((4, VEC_W), jnp.float32).at[2, :D_MODEL].set(1.0)
        return w_qkv, w_o, vec

    def ffn_pack():
        w1 = nrm((D_MODEL, D_FF))
        w2 = nrm((D_FF, D_MODEL))
        # vec rows: 0 b1 | 1 b2 | 2 ln_gamma | 3 ln_beta
        vec = jnp.zeros((4, VEC_W), jnp.float32).at[2, :D_MODEL].set(1.0)
        return w1, w2, vec

    # ----- encoder stack (weights stacked along a leading layer axis) -----
    e_wqkv, e_wo, e_w1, e_w2, e_vec = [], [], [], [], []
    for _ in range(N_LAYERS):
        wqkv, wo, av = attn_pack()
        w1, w2, fv = ffn_pack()
        e_wqkv.append(wqkv); e_wo.append(wo); e_w1.append(w1); e_w2.append(w2)
        e_vec.append(jnp.concatenate([av, fv], axis=0))          # (8, VEC_W)
    encoder = dict(
        emb=nrm((input_vocab, D_MODEL), 1.0).at[PAD_IDX].set(0.0),   # padding_idx=0
        pos_table=sinusoid_table(src_max_len + 1, D_MODEL),
        wqkv=jnp.stack(e_wqkv), wo=jnp.stack(e_wo),
        w1=jnp.stack(e_w1), w2=jnp.stack(e_w2), vec=jnp.stack(e_vec),
    )

    # ----- decoder stack -----
    ds_wqkv, ds_wo, dc_wqkv, dc_wo, d_w1, d_w2, d_vec = [], [], [], [], [], [], []
    for _ in range(N_LAYERS):
        swqkv, swo, sv = attn_pack()
        cwqkv, cwo, cv = attn_pack()
        w1, w2, fv = ffn_pack()
        ds_wqkv.append(swqkv); ds_wo.append(swo)
        dc_wqkv.append(cwqkv); dc_wo.append(cwo)
        d_w1.append(w1); d_w2.append(w2)
        d_vec.append(jnp.concatenate([sv, cv, fv], axis=0))      # (12, VEC_W)
    # NOTE: reference decoder nn.Embedding has no padding_idx -> do NOT zero row 0.
    decoder = dict(
        emb=nrm((target_vocab, D_MODEL), 1.0),
        pos_table=sinusoid_table(tgt_max_len + 1, D_MODEL),
        s_wqkv=jnp.stack(ds_wqkv), s_wo=jnp.stack(ds_wo),
        c_wqkv=jnp.stack(dc_wqkv), c_wo=jnp.stack(dc_wo),
        w1=jnp.stack(d_w1), w2=jnp.stack(d_w2), vec=jnp.stack(d_vec),
    )

    # word_prob_map: nn.Linear(d_model, target_vocab, bias=False), xavier_normal_
    # zero-padded to the next multiple of 128 lanes for a lane-dense kernel store.
    xav = float(np.sqrt(2.0 / (D_MODEL + target_vocab)))
    w = nrm((D_MODEL, target_vocab), xav)
    v_pad = int(max(128, ((target_vocab + 127) // 128) * 128))
    w_pad = jnp.zeros((D_MODEL, v_pad), jnp.float32).at[:, :target_vocab].set(w)
    return dict(encoder=encoder, decoder=decoder, word_prob_w_pad=w_pad)


# ----------------- Main -----------------
if __name__ == "__main__":
    INPUT_VOCAB, TARGET_VOCAB = 50, 60
    SRC_LEN, TGT_LEN, BATCH = 8, 8, 2

    key = jax.random.PRNGKey(0)
    kp, ks, kt = jax.random.split(key, 3)

    params = init_transformer(kp, INPUT_VOCAB, TARGET_VOCAB, SRC_LEN, TGT_LEN)

    src_seq = jax.random.randint(ks, (BATCH, SRC_LEN), 1, INPUT_VOCAB, dtype=jnp.int32)
    tgt_seq = jax.random.randint(kt, (BATCH, TGT_LEN), 1, TARGET_VOCAB, dtype=jnp.int32)
    # add trailing padding to exercise the mask paths
    src_seq = src_seq.at[0, -2:].set(PAD_IDX)
    tgt_seq = tgt_seq.at[1, -3:].set(PAD_IDX)

    fwd = jax.jit(functools.partial(transformer_forward, target_vocab=TARGET_VOCAB))
    pre_word, output = fwd(params, src_seq, tgt_seq)
    pre_word = jax.block_until_ready(pre_word)
    output = jax.block_until_ready(output)

    assert pre_word.shape == (BATCH * (TGT_LEN - 1), TARGET_VOCAB)
    assert output.shape == (BATCH, TGT_LEN - 1, TARGET_VOCAB)
    assert bool(jnp.all(jnp.isfinite(pre_word)))
    print("KERNEL_OK")
</pallas_src>

<mosaic_0001>
module attributes {stable_mosaic.version = 11 : i64} {
  func.func @_encoder_kernel(%arg0: i32, %arg1: memref<1x8x32xf32, #tpu.memory_space<vmem>>, %arg2: memref<1x1x8xf32, #tpu.memory_space<vmem>>, %arg3: memref<1x8x1xf32, #tpu.memory_space<vmem>>, %arg4: memref<2x32x96xf32, #tpu.memory_space<vmem>>, %arg5: memref<2x32x32xf32, #tpu.memory_space<vmem>>, %arg6: memref<2x32x64xf32, #tpu.memory_space<vmem>>, %arg7: memref<2x64x32xf32, #tpu.memory_space<vmem>>, %arg8: memref<2x8x96xf32, #tpu.memory_space<vmem>>, %arg9: memref<1x8x32xf32, #tpu.memory_space<vmem>>) attributes {dimension_semantics = [#tpu.dimension_semantics<parallel>], iteration_bounds = array<i64: 2>, scalar_prefetch = 0 : i64, scratch_operands = 0 : i64, tpu.core_type = #tpu.core_type<tc>, window_params = [{transform_indices = @transform_0, window_bounds = array<i64: 1, 8, 32>}, {transform_indices = @transform_1, window_bounds = array<i64: 1, 1, 8>}, {transform_indices = @transform_2, window_bounds = array<i64: 1, 8, 1>}, {pipeline_mode = #tpu.pipeline_mode<synchronous>, transform_indices = @transform_3, window_bounds = array<i64: 2, 32, 96>}, {pipeline_mode = #tpu.pipeline_mode<synchronous>, transform_indices = @transform_4, window_bounds = array<i64: 2, 32, 32>}, {pipeline_mode = #tpu.pipeline_mode<synchronous>, transform_indices = @transform_5, window_bounds = array<i64: 2, 32, 64>}, {pipeline_mode = #tpu.pipeline_mode<synchronous>, transform_indices = @transform_6, window_bounds = array<i64: 2, 64, 32>}, {pipeline_mode = #tpu.pipeline_mode<synchronous>, transform_indices = @transform_7, window_bounds = array<i64: 2, 8, 96>}, {transform_indices = @transform_8, window_bounds = array<i64: 1, 8, 32>}]} {
    %c0 = arith.constant 0 : index
    %c0_0 = arith.constant 0 : index
    %c0_1 = arith.constant 0 : index
    %0 = vector.load %arg1[%c0, %c0_0, %c0_1] : memref<1x8x32xf32, #tpu.memory_space<vmem>>, vector<1x8x32xf32>
    %1 = vector.shape_cast %0 : vector<1x8x32xf32> to vector<8x32xf32>
    %c0_2 = arith.constant 0 : index
    %c0_3 = arith.constant 0 : index
    %c0_4 = arith.constant 0 : index
    %2 = vector.load %arg2[%c0_2, %c0_3, %c0_4] : memref<1x1x8xf32, #tpu.memory_space<vmem>>, vector<1x1x8xf32>
    %3 = vector.shape_cast %2 : vector<1x1x8xf32> to vector<1x8xf32>
    %c0_5 = arith.constant 0 : index
    %c0_6 = arith.constant 0 : index
    %c0_7 = arith.constant 0 : index
    %4 = vector.load %arg3[%c0_5, %c0_6, %c0_7] : memref<1x8x1xf32, #tpu.memory_space<vmem>>, vector<1x8x1xf32>
    %5 = vector.shape_cast %4 : vector<1x8x1xf32> to vector<8x1xf32>
    %c0_8 = arith.constant 0 : index
    %c0_9 = arith.constant 0 : index
    %c0_10 = arith.constant 0 : index
    %6 = vector.load %arg8[%c0_8, %c0_9, %c0_10] : memref<2x8x96xf32, #tpu.memory_space<vmem>>, vector<1x8x96xf32>
    %7 = vector.shape_cast %6 : vector<1x8x96xf32> to vector<8x96xf32>
    %c0_11 = arith.constant 0 : index
    %c0_12 = arith.constant 0 : index
    %c0_13 = arith.constant 0 : index
    %8 = vector.load %arg4[%c0_11, %c0_12, %c0_13] : memref<2x32x96xf32, #tpu.memory_space<vmem>>, vector<1x32x96xf32>
    %9 = vector.shape_cast %8 : vector<1x32x96xf32> to vector<32x96xf32>
    %c0_14 = arith.constant 0 : index
    %c0_15 = arith.constant 0 : index
    %c0_16 = arith.constant 0 : index
    %10 = vector.load %arg5[%c0_14, %c0_15, %c0_16] : memref<2x32x32xf32, #tpu.memory_space<vmem>>, vector<1x32x32xf32>
    %11 = vector.shape_cast %10 : vector<1x32x32xf32> to vector<32x32xf32>
    %12 = vector.extract_strided_slice %7 {offsets = [0, 0], sizes = [4, 96], strides = [1, 1]} : vector<8x96xf32> to vector<4x96xf32>
    %13 = vector.extract_strided_slice %12 {offsets = [0, 0], sizes = [1, 96], strides = [1, 1]} : vector<4x96xf32> to vector<1x96xf32>
    %14 = vector.extract_strided_slice %12 {offsets = [1, 0], sizes = [1, 32], strides = [1, 1]} : vector<4x96xf32> to vector<1x32xf32>
    %15 = vector.extract_strided_slice %12 {offsets = [2, 0], sizes = [1, 32], strides = [1, 1]} : vector<4x96xf32> to vector<1x32xf32>
    %16 = vector.extract_strided_slice %12 {offsets = [3, 0], sizes = [1, 32], strides = [1, 1]} : vector<4x96xf32> to vector<1x32xf32>
    %cst = arith.constant dense<0.000000e+00> : vector<8x96xf32>
    %17 = tpu.matmul %1, %9, %cst {dimension_numbers = #tpu.dot_dimension_numbers<[1], [0], [0], [1], [0, 0, 1, 1], [], []>} : vector<8x32xf32>, vector<32x96xf32>, vector<8x96xf32> -> vector<8x96xf32>
    %18 = vector.broadcast %13 : vector<1x96xf32> to vector<8x96xf32>
    %19 = arith.addf %17, %18 : vector<8x96xf32>
    %20 = vector.extract_strided_slice %19 {offsets = [0, 0], sizes = [8, 32], strides = [1, 1]} : vector<8x96xf32> to vector<8x32xf32>
    %21 = vector.extract_strided_slice %19 {offsets = [0, 32], sizes = [8, 32], strides = [1, 1]} : vector<8x96xf32> to vector<8x32xf32>
    %22 = vector.extract_strided_slice %19 {offsets = [0, 64], sizes = [8, 32], strides = [1, 1]} : vector<8x96xf32> to vector<8x32xf32>
    %23 = vector.extract_strided_slice %20 {offsets = [0, 0], sizes = [8, 8], strides = [1, 1]} : vector<8x32xf32> to vector<8x8xf32>
    %24 = vector.extract_strided_slice %21 {offsets = [0, 0], sizes = [8, 8], strides = [1, 1]} : vector<8x32xf32> to vector<8x8xf32>
    %cst_17 = arith.constant dense<0.000000e+00> : vector<8x8xf32>
    %25 = tpu.matmul %23, %24, %cst_17 {dimension_numbers = #tpu.dot_dimension_numbers<[1], [1], [0], [0], [0, 0, 1, 0], [], []>} : vector<8x8xf32>, vector<8x8xf32>, vector<8x8xf32> -> vector<8x8xf32>
    %26 = vector.extract_strided_slice %20 {offsets = [0, 8], sizes = [8, 8], strides = [1, 1]} : vector<8x32xf32> to vector<8x8xf32>
    %27 = vector.extract_strided_slice %21 {offsets = [0, 8], sizes = [8, 8], strides = [1, 1]} : vector<8x32xf32> to vector<8x8xf32>
    %cst_18 = arith.constant dense<0.000000e+00> : vector<8x8xf32>
    %28 = tpu.matmul %26, %27, %cst_18 {dimension_numbers = #tpu.dot_dimension_numbers<[1], [1], [0], [0], [0, 0, 1, 0], [], []>} : vector<8x8xf32>, vector<8x8xf32>, vector<8x8xf32> -> vector<8x8xf32>
    %29 = vector.extract_strided_slice %20 {offsets = [0, 16], sizes = [8, 8], strides = [1, 1]} : vector<8x32xf32> to vector<8x8xf32>
    %30 = vector.extract_strided_slice %21 {offsets = [0, 16], sizes = [8, 8], strides = [1, 1]} : vector<8x32xf32> to vector<8x8xf32>
    %cst_19 = arith.constant dense<0.000000e+00> : vector<8x8xf32>
    %31 = tpu.matmul %29, %30, %cst_19 {dimension_numbers = #tpu.dot_dimension_numbers<[1], [1], [0], [0], [0, 0, 1, 0], [], []>} : vector<8x8xf32>, vector<8x8xf32>, vector<8x8xf32> -> vector<8x8xf32>
    %32 = vector.extract_strided_slice %20 {offsets = [0, 24], sizes = [8, 8], strides = [1, 1]} : vector<8x32xf32> to vector<8x8xf32>
    %33 = vector.extract_strided_slice %21 {offsets = [0, 24], sizes = [8, 8], strides = [1, 1]} : vector<8x32xf32> to vector<8x8xf32>
    %cst_20 = arith.constant dense<0.000000e+00> : vector<8x8xf32>
    %34 = tpu.matmul %32, %33, %cst_20 {dimension_numbers = #tpu.dot_dimension_numbers<[1], [1], [0], [0], [0, 0, 1, 0], [], []>} : vector<8x8xf32>, vector<8x8xf32>, vector<8x8xf32> -> vector<8x8xf32>
    %35 = vector.shape_cast %25 : vector<8x8xf32> to vector<1x8x8xf32>
    %36 = vector.shape_cast %28 : vector<8x8xf32> to vector<1x8x8xf32>
    %37 = vector.shape_cast %31 : vector<8x8xf32> to vector<1x8x8xf32>
    %38 = vector.shape_cast %34 : vector<8x8xf32> to vector<1x8x8xf32>
    %39 = tpu.concatenate %35, %36, %37, %38 in 0 : vector<1x8x8xf32>, vector<1x8x8xf32>, vector<1x8x8xf32>, vector<1x8x8xf32> -> vector<4x8x8xf32>
    %cst_21 = arith.constant 0.353553385 : f32
    %40 = vector.broadcast %cst_21 : f32 to vector<4x8x8xf32>
    %41 = arith.mulf %39, %40 : vector<4x8x8xf32>
    %cst_22 = arith.constant 0.000000e+00 : f32
    %42 = vector.broadcast %cst_22 : f32 to vector<1x8xf32>
    %43 = arith.cmpf ogt, %3, %42 : vector<1x8xf32>
    %cst_23 = arith.constant -1.000000e+09 : f32
    %44 = vector.shape_cast %43 : vector<1x8xi1> to vector<1x1x8xi1>
    %45 = vector.broadcast %44 : vector<1x1x8xi1> to vector<4x8x8xi1>
    %46 = vector.broadcast %cst_23 : f32 to vector<4x8x8xf32>
    %47 = arith.select %45, %46, %41 : vector<4x8x8xi1>, vector<4x8x8xf32>
    %cst_24 = arith.constant dense<0xFF800000> : vector<4x8xf32>
    %48 = vector.multi_reduction <maximumf>, %47, %cst_24 [2] : vector<4x8x8xf32> to vector<4x8xf32>
    %49 = vector.shape_cast %48 : vector<4x8xf32> to vector<4x8x1xf32>
    %50 = vector.broadcast %49 : vector<4x8x1xf32> to vector<4x8x8xf32>
    %51 = arith.subf %47, %50 : vector<4x8x8xf32>
    %52 = math.exp %51 : vector<4x8x8xf32>
    %cst_25 = arith.constant dense<0.000000e+00> : vector<4x8xf32>
    %53 = vector.multi_reduction <add>, %52, %cst_25 [2] : vector<4x8x8xf32> to vector<4x8xf32>
    %54 = vector.shape_cast %53 : vector<4x8xf32> to vector<4x8x1xf32>
    %55 = vector.broadcast %54 : vector<4x8x1xf32> to vector<4x8x8xf32>
    %56 = arith.divf %52, %55 : vector<4x8x8xf32>
    %57 = vector.extract_strided_slice %56 {offsets = [0, 0, 0], sizes = [1, 8, 8], strides = [1, 1, 1]} : vector<4x8x8xf32> to vector<1x8x8xf32>
    %58 = vector.shape_cast %57 : vector<1x8x8xf32> to vector<8x8xf32>
    %59 = vector.extract_strided_slice %22 {offsets = [0, 0], sizes = [8, 8], strides = [1, 1]} : vector<8x32xf32> to vector<8x8xf32>
    %cst_26 = arith.constant dense<0.000000e+00> : vector<8x8xf32>
    %60 = tpu.matmul %58, %59, %cst_26 {dimension_numbers = #tpu.dot_dimension_numbers<[1], [0], [0], [1], [0, 0, 1, 1], [], []>} : vector<8x8xf32>, vector<8x8xf32>, vector<8x8xf32> -> vector<8x8xf32>
    %61 = vector.extract_strided_slice %11 {offsets = [0, 0], sizes = [8, 32], strides = [1, 1]} : vector<32x32xf32> to vector<8x32xf32>
    %cst_27 = arith.constant dense<0.000000e+00> : vector<8x32xf32>
    %62 = tpu.matmul %60, %61, %cst_27 {dimension_numbers = #tpu.dot_dimension_numbers<[1], [0], [0], [1], [0, 0, 1, 1], [], []>} : vector<8x8xf32>, vector<8x32xf32>, vector<8x32xf32> -> vector<8x32xf32>
    %63 = vector.broadcast %14 : vector<1x32xf32> to vector<8x32xf32>
    %64 = arith.addf %63, %62 : vector<8x32xf32>
    %65 = vector.extract_strided_slice %56 {offsets = [1, 0, 0], sizes = [1, 8, 8], strides = [1, 1, 1]} : vector<4x8x8xf32> to vector<1x8x8xf32>
    %66 = vector.shape_cast %65 : vector<1x8x8xf32> to vector<8x8xf32>
    %67 = vector.extract_strided_slice %22 {offsets = [0, 8], sizes = [8, 8], strides = [1, 1]} : vector<8x32xf32> to vector<8x8xf32>
    %cst_28 = arith.constant dense<0.000000e+00> : vector<8x8xf32>
    %68 = tpu.matmul %66, %67, %cst_28 {dimension_numbers = #tpu.dot_dimension_numbers<[1], [0], [0], [1], [0, 0, 1, 1], [], []>} : vector<8x8xf32>, vector<8x8xf32>, vector<8x8xf32> -> vector<8x8xf32>
    %69 = vector.extract_strided_slice %11 {offsets = [8, 0], sizes = [8, 32], strides = [1, 1]} : vector<32x32xf32> to vector<8x32xf32>
    %cst_29 = arith.constant dense<0.000000e+00> : vector<8x32xf32>
    %70 = tpu.matmul %68, %69, %cst_29 {dimension_numbers = #tpu.dot_dimension_numbers<[1], [0], [0], [1], [0, 0, 1, 1], [], []>} : vector<8x8xf32>, vector<8x32xf32>, vector<8x32xf32> -> vector<8x32xf32>
    %71 = arith.addf %64, %70 : vector<8x32xf32>
    %72 = vector.extract_strided_slice %56 {offsets = [2, 0, 0], sizes = [1, 8, 8], strides = [1, 1, 1]} : vector<4x8x8xf32> to vector<1x8x8xf32>
    %73 = vector.shape_cast %72 : vector<1x8x8xf32> to vector<8x8xf32>
    %74 = vector.extract_strided_slice %22 {offsets = [0, 16], sizes = [8, 8], strides = [1, 1]} : vector<8x32xf32> to vector<8x8xf32>
    %cst_30 = arith.constant dense<0.000000e+00> : vector<8x8xf32>
    %75 = tpu.matmul %73, %74, %cst_30 {dimension_numbers = #tpu.dot_dimension_numbers<[1], [0], [0], [1], [0, 0, 1, 1], [], []>} : vector<8x8xf32>, vector<8x8xf32>, vector<8x8xf32> -> vector<8x8xf32>
    %76 = vector.extract_strided_slice %11 {offsets = [16, 0], sizes = [8, 32], strides = [1, 1]} : vector<32x32xf32> to vector<8x32xf32>
    %cst_31 = arith.constant dense<0.000000e+00> : vector<8x32xf32>
    %77 = tpu.matmul %75, %76, %cst_31 {dimension_numbers = #tpu.dot_dimension_numbers<[1], [0], [0], [1], [0, 0, 1, 1], [], []>} : vector<8x8xf32>, vector<8x32xf32>, vector<8x32xf32> -> vector<8x32xf32>
    %78 = arith.addf %71, %77 : vector<8x32xf32>
    %79 = vector.extract_strided_slice %56 {offsets = [3, 0, 0], sizes = [1, 8, 8], strides = [1, 1, 1]} : vector<4x8x8xf32> to vector<1x8x8xf32>
    %80 = vector.shape_cast %79 : vector<1x8x8xf32> to vector<8x8xf32>
    %81 = vector.extract_strided_slice %22 {offsets = [0, 24], sizes = [8, 8], strides = [1, 1]} : vector<8x32xf32> to vector<8x8xf32>
    %cst_32 = arith.constant dense<0.000000e+00> : vector<8x8xf32>
    %82 = tpu.matmul %80, %81, %cst_32 {dimension_numbers = #tpu.dot_dimension_numbers<[1], [0], [0], [1], [0, 0, 1, 1], [], []>} : vector<8x8xf32>, vector<8x8xf32>, vector<8x8xf32> -> vector<8x8xf32>
    %83 = vector.extract_strided_slice %11 {offsets = [24, 0], sizes = [8, 32], strides = [1, 1]} : vector<32x32xf32> to vector<8x32xf32>
    %cst_33 = arith.constant dense<0.000000e+00> : vector<8x32xf32>
    %84 = tpu.matmul %82, %83, %cst_33 {dimension_numbers = #tpu.dot_dimension_numbers<[1], [0], [0], [1], [0, 0, 1, 1], [], []>} : vector<8x8xf32>, vector<8x32xf32>, vector<8x32xf32> -> vector<8x32xf32>
    %85 = arith.addf %78, %84 : vector<8x32xf32>
    %86 = arith.addf %85, %1 : vector<8x32xf32>
    %cst_34 = arith.constant dense<0.000000e+00> : vector<8xf32>
    %87 = vector.multi_reduction <add>, %86, %cst_34 [1] : vector<8x32xf32> to vector<8xf32>
    %88 = vector.shape_cast %87 : vector<8xf32> to vector<8x1xf32>
    %cst_35 = arith.constant 3.200000e+01 : f32
    %89 = vector.broadcast %cst_35 : f32 to vector<8x1xf32>
    %90 = arith.divf %88, %89 : vector<8x1xf32>
    %91 = vector.broadcast %90 : vector<8x1xf32> to vector<8x32xf32>
    %92 = arith.subf %86, %91 : vector<8x32xf32>
    %93 = arith.mulf %92, %92 : vector<8x32xf32>
    %cst_36 = arith.constant dense<0.000000e+00> : vector<8xf32>
    %94 = vector.multi_reduction <add>, %93, %cst_36 [1] : vector<8x32xf32> to vector<8xf32>
    %95 = vector.shape_cast %94 : vector<8xf32> to vector<8x1xf32>
    %cst_37 = arith.constant 3.200000e+01 : f32
    %96 = vector.broadcast %cst_37 : f32 to vector<8x1xf32>
    %97 = arith.divf %95, %96 : vector<8x1xf32>
    %98 = vector.broadcast %90 : vector<8x1xf32> to vector<8x32xf32>
    %99 = arith.subf %86, %98 : vector<8x32xf32>
    %cst_38 = arith.constant 9.99999974E-6 : f32
    %100 = vector.broadcast %cst_38 : f32 to vector<8x1xf32>
    %101 = arith.addf %97, %100 : vector<8x1xf32>
    %102 = math.rsqrt %101 : vector<8x1xf32>
    %103 = vector.broadcast %102 : vector<8x1xf32> to vector<8x32xf32>
    %104 = arith.mulf %99, %103 : vector<8x32xf32>
    %105 = vector.broadcast %15 : vector<1x32xf32> to vector<8x32xf32>
    %106 = arith.mulf %104, %105 : vector<8x32xf32>
    %107 = vector.broadcast %16 : vector<1x32xf32> to vector<8x32xf32>
    %108 = arith.addf %106, %107 : vector<8x32xf32>
    %109 = vector.broadcast %5 : vector<8x1xf32> to vector<8x32xf32>
    %110 = arith.mulf %108, %109 : vector<8x32xf32>
    %c0_39 = arith.constant 0 : index
    %c0_40 = arith.constant 0 : index
    %c0_41 = arith.constant 0 : index
    %111 = vector.load %arg6[%c0_39, %c0_40, %c0_41] : memref<2x32x64xf32, #tpu.memory_space<vmem>>, vector<1x32x64xf32>
    %112 = vector.shape_cast %111 : vector<1x32x64xf32> to vector<32x64xf32>
    %c0_42 = arith.constant 0 : index
    %c0_43 = arith.constant 0 : index
    %c0_44 = arith.constant 0 : index
    %113 = vector.load %arg7[%c0_42, %c0_43, %c0_44] : memref<2x64x32xf32, #tpu.memory_space<vmem>>, vector<1x64x32xf32>
    %114 = vector.shape_cast %113 : vector<1x64x32xf32> to vector<64x32xf32>
    %115 = vector.extract_strided_slice %7 {offsets = [4, 0], sizes = [4, 96], strides = [1, 1]} : vector<8x96xf32> to vector<4x96xf32>
    %116 = vector.extract_strided_slice %115 {offsets = [0, 0], sizes = [1, 64], strides = [1, 1]} : vector<4x96xf32> to vector<1x64xf32>
    %117 = vector.extract_strided_slice %115 {offsets = [1, 0], sizes = [1, 32], strides = [1, 1]} : vector<4x96xf32> to vector<1x32xf32>
    %118 = vector.extract_strided_slice %115 {offsets = [2, 0], sizes = [1, 32], strides = [1, 1]} : vector<4x96xf32> to vector<1x32xf32>
    %119 = vector.extract_strided_slice %115 {offsets = [3, 0], sizes = [1, 32], strides = [1, 1]} : vector<4x96xf32> to vector<1x32xf32>
    %cst_45 = arith.constant dense<0.000000e+00> : vector<8x64xf32>
    %120 = tpu.matmul %110, %112, %cst_45 {dimension_numbers = #tpu.dot_dimension_numbers<[1], [0], [0], [1], [0, 0, 1, 1], [], []>} : vector<8x32xf32>, vector<32x64xf32>, vector<8x64xf32> -> vector<8x64xf32>
    %121 = vector.broadcast %116 : vector<1x64xf32> to vector<8x64xf32>
    %122 = arith.addf %120, %121 : vector<8x64xf32>
    %cst_46 = arith.constant 0.000000e+00 : f32
    %123 = vector.broadcast %cst_46 : f32 to vector<8x64xf32>
    %124 = arith.maximumf %122, %123 : vector<8x64xf32>
    %cst_47 = arith.constant dense<0.000000e+00> : vector<8x32xf32>
    %125 = tpu.matmul %124, %114, %cst_47 {dimension_numbers = #tpu.dot_dimension_numbers<[1], [0], [0], [1], [0, 0, 1, 1], [], []>} : vector<8x64xf32>, vector<64x32xf32>, vector<8x32xf32> -> vector<8x32xf32>
    %126 = vector.broadcast %117 : vector<1x32xf32> to vector<8x32xf32>
    %127 = arith.addf %125, %126 : vector<8x32xf32>
    %128 = arith.addf %127, %110 : vector<8x32xf32>
    %cst_48 = arith.constant dense<0.000000e+00> : vector<8xf32>
    %129 = vector.multi_reduction <add>, %128, %cst_48 [1] : vector<8x32xf32> to vector<8xf32>
    %130 = vector.shape_cast %129 : vector<8xf32> to vector<8x1xf32>
    %cst_49 = arith.constant 3.200000e+01 : f32
    %131 = vector.broadcast %cst_49 : f32 to vector<8x1xf32>
    %132 = arith.divf %130, %131 : vector<8x1xf32>
    %133 = vector.broadcast %132 : vector<8x1xf32> to vector<8x32xf32>
    %134 = arith.subf %128, %133 : vector<8x32xf32>
    %135 = arith.mulf %134, %134 : vector<8x32xf32>
    %cst_50 = arith.constant dense<0.000000e+00> : vector<8xf32>
    %136 = vector.multi_reduction <add>, %135, %cst_50 [1] : vector<8x32xf32> to vector<8xf32>
    %137 = vector.shape_cast %136 : vector<8xf32> to vector<8x1xf32>
    %cst_51 = arith.constant 3.200000e+01 : f32
    %138 = vector.broadcast %cst_51 : f32 to vector<8x1xf32>
    %139 = arith.divf %137, %138 : vector<8x1xf32>
    %140 = vector.broadcast %132 : vector<8x1xf32> to vector<8x32xf32>
    %141 = arith.subf %128, %140 : vector<8x32xf32>
    %cst_52 = arith.constant 9.99999974E-6 : f32
    %142 = vector.broadcast %cst_52 : f32 to vector<8x1xf32>
    %143 = arith.addf %139, %142 : vector<8x1xf32>
    %144 = math.rsqrt %143 : vector<8x1xf32>
    %145 = vector.broadcast %144 : vector<8x1xf32> to vector<8x32xf32>
    %146 = arith.mulf %141, %145 : vector<8x32xf32>
    %147 = vector.broadcast %118 : vector<1x32xf32> to vector<8x32xf32>
    %148 = arith.mulf %146, %147 : vector<8x32xf32>
    %149 = vector.broadcast %119 : vector<1x32xf32> to vector<8x32xf32>
    %150 = arith.addf %148, %149 : vector<8x32xf32>
    %151 = vector.broadcast %5 : vector<8x1xf32> to vector<8x32xf32>
    %152 = arith.mulf %150, %151 : vector<8x32xf32>
    %c1 = arith.constant 1 : index
    %c0_53 = arith.constant 0 : index
    %c0_54 = arith.constant 0 : index
    %153 = vector.load %arg8[%c1, %c0_53, %c0_54] : memref<2x8x96xf32, #tpu.memory_space<vmem>>, vector<1x8x96xf32>
    %154 = vector.shape_cast %153 : vector<1x8x96xf32> to vector<8x96xf32>
    %c1_55 = arith.constant 1 : index
    %c0_56 = arith.constant 0 : index
    %c0_57 = arith.constant 0 : index
    %155 = vector.load %arg4[%c1_55, %c0_56, %c0_57] : memref<2x32x96xf32, #tpu.memory_space<vmem>>, vector<1x32x96xf32>
    %156 = vector.shape_cast %155 : vector<1x32x96xf32> to vector<32x96xf32>
    %c1_58 = arith.constant 1 : index
    %c0_59 = arith.constant 0 : index
    %c0_60 = arith.constant 0 : index
    %157 = vector.load %arg5[%c1_58, %c0_59, %c0_60] : memref<2x32x32xf32, #tpu.memory_space<vmem>>, vector<1x32x32xf32>
    %158 = vector.shape_cast %157 : vector<1x32x32xf32> to vector<32x32xf32>
    %159 = vector.extract_strided_slice %154 {offsets = [0, 0], sizes = [4, 96], strides = [1, 1]} : vector<8x96xf32> to vector<4x96xf32>
    %160 = vector.extract_strided_slice %159 {offsets = [0, 0], sizes = [1, 96], strides = [1, 1]} : vector<4x96xf32> to vector<1x96xf32>
    %161 = vector.extract_strided_slice %159 {offsets = [1, 0], sizes = [1, 32], strides = [1, 1]} : vector<4x96xf32> to vector<1x32xf32>
    %162 = vector.extract_strided_slice %159 {offsets = [2, 0], sizes = [1, 32], strides = [1, 1]} : vector<4x96xf32> to vector<1x32xf32>
    %163 = vector.extract_strided_slice %159 {offsets = [3, 0], sizes = [1, 32], strides = [1, 1]} : vector<4x96xf32> to vector<1x32xf32>
    %cst_61 = arith.constant dense<0.000000e+00> : vector<8x96xf32>
    %164 = tpu.matmul %152, %156, %cst_61 {dimension_numbers = #tpu.dot_dimension_numbers<[1], [0], [0], [1], [0, 0, 1, 1], [], []>} : vector<8x32xf32>, vector<32x96xf32>, vector<8x96xf32> -> vector<8x96xf32>
    %165 = vector.broadcast %160 : vector<1x96xf32> to vector<8x96xf32>
    %166 = arith.addf %164, %165 : vector<8x96xf32>
    %167 = vector.extract_strided_slice %166 {offsets = [0, 0], sizes = [8, 32], strides = [1, 1]} : vector<8x96xf32> to vector<8x32xf32>
    %168 = vector.extract_strided_slice %166 {offsets = [0, 32], sizes = [8, 32], strides = [1, 1]} : vector<8x96xf32> to vector<8x32xf32>
    %169 = vector.extract_strided_slice %166 {offsets = [0, 64], sizes = [8, 32], strides = [1, 1]} : vector<8x96xf32> to vector<8x32xf32>
    %170 = vector.extract_strided_slice %167 {offsets = [0, 0], sizes = [8, 8], strides = [1, 1]} : vector<8x32xf32> to vector<8x8xf32>
    %171 = vector.extract_strided_slice %168 {offsets = [0, 0], sizes = [8, 8], strides = [1, 1]} : vector<8x32xf32> to vector<8x8xf32>
    %cst_62 = arith.constant dense<0.000000e+00> : vector<8x8xf32>
    %172 = tpu.matmul %170, %171, %cst_62 {dimension_numbers = #tpu.dot_dimension_numbers<[1], [1], [0], [0], [0, 0, 1, 0], [], []>} : vector<8x8xf32>, vector<8x8xf32>, vector<8x8xf32> -> vector<8x8xf32>
    %173 = vector.extract_strided_slice %167 {offsets = [0, 8], sizes = [8, 8], strides = [1, 1]} : vector<8x32xf32> to vector<8x8xf32>
    %174 = vector.extract_strided_slice %168 {offsets = [0, 8], sizes = [8, 8], strides = [1, 1]} : vector<8x32xf32> to vector<8x8xf32>
    %cst_63 = arith.constant dense<0.000000e+00> : vector<8x8xf32>
    %175 = tpu.matmul %173, %174, %cst_63 {dimension_numbers = #tpu.dot_dimension_numbers<[1], [1], [0], [0], [0, 0, 1, 0], [], []>} : vector<8x8xf32>, vector<8x8xf32>, vector<8x8xf32> -> vector<8x8xf32>
    %176 = vector.extract_strided_slice %167 {offsets = [0, 16], sizes = [8, 8], strides = [1, 1]} : vector<8x32xf32> to vector<8x8xf32>
    %177 = vector.extract_strided_slice %168 {offsets = [0, 16], sizes = [8, 8], strides = [1, 1]} : vector<8x32xf32> to vector<8x8xf32>
    %cst_64 = arith.constant dense<0.000000e+00> : vector<8x8xf32>
    %178 = tpu.matmul %176, %177, %cst_64 {dimension_numbers = #tpu.dot_dimension_numbers<[1], [1], [0], [0], [0, 0, 1, 0], [], []>} : vector<8x8xf32>, vector<8x8xf32>, vector<8x8xf32> -> vector<8x8xf32>
    %179 = vector.extract_strided_slice %167 {offsets = [0, 24], sizes = [8, 8], strides = [1, 1]} : vector<8x32xf32> to vector<8x8xf32>
    %180 = vector.extract_strided_slice %168 {offsets = [0, 24], sizes = [8, 8], strides = [1, 1]} : vector<8x32xf32> to vector<8x8xf32>
    %cst_65 = arith.constant dense<0.000000e+00> : vector<8x8xf32>
    %181 = tpu.matmul %179, %180, %cst_65 {dimension_numbers = #tpu.dot_dimension_numbers<[1], [1], [0], [0], [0, 0, 1, 0], [], []>} : vector<8x8xf32>, vector<8x8xf32>, vector<8x8xf32> -> vector<8x8xf32>
    %182 = vector.shape_cast %172 : vector<8x8xf32> to vector<1x8x8xf32>
    %183 = vector.shape_cast %175 : vector<8x8xf32> to vector<1x8x8xf32>
    %184 = vector.shape_cast %178 : vector<8x8xf32> to vector<1x8x8xf32>
    %185 = vector.shape_cast %181 : vector<8x8xf32> to vector<1x8x8xf32>
    %186 = tpu.concatenate %182, %183, %184, %185 in 0 : vector<1x8x8xf32>, vector<1x8x8xf32>, vector<1x8x8xf32>, vector<1x8x8xf32> -> vector<4x8x8xf32>
    %cst_66 = arith.constant 0.353553385 : f32
    %187 = vector.broadcast %cst_66 : f32 to vector<4x8x8xf32>
    %188 = arith.mulf %186, %187 : vector<4x8x8xf32>
    %cst_67 = arith.constant 0.000000e+00 : f32
    %189 = vector.broadcast %cst_67 : f32 to vector<1x8xf32>
    %190 = arith.cmpf ogt, %3, %189 : vector<1x8xf32>
    %cst_68 = arith.constant -1.000000e+09 : f32
    %191 = vector.shape_cast %190 : vector<1x8xi1> to vector<1x1x8xi1>
    %192 = vector.broadcast %191 : vector<1x1x8xi1> to vector<4x8x8xi1>
    %193 = vector.broadcast %cst_68 : f32 to vector<4x8x8xf32>
    %194 = arith.select %192, %193, %188 : vector<4x8x8xi1>, vector<4x8x8xf32>
    %cst_69 = arith.constant dense<0xFF800000> : vector<4x8xf32>
    %195 = vector.multi_reduction <maximumf>, %194, %cst_69 [2] : vector<4x8x8xf32> to vector<4x8xf32>
    %196 = vector.shape_cast %195 : vector<4x8xf32> to vector<4x8x1xf32>
    %197 = vector.broadcast %196 : vector<4x8x1xf32> to vector<4x8x8xf32>
    %198 = arith.subf %194, %197 : vector<4x8x8xf32>
    %199 = math.exp %198 : vector<4x8x8xf32>
    %cst_70 = arith.constant dense<0.000000e+00> : vector<4x8xf32>
    %200 = vector.multi_reduction <add>, %199, %cst_70 [2] : vector<4x8x8xf32> to vector<4x8xf32>
    %201 = vector.shape_cast %200 : vector<4x8xf32> to vector<4x8x1xf32>
    %202 = vector.broadcast %201 : vector<4x8x1xf32> to vector<4x8x8xf32>
    %203 = arith.divf %199, %202 : vector<4x8x8xf32>
    %204 = vector.extract_strided_slice %203 {offsets = [0, 0, 0], sizes = [1, 8, 8], strides = [1, 1, 1]} : vector<4x8x8xf32> to vector<1x8x8xf32>
    %205 = vector.shape_cast %204 : vector<1x8x8xf32> to vector<8x8xf32>
    %206 = vector.extract_strided_slice %169 {offsets = [0, 0], sizes = [8, 8], strides = [1, 1]} : vector<8x32xf32> to vector<8x8xf32>
    %cst_71 = arith.constant dense<0.000000e+00> : vector<8x8xf32>
    %207 = tpu.matmul %205, %206, %cst_71 {dimension_numbers = #tpu.dot_dimension_numbers<[1], [0], [0], [1], [0, 0, 1, 1], [], []>} : vector<8x8xf32>, vector<8x8xf32>, vector<8x8xf32> -> vector<8x8xf32>
    %208 = vector.extract_strided_slice %158 {offsets = [0, 0], sizes = [8, 32], strides = [1, 1]} : vector<32x32xf32> to vector<8x32xf32>
    %cst_72 = arith.constant dense<0.000000e+00> : vector<8x32xf32>
    %209 = tpu.matmul %207, %208, %cst_72 {dimension_numbers = #tpu.dot_dimension_numbers<[1], [0], [0], [1], [0, 0, 1, 1], [], []>} : vector<8x8xf32>, vector<8x32xf32>, vector<8x32xf32> -> vector<8x32xf32>
    %210 = vector.broadcast %161 : vector<1x32xf32> to vector<8x32xf32>
    %211 = arith.addf %210, %209 : vector<8x32xf32>
    %212 = vector.extract_strided_slice %203 {offsets = [1, 0, 0], sizes = [1, 8, 8], strides = [1, 1, 1]} : vector<4x8x8xf32> to vector<1x8x8xf32>
    %213 = vector.shape_cast %212 : vector<1x8x8xf32> to vector<8x8xf32>
    %214 = vector.extract_strided_slice %169 {offsets = [0, 8], sizes = [8, 8], strides = [1, 1]} : vector<8x32xf32> to vector<8x8xf32>
    %cst_73 = arith.constant dense<0.000000e+00> : vector<8x8xf32>
    %215 = tpu.matmul %213, %214, %cst_73 {dimension_numbers = #tpu.dot_dimension_numbers<[1], [0], [0], [1], [0, 0, 1, 1], [], []>} : vector<8x8xf32>, vector<8x8xf32>, vector<8x8xf32> -> vector<8x8xf32>
    %216 = vector.extract_strided_slice %158 {offsets = [8, 0], sizes = [8, 32], strides = [1, 1]} : vector<32x32xf32> to vector<8x32xf32>
    %cst_74 = arith.constant dense<0.000000e+00> : vector<8x32xf32>
    %217 = tpu.matmul %215, %216, %cst_74 {dimension_numbers = #tpu.dot_dimension_numbers<[1], [0], [0], [1], [0, 0, 1, 1], [], []>} : vector<8x8xf32>, vector<8x32xf32>, vector<8x32xf32> -> vector<8x32xf32>
    %218 = arith.addf %211, %217 : vector<8x32xf32>
    %219 = vector.extract_strided_slice %203 {offsets = [2, 0, 0], sizes = [1, 8, 8], strides = [1, 1, 1]} : vector<4x8x8xf32> to vector<1x8x8xf32>
    %220 = vector.shape_cast %219 : vector<1x8x8xf32> to vector<8x8xf32>
    %221 = vector.extract_strided_slice %169 {offsets = [0, 16], sizes = [8, 8], strides = [1, 1]} : vector<8x32xf32> to vector<8x8xf32>
    %cst_75 = arith.constant dense<0.000000e+00> : vector<8x8xf32>
    %222 = tpu.matmul %220, %221, %cst_75 {dimension_numbers = #tpu.dot_dimension_numbers<[1], [0], [0], [1], [0, 0, 1, 1], [], []>} : vector<8x8xf32>, vector<8x8xf32>, vector<8x8xf32> -> vector<8x8xf32>
    %223 = vector.extract_strided_slice %158 {offsets = [16, 0], sizes = [8, 32], strides = [1, 1]} : vector<32x32xf32> to vector<8x32xf32>
    %cst_76 = arith.constant dense<0.000000e+00> : vector<8x32xf32>
    %224 = tpu.matmul %222, %223, %cst_76 {dimension_numbers = #tpu.dot_dimension_numbers<[1], [0], [0], [1], [0, 0, 1, 1], [], []>} : vector<8x8xf32>, vector<8x32xf32>, vector<8x32xf32> -> vector<8x32xf32>
    %225 = arith.addf %218, %224 : vector<8x32xf32>
    %226 = vector.extract_strided_slice %203 {offsets = [3, 0, 0], sizes = [1, 8, 8], strides = [1, 1, 1]} : vector<4x8x8xf32> to vector<1x8x8xf32>
    %227 = vector.shape_cast %226 : vector<1x8x8xf32> to vector<8x8xf32>
    %228 = vector.extract_strided_slice %169 {offsets = [0, 24], sizes = [8, 8], strides = [1, 1]} : vector<8x32xf32> to vector<8x8xf32>
    %cst_77 = arith.constant dense<0.000000e+00> : vector<8x8xf32>
    %229 = tpu.matmul %227, %228, %cst_77 {dimension_numbers = #tpu.dot_dimension_numbers<[1], [0], [0], [1], [0, 0, 1, 1], [], []>} : vector<8x8xf32>, vector<8x8xf32>, vector<8x8xf32> -> vector<8x8xf32>
    %230 = vector.extract_strided_slice %158 {offsets = [24, 0], sizes = [8, 32], strides = [1, 1]} : vector<32x32xf32> to vector<8x32xf32>
    %cst_78 = arith.constant dense<0.000000e+00> : vector<8x32xf32>
    %231 = tpu.matmul %229, %230, %cst_78 {dimension_numbers = #tpu.dot_dimension_numbers<[1], [0], [0], [1], [0, 0, 1, 1], [], []>} : vector<8x8xf32>, vector<8x32xf32>, vector<8x32xf32> -> vector<8x32xf32>
    %232 = arith.addf %225, %231 : vector<8x32xf32>
    %233 = arith.addf %232, %152 : vector<8x32xf32>
    %cst_79 = arith.constant dense<0.000000e+00> : vector<8xf32>
    %234 = vector.multi_reduction <add>, %233, %cst_79 [1] : vector<8x32xf32> to vector<8xf32>
    %235 = vector.shape_cast %234 : vector<8xf32> to vector<8x1xf32>
    %cst_80 = arith.constant 3.200000e+01 : f32
    %236 = vector.broadcast %cst_80 : f32 to vector<8x1xf32>
    %237 = arith.divf %235, %236 : vector<8x1xf32>
    %238 = vector.broadcast %237 : vector<8x1xf32> to vector<8x32xf32>
    %239 = arith.subf %233, %238 : vector<8x32xf32>
    %240 = arith.mulf %239, %239 : vector<8x32xf32>
    %cst_81 = arith.constant dense<0.000000e+00> : vector<8xf32>
    %241 = vector.multi_reduction <add>, %240, %cst_81 [1] : vector<8x32xf32> to vector<8xf32>
    %242 = vector.shape_cast %241 : vector<8xf32> to vector<8x1xf32>
    %cst_82 = arith.constant 3.200000e+01 : f32
    %243 = vector.broadcast %cst_82 : f32 to vector<8x1xf32>
    %244 = arith.divf %242, %243 : vector<8x1xf32>
    %245 = vector.broadcast %237 : vector<8x1xf32> to vector<8x32xf32>
    %246 = arith.subf %233, %245 : vector<8x32xf32>
    %cst_83 = arith.constant 9.99999974E-6 : f32
    %247 = vector.broadcast %cst_83 : f32 to vector<8x1xf32>
    %248 = arith.addf %244, %247 : vector<8x1xf32>
    %249 = math.rsqrt %248 : vector<8x1xf32>
    %250 = vector.broadcast %249 : vector<8x1xf32> to vector<8x32xf32>
    %251 = arith.mulf %246, %250 : vector<8x32xf32>
    %252 = vector.broadcast %162 : vector<1x32xf32> to vector<8x32xf32>
    %253 = arith.mulf %251, %252 : vector<8x32xf32>
    %254 = vector.broadcast %163 : vector<1x32xf32> to vector<8x32xf32>
    %255 = arith.addf %253, %254 : vector<8x32xf32>
    %256 = vector.broadcast %5 : vector<8x1xf32> to vector<8x32xf32>
    %257 = arith.mulf %255, %256 : vector<8x32xf32>
    %c1_84 = arith.constant 1 : index
    %c0_85 = arith.constant 0 : index
    %c0_86 = arith.constant 0 : index
    %258 = vector.load %arg6[%c1_84, %c0_85, %c0_86] : memref<2x32x64xf32, #tpu.memory_space<vmem>>, vector<1x32x64xf32>
    %259 = vector.shape_cast %258 : vector<1x32x64xf32> to vector<32x64xf32>
    %c1_87 = arith.constant 1 : index
    %c0_88 = arith.constant 0 : index
    %c0_89 = arith.constant 0 : index
    %260 = vector.load %arg7[%c1_87, %c0_88, %c0_89] : memref<2x64x32xf32, #tpu.memory_space<vmem>>, vector<1x64x32xf32>
    %261 = vector.shape_cast %260 : vector<1x64x32xf32> to vector<64x32xf32>
    %262 = vector.extract_strided_slice %154 {offsets = [4, 0], sizes = [4, 96], strides = [1, 1]} : vector<8x96xf32> to vector<4x96xf32>
    %263 = vector.extract_strided_slice %262 {offsets = [0, 0], sizes = [1, 64], strides = [1, 1]} : vector<4x96xf32> to vector<1x64xf32>
    %264 = vector.extract_strided_slice %262 {offsets = [1, 0], sizes = [1, 32], strides = [1, 1]} : vector<4x96xf32> to vector<1x32xf32>
    %265 = vector.extract_strided_slice %262 {offsets = [2, 0], sizes = [1, 32], strides = [1, 1]} : vector<4x96xf32> to vector<1x32xf32>
    %266 = vector.extract_strided_slice %262 {offsets = [3, 0], sizes = [1, 32], strides = [1, 1]} : vector<4x96xf32> to vector<1x32xf32>
    %cst_90 = arith.constant dense<0.000000e+00> : vector<8x64xf32>
    %267 = tpu.matmul %257, %259, %cst_90 {dimension_numbers = #tpu.dot_dimension_numbers<[1], [0], [0], [1], [0, 0, 1, 1], [], []>} : vector<8x32xf32>, vector<32x64xf32>, vector<8x64xf32> -> vector<8x64xf32>
    %268 = vector.broadcast %263 : vector<1x64xf32> to vector<8x64xf32>
    %269 = arith.addf %267, %268 : vector<8x64xf32>
    %cst_91 = arith.constant 0.000000e+00 : f32
    %270 = vector.broadcast %cst_91 : f32 to vector<8x64xf32>
    %271 = arith.maximumf %269, %270 : vector<8x64xf32>
    %cst_92 = arith.constant dense<0.000000e+00> : vector<8x32xf32>
    %272 = tpu.matmul %271, %261, %cst_92 {dimension_numbers = #tpu.dot_dimension_numbers<[1], [0], [0], [1], [0, 0, 1, 1], [], []>} : vector<8x64xf32>, vector<64x32xf32>, vector<8x32xf32> -> vector<8x32xf32>
    %273 = vector.broadcast %264 : vector<1x32xf32> to vector<8x32xf32>
    %274 = arith.addf %272, %273 : vector<8x32xf32>
    %275 = arith.addf %274, %257 : vector<8x32xf32>
    %cst_93 = arith.constant dense<0.000000e+00> : vector<8xf32>
    %276 = vector.multi_reduction <add>, %275, %cst_93 [1] : vector<8x32xf32> to vector<8xf32>
    %277 = vector.shape_cast %276 : vector<8xf32> to vector<8x1xf32>
    %cst_94 = arith.constant 3.200000e+01 : f32
    %278 = vector.broadcast %cst_94 : f32 to vector<8x1xf32>
    %279 = arith.divf %277, %278 : vector<8x1xf32>
    %280 = vector.broadcast %279 : vector<8x1xf32> to vector<8x32xf32>
    %281 = arith.subf %275, %280 : vector<8x32xf32>
    %282 = arith.mulf %281, %281 : vector<8x32xf32>
    %cst_95 = arith.constant dense<0.000000e+00> : vector<8xf32>
    %283 = vector.multi_reduction <add>, %282, %cst_95 [1] : vector<8x32xf32> to vector<8xf32>
    %284 = vector.shape_cast %283 : vector<8xf32> to vector<8x1xf32>
    %cst_96 = arith.constant 3.200000e+01 : f32
    %285 = vector.broadcast %cst_96 : f32 to vector<8x1xf32>
    %286 = arith.divf %284, %285 : vector<8x1xf32>
    %287 = vector.broadcast %279 : vector<8x1xf32> to vector<8x32xf32>
    %288 = arith.subf %275, %287 : vector<8x32xf32>
    %cst_97 = arith.constant 9.99999974E-6 : f32
    %289 = vector.broadcast %cst_97 : f32 to vector<8x1xf32>
    %290 = arith.addf %286, %289 : vector<8x1xf32>
    %291 = math.rsqrt %290 : vector<8x1xf32>
    %292 = vector.broadcast %291 : vector<8x1xf32> to vector<8x32xf32>
    %293 = arith.mulf %288, %292 : vector<8x32xf32>
    %294 = vector.broadcast %265 : vector<1x32xf32> to vector<8x32xf32>
    %295 = arith.mulf %293, %294 : vector<8x32xf32>
    %296 = vector.broadcast %266 : vector<1x32xf32> to vector<8x32xf32>
    %297 = arith.addf %295, %296 : vector<8x32xf32>
    %298 = vector.broadcast %5 : vector<8x1xf32> to vector<8x32xf32>
    %299 = arith.mulf %297, %298 : vector<8x32xf32>
    %c0_98 = arith.constant 0 : index
    %c0_99 = arith.constant 0 : index
    %c0_100 = arith.constant 0 : index
    %300 = vector.load %arg9[%c0_98, %c0_99, %c0_100] : memref<1x8x32xf32, #tpu.memory_space<vmem>>, vector<1x8x32xf32>
    %301 = vector.shape_cast %300 : vector<1x8x32xf32> to vector<8x32xf32>
    %302 = vector.shape_cast %299 : vector<8x32xf32> to vector<1x8x32xf32>
    tpu.vector_store %arg9[%c0_98, %c0_99, %c0_100], %302 {strides = array<i32>} : memref<1x8x32xf32, #tpu.memory_space<vmem>>, vector<1x8x32xf32>,
    return
  }
  func.func @transform_0(%arg0: i32) -> (i32, i32, i32) {
    %c0_i32 = arith.constant 0 : i32
    %c0_i32_0 = arith.constant 0 : i32
    %c0_i32_1 = arith.constant 0 : i32
    return %arg0, %c0_i32, %c0_i32_0 : i32, i32, i32
  }
  func.func @transform_1(%arg0: i32) -> (i32, i32, i32) {
    %c0_i32 = arith.constant 0 : i32
    %c0_i32_0 = arith.constant 0 : i32
    %c0_i32_1 = arith.constant 0 : i32
    return %arg0, %c0_i32, %c0_i32_0 : i32, i32, i32
  }
  func.func @transform_2(%arg0: i32) -> (i32, i32, i32) {
    %c0_i32 = arith.constant 0 : i32
    %c0_i32_0 = arith.constant 0 : i32
    %c0_i32_1 = arith.constant 0 : i32
    return %arg0, %c0_i32, %c0_i32_0 : i32, i32, i32
  }
  func.func @transform_3(%arg0: i32) -> (i32, i32, i32) {
    %c0_i32 = arith.constant 0 : i32
    %c0_i32_0 = arith.constant 0 : i32
    %c0_i32_1 = arith.constant 0 : i32
    %c0_i32_2 = arith.constant 0 : i32
    return %c0_i32, %c0_i32_0, %c0_i32_1 : i32, i32, i32
  }
  func.func @transform_4(%arg0: i32) -> (i32, i32, i32) {
    %c0_i32 = arith.constant 0 : i32
    %c0_i32_0 = arith.constant 0 : i32
    %c0_i32_1 = arith.constant 0 : i32
    %c0_i32_2 = arith.constant 0 : i32
    return %c0_i32, %c0_i32_0, %c0_i32_1 : i32, i32, i32
  }
  func.func @transform_5(%arg0: i32) -> (i32, i32, i32) {
    %c0_i32 = arith.constant 0 : i32
    %c0_i32_0 = arith.constant 0 : i32
    %c0_i32_1 = arith.constant 0 : i32
    %c0_i32_2 = arith.constant 0 : i32
    return %c0_i32, %c0_i32_0, %c0_i32_1 : i32, i32, i32
  }
  func.func @transform_6(%arg0: i32) -> (i32, i32, i32) {
    %c0_i32 = arith.constant 0 : i32
    %c0_i32_0 = arith.constant 0 : i32
    %c0_i32_1 = arith.constant 0 : i32
    %c0_i32_2 = arith.constant 0 : i32
    return %c0_i32, %c0_i32_0, %c0_i32_1 : i32, i32, i32
  }
  func.func @transform_7(%arg0: i32) -> (i32, i32, i32) {
    %c0_i32 = arith.constant 0 : i32
    %c0_i32_0 = arith.constant 0 : i32
    %c0_i32_1 = arith.constant 0 : i32
    %c0_i32_2 = arith.constant 0 : i32
    return %c0_i32, %c0_i32_0, %c0_i32_1 : i32, i32, i32
  }
  func.func @transform_8(%arg0: i32) -> (i32, i32, i32) {
    %c0_i32 = arith.constant 0 : i32
    %c0_i32_0 = arith.constant 0 : i32
    %c0_i32_1 = arith.constant 0 : i32
    return %arg0, %c0_i32, %c0_i32_0 : i32, i32, i32
  }
}

module attributes {stable_mosaic.version = 11 : i64} {
  func.func @_decoder_kernel(%arg0: i32, %arg1: memref<1x7x32xf32, #tpu.memory_space<vmem>>, %arg2: memref<1x8x32xf32, #tpu.memory_space<vmem>>, %arg3: memref<1x1x8xf32, #tpu.memory_space<vmem>>, %arg4: memref<1x1x7xf32, #tpu.memory_space<vmem>>, %arg5: memref<1x7x1xf32, #tpu.memory_space<vmem>>, %arg6: memref<2x32x96xf32, #tpu.memory_space<vmem>>, %arg7: memref<2x32x32xf32, #tpu.memory_space<vmem>>, %arg8: memref<2x32x96xf32, #tpu.memory_space<vmem>>, %arg9: memref<2x32x32xf32, #tpu.memory_space<vmem>>, %arg10: memref<2x32x64xf32, #tpu.memory_space<vmem>>, %arg11: memref<2x64x32xf32, #tpu.memory_space<vmem>>, %arg12: memref<2x12x96xf32, #tpu.memory_space<vmem>>, %arg13: memref<32x128xf32, #tpu.memory_space<vmem>>, %arg14: memref<1x7x128xf32, #tpu.memory_space<vmem>>) attributes {dimension_semantics = [#tpu.dimension_semantics<parallel>], iteration_bounds = array<i64: 2>, scalar_prefetch = 0 : i64, scratch_operands = 0 : i64, tpu.core_type = #tpu.core_type<tc>, window_params = [{transform_indices = @transform_0, window_bounds = array<i64: 1, 7, 32>}, {transform_indices = @transform_1, window_bounds = array<i64: 1, 8, 32>}, {transform_indices = @transform_2, window_bounds = array<i64: 1, 1, 8>}, {transform_indices = @transform_3, window_bounds = array<i64: 1, 1, 7>}, {transform_indices = @transform_4, window_bounds = array<i64: 1, 7, 1>}, {pipeline_mode = #tpu.pipeline_mode<synchronous>, transform_indices = @transform_5, window_bounds = array<i64: 2, 32, 96>}, {pipeline_mode = #tpu.pipeline_mode<synchronous>, transform_indices = @transform_6, window_bounds = array<i64: 2, 32, 32>}, {pipeline_mode = #tpu.pipeline_mode<synchronous>, transform_indices = @transform_7, window_bounds = array<i64: 2, 32, 96>}, {pipeline_mode = #tpu.pipeline_mode<synchronous>, transform_indices = @transform_8, window_bounds = array<i64: 2, 32, 32>}, {pipeline_mode = #tpu.pipeline_mode<synchronous>, transform_indices = @transform_9, window_bounds = array<i64: 2, 32, 64>}, {pipeline_mode = #tpu.pipeline_mode<synchronous>, transform_indices = @transform_10, window_bounds = array<i64: 2, 64, 32>}, {pipeline_mode = #tpu.pipeline_mode<synchronous>, transform_indices = @transform_11, window_bounds = array<i64: 2, 12, 96>}, {pipeline_mode = #tpu.pipeline_mode<synchronous>, transform_indices = @transform_12, window_bounds = array<i64: 32, 128>}, {transform_indices = @transform_13, window_bounds = array<i64: 1, 7, 128>}]} {
    %c0 = arith.constant 0 : index
    %c0_0 = arith.constant 0 : index
    %c0_1 = arith.constant 0 : index
    %0 = vector.load %arg1[%c0, %c0_0, %c0_1] : memref<1x7x32xf32, #tpu.memory_space<vmem>>, vector<1x7x32xf32>
    %1 = vector.shape_cast %0 : vector<1x7x32xf32> to vector<7x32xf32>
    %c0_2 = arith.constant 0 : index
    %c0_3 = arith.constant 0 : index
    %c0_4 = arith.constant 0 : index
    %2 = vector.load %arg2[%c0_2, %c0_3, %c0_4] : memref<1x8x32xf32, #tpu.memory_space<vmem>>, vector<1x8x32xf32>
    %3 = vector.shape_cast %2 : vector<1x8x32xf32> to vector<8x32xf32>
    %c0_5 = arith.constant 0 : index
    %c0_6 = arith.constant 0 : index
    %c0_7 = arith.constant 0 : index
    %4 = vector.load %arg3[%c0_5, %c0_6, %c0_7] : memref<1x1x8xf32, #tpu.memory_space<vmem>>, vector<1x1x8xf32>
    %5 = vector.shape_cast %4 : vector<1x1x8xf32> to vector<1x8xf32>
    %c0_8 = arith.constant 0 : index
    %c0_9 = arith.constant 0 : index
    %c0_10 = arith.constant 0 : index
    %6 = vector.load %arg4[%c0_8, %c0_9, %c0_10] : memref<1x1x7xf32, #tpu.memory_space<vmem>>, vector<1x1x7xf32>
    %7 = vector.shape_cast %6 : vector<1x1x7xf32> to vector<1x7xf32>
    %c0_11 = arith.constant 0 : index
    %c0_12 = arith.constant 0 : index
    %c0_13 = arith.constant 0 : index
    %8 = vector.load %arg5[%c0_11, %c0_12, %c0_13] : memref<1x7x1xf32, #tpu.memory_space<vmem>>, vector<1x7x1xf32>
    %9 = vector.shape_cast %8 : vector<1x7x1xf32> to vector<7x1xf32>
    %c0_14 = arith.constant 0 : index
    %c0_15 = arith.constant 0 : index
    %c0_16 = arith.constant 0 : index
    %10 = vector.load %arg12[%c0_14, %c0_15, %c0_16] : memref<2x12x96xf32, #tpu.memory_space<vmem>>, vector<1x12x96xf32>
    %11 = vector.shape_cast %10 : vector<1x12x96xf32> to vector<12x96xf32>
    %c0_17 = arith.constant 0 : index
    %c0_18 = arith.constant 0 : index
    %c0_19 = arith.constant 0 : index
    %12 = vector.load %arg6[%c0_17, %c0_18, %c0_19] : memref<2x32x96xf32, #tpu.memory_space<vmem>>, vector<1x32x96xf32>
    %13 = vector.shape_cast %12 : vector<1x32x96xf32> to vector<32x96xf32>
    %c0_20 = arith.constant 0 : index
    %c0_21 = arith.constant 0 : index
    %c0_22 = arith.constant 0 : index
    %14 = vector.load %arg7[%c0_20, %c0_21, %c0_22] : memref<2x32x32xf32, #tpu.memory_space<vmem>>, vector<1x32x32xf32>
    %15 = vector.shape_cast %14 : vector<1x32x32xf32> to vector<32x32xf32>
    %16 = vector.extract_strided_slice %11 {offsets = [0, 0], sizes = [4, 96], strides = [1, 1]} : vector<12x96xf32> to vector<4x96xf32>
    %17 = vector.extract_strided_slice %16 {offsets = [0, 0], sizes = [1, 96], strides = [1, 1]} : vector<4x96xf32> to vector<1x96xf32>
    %18 = vector.extract_strided_slice %16 {offsets = [1, 0], sizes = [1, 32], strides = [1, 1]} : vector<4x96xf32> to vector<1x32xf32>
    %19 = vector.extract_strided_slice %16 {offsets = [2, 0], sizes = [1, 32], strides = [1, 1]} : vector<4x96xf32> to vector<1x32xf32>
    %20 = vector.extract_strided_slice %16 {offsets = [3, 0], sizes = [1, 32], strides = [1, 1]} : vector<4x96xf32> to vector<1x32xf32>
    %cst = arith.constant dense<0.000000e+00> : vector<7x96xf32>
    %21 = tpu.matmul %1, %13, %cst {dimension_numbers = #tpu.dot_dimension_numbers<[1], [0], [0], [1], [0, 0, 1, 1], [], []>} : vector<7x32xf32>, vector<32x96xf32>, vector<7x96xf32> -> vector<7x96xf32>
    %22 = vector.broadcast %17 : vector<1x96xf32> to vector<7x96xf32>
    %23 = arith.addf %21, %22 : vector<7x96xf32>
    %24 = vector.extract_strided_slice %23 {offsets = [0, 0], sizes = [7, 32], strides = [1, 1]} : vector<7x96xf32> to vector<7x32xf32>
    %25 = vector.extract_strided_slice %23 {offsets = [0, 32], sizes = [7, 32], strides = [1, 1]} : vector<7x96xf32> to vector<7x32xf32>
    %26 = vector.extract_strided_slice %23 {offsets = [0, 64], sizes = [7, 32], strides = [1, 1]} : vector<7x96xf32> to vector<7x32xf32>
    %27 = vector.extract_strided_slice %24 {offsets = [0, 0], sizes = [7, 8], strides = [1, 1]} : vector<7x32xf32> to vector<7x8xf32>
    %28 = vector.extract_strided_slice %25 {offsets = [0, 0], sizes = [7, 8], strides = [1, 1]} : vector<7x32xf32> to vector<7x8xf32>
    %cst_23 = arith.constant dense<0.000000e+00> : vector<7x7xf32>
    %29 = tpu.matmul %27, %28, %cst_23 {dimension_numbers = #tpu.dot_dimension_numbers<[1], [1], [0], [0], [0, 0, 1, 0], [], []>} : vector<7x8xf32>, vector<7x8xf32>, vector<7x7xf32> -> vector<7x7xf32>
    %30 = vector.extract_strided_slice %24 {offsets = [0, 8], sizes = [7, 8], strides = [1, 1]} : vector<7x32xf32> to vector<7x8xf32>
    %31 = vector.extract_strided_slice %25 {offsets = [0, 8], sizes = [7, 8], strides = [1, 1]} : vector<7x32xf32> to vector<7x8xf32>
    %cst_24 = arith.constant dense<0.000000e+00> : vector<7x7xf32>
    %32 = tpu.matmul %30, %31, %cst_24 {dimension_numbers = #tpu.dot_dimension_numbers<[1], [1], [0], [0], [0, 0, 1, 0], [], []>} : vector<7x8xf32>, vector<7x8xf32>, vector<7x7xf32> -> vector<7x7xf32>
    %33 = vector.extract_strided_slice %24 {offsets = [0, 16], sizes = [7, 8], strides = [1, 1]} : vector<7x32xf32> to vector<7x8xf32>
    %34 = vector.extract_strided_slice %25 {offsets = [0, 16], sizes = [7, 8], strides = [1, 1]} : vector<7x32xf32> to vector<7x8xf32>
    %cst_25 = arith.constant dense<0.000000e+00> : vector<7x7xf32>
    %35 = tpu.matmul %33, %34, %cst_25 {dimension_numbers = #tpu.dot_dimension_numbers<[1], [1], [0], [0], [0, 0, 1, 0], [], []>} : vector<7x8xf32>, vector<7x8xf32>, vector<7x7xf32> -> vector<7x7xf32>
    %36 = vector.extract_strided_slice %24 {offsets = [0, 24], sizes = [7, 8], strides = [1, 1]} : vector<7x32xf32> to vector<7x8xf32>
    %37 = vector.extract_strided_slice %25 {offsets = [0, 24], sizes = [7, 8], strides = [1, 1]} : vector<7x32xf32> to vector<7x8xf32>
    %cst_26 = arith.constant dense<0.000000e+00> : vector<7x7xf32>
    %38 = tpu.matmul %36, %37, %cst_26 {dimension_numbers = #tpu.dot_dimension_numbers<[1], [1], [0], [0], [0, 0, 1, 0], [], []>} : vector<7x8xf32>, vector<7x8xf32>, vector<7x7xf32> -> vector<7x7xf32>
    %39 = vector.shape_cast %29 : vector<7x7xf32> to vector<1x7x7xf32>
    %40 = vector.shape_cast %32 : vector<7x7xf32> to vector<1x7x7xf32>
    %41 = vector.shape_cast %35 : vector<7x7xf32> to vector<1x7x7xf32>
    %42 = vector.shape_cast %38 : vector<7x7xf32> to vector<1x7x7xf32>
    %43 = tpu.concatenate %39, %40, %41, %42 in 0 : vector<1x7x7xf32>, vector<1x7x7xf32>, vector<1x7x7xf32>, vector<1x7x7xf32> -> vector<4x7x7xf32>
    %cst_27 = arith.constant 0.353553385 : f32
    %44 = vector.broadcast %cst_27 : f32 to vector<4x7x7xf32>
    %45 = arith.mulf %43, %44 : vector<4x7x7xf32>
    %cst_28 = arith.constant 0.000000e+00 : f32
    %46 = vector.broadcast %cst_28 : f32 to vector<1x7xf32>
    %47 = arith.cmpf ogt, %7, %46 : vector<1x7xf32>
    %48 = tpu.iota {dimensions = array<i32: 1>} : vector<4x7x7xi32>
    %49 = tpu.iota {dimensions = array<i32: 2>} : vector<4x7x7xi32>
    %50 = arith.cmpi sgt, %49, %48 : vector<4x7x7xi32>
    %51 = vector.shape_cast %47 : vector<1x7xi1> to vector<1x1x7xi1>
    %52 = vector.broadcast %51 : vector<1x1x7xi1> to vector<4x7x7xi1>
    %53 = arith.ori %52, %50 : vector<4x7x7xi1>
    %cst_29 = arith.constant -1.000000e+09 : f32
    %54 = vector.broadcast %cst_29 : f32 to vector<4x7x7xf32>
    %55 = arith.select %53, %54, %45 : vector<4x7x7xi1>, vector<4x7x7xf32>
    %cst_30 = arith.constant dense<0xFF800000> : vector<4x7xf32>
    %56 = vector.multi_reduction <maximumf>, %55, %cst_30 [2] : vector<4x7x7xf32> to vector<4x7xf32>
    %57 = vector.shape_cast %56 : vector<4x7xf32> to vector<4x7x1xf32>
    %58 = vector.broadcast %57 : vector<4x7x1xf32> to vector<4x7x7xf32>
    %59 = arith.subf %55, %58 : vector<4x7x7xf32>
    %60 = math.exp %59 : vector<4x7x7xf32>
    %cst_31 = arith.constant dense<0.000000e+00> : vector<4x7xf32>
    %61 = vector.multi_reduction <add>, %60, %cst_31 [2] : vector<4x7x7xf32> to vector<4x7xf32>
    %62 = vector.shape_cast %61 : vector<4x7xf32> to vector<4x7x1xf32>
    %63 = vector.broadcast %62 : vector<4x7x1xf32> to vector<4x7x7xf32>
    %64 = arith.divf %60, %63 : vector<4x7x7xf32>
    %65 = vector.extract_strided_slice %64 {offsets = [0, 0, 0], sizes = [1, 7, 7], strides = [1, 1, 1]} : vector<4x7x7xf32> to vector<1x7x7xf32>
    %66 = vector.shape_cast %65 : vector<1x7x7xf32> to vector<7x7xf32>
    %67 = vector.extract_strided_slice %26 {offsets = [0, 0], sizes = [7, 8], strides = [1, 1]} : vector<7x32xf32> to vector<7x8xf32>
    %cst_32 = arith.constant dense<0.000000e+00> : vector<7x8xf32>
    %68 = tpu.matmul %66, %67, %cst_32 {dimension_numbers = #tpu.dot_dimension_numbers<[1], [0], [0], [1], [0, 0, 1, 1], [], []>} : vector<7x7xf32>, vector<7x8xf32>, vector<7x8xf32> -> vector<7x8xf32>
    %69 = vector.extract_strided_slice %15 {offsets = [0, 0], sizes = [8, 32], strides = [1, 1]} : vector<32x32xf32> to vector<8x32xf32>
    %cst_33 = arith.constant dense<0.000000e+00> : vector<7x32xf32>
    %70 = tpu.matmul %68, %69, %cst_33 {dimension_numbers = #tpu.dot_dimension_numbers<[1], [0], [0], [1], [0, 0, 1, 1], [], []>} : vector<7x8xf32>, vector<8x32xf32>, vector<7x32xf32> -> vector<7x32xf32>
    %71 = vector.broadcast %18 : vector<1x32xf32> to vector<7x32xf32>
    %72 = arith.addf %71, %70 : vector<7x32xf32>
    %73 = vector.extract_strided_slice %64 {offsets = [1, 0, 0], sizes = [1, 7, 7], strides = [1, 1, 1]} : vector<4x7x7xf32> to vector<1x7x7xf32>
    %74 = vector.shape_cast %73 : vector<1x7x7xf32> to vector<7x7xf32>
    %75 = vector.extract_strided_slice %26 {offsets = [0, 8], sizes = [7, 8], strides = [1, 1]} : vector<7x32xf32> to vector<7x8xf32>
    %cst_34 = arith.constant dense<0.000000e+00> : vector<7x8xf32>
    %76 = tpu.matmul %74, %75, %cst_34 {dimension_numbers = #tpu.dot_dimension_numbers<[1], [0], [0], [1], [0, 0, 1, 1], [], []>} : vector<7x7xf32>, vector<7x8xf32>, vector<7x8xf32> -> vector<7x8xf32>
    %77 = vector.extract_strided_slice %15 {offsets = [8, 0], sizes = [8, 32], strides = [1, 1]} : vector<32x32xf32> to vector<8x32xf32>
    %cst_35 = arith.constant dense<0.000000e+00> : vector<7x32xf32>
    %78 = tpu.matmul %76, %77, %cst_35 {dimension_numbers = #tpu.dot_dimension_numbers<[1], [0], [0], [1], [0, 0, 1, 1], [], []>} : vector<7x8xf32>, vector<8x32xf32>, vector<7x32xf32> -> vector<7x32xf32>
    %79 = arith.addf %72, %78 : vector<7x32xf32>
    %80 = vector.extract_strided_slice %64 {offsets = [2, 0, 0], sizes = [1, 7, 7], strides = [1, 1, 1]} : vector<4x7x7xf32> to vector<1x7x7xf32>
    %81 = vector.shape_cast %80 : vector<1x7x7xf32> to vector<7x7xf32>
    %82 = vector.extract_strided_slice %26 {offsets = [0, 16], sizes = [7, 8], strides = [1, 1]} : vector<7x32xf32> to vector<7x8xf32>
    %cst_36 = arith.constant dense<0.000000e+00> : vector<7x8xf32>
    %83 = tpu.matmul %81, %82, %cst_36 {dimension_numbers = #tpu.dot_dimension_numbers<[1], [0], [0], [1], [0, 0, 1, 1], [], []>} : vector<7x7xf32>, vector<7x8xf32>, vector<7x8xf32> -> vector<7x8xf32>
    %84 = vector.extract_strided_slice %15 {offsets = [16, 0], sizes = [8, 32], strides = [1, 1]} : vector<32x32xf32> to vector<8x32xf32>
    %cst_37 = arith.constant dense<0.000000e+00> : vector<7x32xf32>
    %85 = tpu.matmul %83, %84, %cst_37 {dimension_numbers = #tpu.dot_dimension_numbers<[1], [0], [0], [1], [0, 0, 1, 1], [], []>} : vector<7x8xf32>, vector<8x32xf32>, vector<7x32xf32> -> vector<7x32xf32>
    %86 = arith.addf %79, %85 : vector<7x32xf32>
    %87 = vector.extract_strided_slice %64 {offsets = [3, 0, 0], sizes = [1, 7, 7], strides = [1, 1, 1]} : vector<4x7x7xf32> to vector<1x7x7xf32>
    %88 = vector.shape_cast %87 : vector<1x7x7xf32> to vector<7x7xf32>
    %89 = vector.extract_strided_slice %26 {offsets = [0, 24], sizes = [7, 8], strides = [1, 1]} : vector<7x32xf32> to vector<7x8xf32>
    %cst_38 = arith.constant dense<0.000000e+00> : vector<7x8xf32>
    %90 = tpu.matmul %88, %89, %cst_38 {dimension_numbers = #tpu.dot_dimension_numbers<[1], [0], [0], [1], [0, 0, 1, 1], [], []>} : vector<7x7xf32>, vector<7x8xf32>, vector<7x8xf32> -> vector<7x8xf32>
    %91 = vector.extract_strided_slice %15 {offsets = [24, 0], sizes = [8, 32], strides = [1, 1]} : vector<32x32xf32> to vector<8x32xf32>
    %cst_39 = arith.constant dense<0.000000e+00> : vector<7x32xf32>
    %92 = tpu.matmul %90, %91, %cst_39 {dimension_numbers = #tpu.dot_dimension_numbers<[1], [0], [0], [1], [0, 0, 1, 1], [], []>} : vector<7x8xf32>, vector<8x32xf32>, vector<7x32xf32> -> vector<7x32xf32>
    %93 = arith.addf %86, %92 : vector<7x32xf32>
    %94 = arith.addf %93, %1 : vector<7x32xf32>
    %cst_40 = arith.constant dense<0.000000e+00> : vector<7xf32>
    %95 = vector.multi_reduction <add>, %94, %cst_40 [1] : vector<7x32xf32> to vector<7xf32>
    %96 = vector.shape_cast %95 : vector<7xf32> to vector<7x1xf32>
    %cst_41 = arith.constant 3.200000e+01 : f32
    %97 = vector.broadcast %cst_41 : f32 to vector<7x1xf32>
    %98 = arith.divf %96, %97 : vector<7x1xf32>
    %99 = vector.broadcast %98 : vector<7x1xf32> to vector<7x32xf32>
    %100 = arith.subf %94, %99 : vector<7x32xf32>
    %101 = arith.mulf %100, %100 : vector<7x32xf32>
    %cst_42 = arith.constant dense<0.000000e+00> : vector<7xf32>
    %102 = vector.multi_reduction <add>, %101, %cst_42 [1] : vector<7x32xf32> to vector<7xf32>
    %103 = vector.shape_cast %102 : vector<7xf32> to vector<7x1xf32>
    %cst_43 = arith.constant 3.200000e+01 : f32
    %104 = vector.broadcast %cst_43 : f32 to vector<7x1xf32>
    %105 = arith.divf %103, %104 : vector<7x1xf32>
    %106 = vector.broadcast %98 : vector<7x1xf32> to vector<7x32xf32>
    %107 = arith.subf %94, %106 : vector<7x32xf32>
    %cst_44 = arith.constant 9.99999974E-6 : f32
    %108 = vector.broadcast %cst_44 : f32 to vector<7x1xf32>
    %109 = arith.addf %105, %108 : vector<7x1xf32>
    %110 = math.rsqrt %109 : vector<7x1xf32>
    %111 = vector.broadcast %110 : vector<7x1xf32> to vector<7x32xf32>
    %112 = arith.mulf %107, %111 : vector<7x32xf32>
    %113 = vector.broadcast %19 : vector<1x32xf32> to vector<7x32xf32>
    %114 = arith.mulf %112, %113 : vector<7x32xf32>
    %115 = vector.broadcast %20 : vector<1x32xf32> to vector<7x32xf32>
    %116 = arith.addf %114, %115 : vector<7x32xf32>
    %117 = vector.broadcast %9 : vector<7x1xf32> to vector<7x32xf32>
    %118 = arith.mulf %116, %117 : vector<7x32xf32>
    %c0_45 = arith.constant 0 : index
    %c0_46 = arith.constant 0 : index
    %c0_47 = arith.constant 0 : index
    %119 = vector.load %arg8[%c0_45, %c0_46, %c0_47] : memref<2x32x96xf32, #tpu.memory_space<vmem>>, vector<1x32x96xf32>
    %120 = vector.shape_cast %119 : vector<1x32x96xf32> to vector<32x96xf32>
    %c0_48 = arith.constant 0 : index
    %c0_49 = arith.constant 0 : index
    %c0_50 = arith.constant 0 : index
    %121 = vector.load %arg9[%c0_48, %c0_49, %c0_50] : memref<2x32x32xf32, #tpu.memory_space<vmem>>, vector<1x32x32xf32>
    %122 = vector.shape_cast %121 : vector<1x32x32xf32> to vector<32x32xf32>
    %123 = vector.extract_strided_slice %11 {offsets = [4, 0], sizes = [4, 96], strides = [1, 1]} : vector<12x96xf32> to vector<4x96xf32>
    %124 = vector.extract_strided_slice %123 {offsets = [0, 0], sizes = [1, 96], strides = [1, 1]} : vector<4x96xf32> to vector<1x96xf32>
    %125 = vector.extract_strided_slice %123 {offsets = [1, 0], sizes = [1, 32], strides = [1, 1]} : vector<4x96xf32> to vector<1x32xf32>
    %126 = vector.extract_strided_slice %123 {offsets = [2, 0], sizes = [1, 32], strides = [1, 1]} : vector<4x96xf32> to vector<1x32xf32>
    %127 = vector.extract_strided_slice %123 {offsets = [3, 0], sizes = [1, 32], strides = [1, 1]} : vector<4x96xf32> to vector<1x32xf32>
    %128 = vector.extract_strided_slice %120 {offsets = [0, 0], sizes = [32, 32], strides = [1, 1]} : vector<32x96xf32> to vector<32x32xf32>
    %cst_51 = arith.constant dense<0.000000e+00> : vector<7x32xf32>
    %129 = tpu.matmul %118, %128, %cst_51 {dimension_numbers = #tpu.dot_dimension_numbers<[1], [0], [0], [1], [0, 0, 1, 1], [], []>} : vector<7x32xf32>, vector<32x32xf32>, vector<7x32xf32> -> vector<7x32xf32>
    %130 = vector.extract_strided_slice %124 {offsets = [0, 0], sizes = [1, 32], strides = [1, 1]} : vector<1x96xf32> to vector<1x32xf32>
    %131 = vector.broadcast %130 : vector<1x32xf32> to vector<7x32xf32>
    %132 = arith.addf %129, %131 : vector<7x32xf32>
    %133 = vector.extract_strided_slice %120 {offsets = [0, 32], sizes = [32, 64], strides = [1, 1]} : vector<32x96xf32> to vector<32x64xf32>
    %cst_52 = arith.constant dense<0.000000e+00> : vector<8x64xf32>
    %134 = tpu.matmul %3, %133, %cst_52 {dimension_numbers = #tpu.dot_dimension_numbers<[1], [0], [0], [1], [0, 0, 1, 1], [], []>} : vector<8x32xf32>, vector<32x64xf32>, vector<8x64xf32> -> vector<8x64xf32>
    %135 = vector.extract_strided_slice %124 {offsets = [0, 32], sizes = [1, 64], strides = [1, 1]} : vector<1x96xf32> to vector<1x64xf32>
    %136 = vector.broadcast %135 : vector<1x64xf32> to vector<8x64xf32>
    %137 = arith.addf %134, %136 : vector<8x64xf32>
    %138 = vector.extract_strided_slice %137 {offsets = [0, 0], sizes = [8, 32], strides = [1, 1]} : vector<8x64xf32> to vector<8x32xf32>
    %139 = vector.extract_strided_slice %137 {offsets = [0, 32], sizes = [8, 32], strides = [1, 1]} : vector<8x64xf32> to vector<8x32xf32>
    %140 = vector.extract_strided_slice %132 {offsets = [0, 0], sizes = [7, 8], strides = [1, 1]} : vector<7x32xf32> to vector<7x8xf32>
    %141 = vector.extract_strided_slice %138 {offsets = [0, 0], sizes = [8, 8], strides = [1, 1]} : vector<8x32xf32> to vector<8x8xf32>
    %cst_53 = arith.constant dense<0.000000e+00> : vector<7x8xf32>
    %142 = tpu.matmul %140, %141, %cst_53 {dimension_numbers = #tpu.dot_dimension_numbers<[1], [1], [0], [0], [0, 0, 1, 0], [], []>} : vector<7x8xf32>, vector<8x8xf32>, vector<7x8xf32> -> vector<7x8xf32>
    %143 = vector.extract_strided_slice %132 {offsets = [0, 8], sizes = [7, 8], strides = [1, 1]} : vector<7x32xf32> to vector<7x8xf32>
    %144 = vector.extract_strided_slice %138 {offsets = [0, 8], sizes = [8, 8], strides = [1, 1]} : vector<8x32xf32> to vector<8x8xf32>
    %cst_54 = arith.constant dense<0.000000e+00> : vector<7x8xf32>
    %145 = tpu.matmul %143, %144, %cst_54 {dimension_numbers = #tpu.dot_dimension_numbers<[1], [1], [0], [0], [0, 0, 1, 0], [], []>} : vector<7x8xf32>, vector<8x8xf32>, vector<7x8xf32> -> vector<7x8xf32>
    %146 = vector.extract_strided_slice %132 {offsets = [0, 16], sizes = [7, 8], strides = [1, 1]} : vector<7x32xf32> to vector<7x8xf32>
    %147 = vector.extract_strided_slice %138 {offsets = [0, 16], sizes = [8, 8], strides = [1, 1]} : vector<8x32xf32> to vector<8x8xf32>
    %cst_55 = arith.constant dense<0.000000e+00> : vector<7x8xf32>
    %148 = tpu.matmul %146, %147, %cst_55 {dimension_numbers = #tpu.dot_dimension_numbers<[1], [1], [0], [0], [0, 0, 1, 0], [], []>} : vector<7x8xf32>, vector<8x8xf32>, vector<7x8xf32> -> vector<7x8xf32>
    %149 = vector.extract_strided_slice %132 {offsets = [0, 24], sizes = [7, 8], strides = [1, 1]} : vector<7x32xf32> to vector<7x8xf32>
    %150 = vector.extract_strided_slice %138 {offsets = [0, 24], sizes = [8, 8], strides = [1, 1]} : vector<8x32xf32> to vector<8x8xf32>
    %cst_56 = arith.constant dense<0.000000e+00> : vector<7x8xf32>
    %151 = tpu.matmul %149, %150, %cst_56 {dimension_numbers = #tpu.dot_dimension_numbers<[1], [1], [0], [0], [0, 0, 1, 0], [], []>} : vector<7x8xf32>, vector<8x8xf32>, vector<7x8xf32> -> vector<7x8xf32>
    %152 = vector.shape_cast %142 : vector<7x8xf32> to vector<1x7x8xf32>
    %153 = vector.shape_cast %145 : vector<7x8xf32> to vector<1x7x8xf32>
    %154 = vector.shape_cast %148 : vector<7x8xf32> to vector<1x7x8xf32>
    %155 = vector.shape_cast %151 : vector<7x8xf32> to vector<1x7x8xf32>
    %156 = tpu.concatenate %152, %153, %154, %155 in 0 : vector<1x7x8xf32>, vector<1x7x8xf32>, vector<1x7x8xf32>, vector<1x7x8xf32> -> vector<4x7x8xf32>
    %cst_57 = arith.constant 0.353553385 : f32
    %157 = vector.broadcast %cst_57 : f32 to vector<4x7x8xf32>
    %158 = arith.mulf %156, %157 : vector<4x7x8xf32>
    %cst_58 = arith.constant 0.000000e+00 : f32
    %159 = vector.broadcast %cst_58 : f32 to vector<1x8xf32>
    %160 = arith.cmpf ogt, %5, %159 : vector<1x8xf32>
    %cst_59 = arith.constant -1.000000e+09 : f32
    %161 = vector.shape_cast %160 : vector<1x8xi1> to vector<1x1x8xi1>
    %162 = vector.broadcast %161 : vector<1x1x8xi1> to vector<4x7x8xi1>
    %163 = vector.broadcast %cst_59 : f32 to vector<4x7x8xf32>
    %164 = arith.select %162, %163, %158 : vector<4x7x8xi1>, vector<4x7x8xf32>
    %cst_60 = arith.constant dense<0xFF800000> : vector<4x7xf32>
    %165 = vector.multi_reduction <maximumf>, %164, %cst_60 [2] : vector<4x7x8xf32> to vector<4x7xf32>
    %166 = vector.shape_cast %165 : vector<4x7xf32> to vector<4x7x1xf32>
    %167 = vector.broadcast %166 : vector<4x7x1xf32> to vector<4x7x8xf32>
    %168 = arith.subf %164, %167 : vector<4x7x8xf32>
    %169 = math.exp %168 : vector<4x7x8xf32>
    %cst_61 = arith.constant dense<0.000000e+00> : vector<4x7xf32>
    %170 = vector.multi_reduction <add>, %169, %cst_61 [2] : vector<4x7x8xf32> to vector<4x7xf32>
    %171 = vector.shape_cast %170 : vector<4x7xf32> to vector<4x7x1xf32>
    %172 = vector.broadcast %171 : vector<4x7x1xf32> to vector<4x7x8xf32>
    %173 = arith.divf %169, %172 : vector<4x7x8xf32>
    %174 = vector.extract_strided_slice %173 {offsets = [0, 0, 0], sizes = [1, 7, 8], strides = [1, 1, 1]} : vector<4x7x8xf32> to vector<1x7x8xf32>
    %175 = vector.shape_cast %174 : vector<1x7x8xf32> to vector<7x8xf32>
    %176 = vector.extract_strided_slice %139 {offsets = [0, 0], sizes = [8, 8], strides = [1, 1]} : vector<8x32xf32> to vector<8x8xf32>
    %cst_62 = arith.constant dense<0.000000e+00> : vector<7x8xf32>
    %177 = tpu.matmul %175, %176, %cst_62 {dimension_numbers = #tpu.dot_dimension_numbers<[1], [0], [0], [1], [0, 0, 1, 1], [], []>} : vector<7x8xf32>, vector<8x8xf32>, vector<7x8xf32> -> vector<7x8xf32>
    %178 = vector.extract_strided_slice %122 {offsets = [0, 0], sizes = [8, 32], strides = [1, 1]} : vector<32x32xf32> to vector<8x32xf32>
    %cst_63 = arith.constant dense<0.000000e+00> : vector<7x32xf32>
    %179 = tpu.matmul %177, %178, %cst_63 {dimension_numbers = #tpu.dot_dimension_numbers<[1], [0], [0], [1], [0, 0, 1, 1], [], []>} : vector<7x8xf32>, vector<8x32xf32>, vector<7x32xf32> -> vector<7x32xf32>
    %180 = vector.broadcast %125 : vector<1x32xf32> to vector<7x32xf32>
    %181 = arith.addf %180, %179 : vector<7x32xf32>
    %182 = vector.extract_strided_slice %173 {offsets = [1, 0, 0], sizes = [1, 7, 8], strides = [1, 1, 1]} : vector<4x7x8xf32> to vector<1x7x8xf32>
    %183 = vector.shape_cast %182 : vector<1x7x8xf32> to vector<7x8xf32>
    %184 = vector.extract_strided_slice %139 {offsets = [0, 8], sizes = [8, 8], strides = [1, 1]} : vector<8x32xf32> to vector<8x8xf32>
    %cst_64 = arith.constant dense<0.000000e+00> : vector<7x8xf32>
    %185 = tpu.matmul %183, %184, %cst_64 {dimension_numbers = #tpu.dot_dimension_numbers<[1], [0], [0], [1], [0, 0, 1, 1], [], []>} : vector<7x8xf32>, vector<8x8xf32>, vector<7x8xf32> -> vector<7x8xf32>
    %186 = vector.extract_strided_slice %122 {offsets = [8, 0], sizes = [8, 32], strides = [1, 1]} : vector<32x32xf32> to vector<8x32xf32>
    %cst_65 = arith.constant dense<0.000000e+00> : vector<7x32xf32>
    %187 = tpu.matmul %185, %186, %cst_65 {dimension_numbers = #tpu.dot_dimension_numbers<[1], [0], [0], [1], [0, 0, 1, 1], [], []>} : vector<7x8xf32>, vector<8x32xf32>, vector<7x32xf32> -> vector<7x32xf32>
    %188 = arith.addf %181, %187 : vector<7x32xf32>
    %189 = vector.extract_strided_slice %173 {offsets = [2, 0, 0], sizes = [1, 7, 8], strides = [1, 1, 1]} : vector<4x7x8xf32> to vector<1x7x8xf32>
    %190 = vector.shape_cast %189 : vector<1x7x8xf32> to vector<7x8xf32>
    %191 = vector.extract_strided_slice %139 {offsets = [0, 16], sizes = [8, 8], strides = [1, 1]} : vector<8x32xf32> to vector<8x8xf32>
    %cst_66 = arith.constant dense<0.000000e+00> : vector<7x8xf32>
    %192 = tpu.matmul %190, %191, %cst_66 {dimension_numbers = #tpu.dot_dimension_numbers<[1], [0], [0], [1], [0, 0, 1, 1], [], []>} : vector<7x8xf32>, vector<8x8xf32>, vector<7x8xf32> -> vector<7x8xf32>
    %193 = vector.extract_strided_slice %122 {offsets = [16, 0], sizes = [8, 32], strides = [1, 1]} : vector<32x32xf32> to vector<8x32xf32>
    %cst_67 = arith.constant dense<0.000000e+00> : vector<7x32xf32>
    %194 = tpu.matmul %192, %193, %cst_67 {dimension_numbers = #tpu.dot_dimension_numbers<[1], [0], [0], [1], [0, 0, 1, 1], [], []>} : vector<7x8xf32>, vector<8x32xf32>, vector<7x32xf32> -> vector<7x32xf32>
    %195 = arith.addf %188, %194 : vector<7x32xf32>
    %196 = vector.extract_strided_slice %173 {offsets = [3, 0, 0], sizes = [1, 7, 8], strides = [1, 1, 1]} : vector<4x7x8xf32> to vector<1x7x8xf32>
    %197 = vector.shape_cast %196 : vector<1x7x8xf32> to vector<7x8xf32>
    %198 = vector.extract_strided_slice %139 {offsets = [0, 24], sizes = [8, 8], strides = [1, 1]} : vector<8x32xf32> to vector<8x8xf32>
    %cst_68 = arith.constant dense<0.000000e+00> : vector<7x8xf32>
    %199 = tpu.matmul %197, %198, %cst_68 {dimension_numbers = #tpu.dot_dimension_numbers<[1], [0], [0], [1], [0, 0, 1, 1], [], []>} : vector<7x8xf32>, vector<8x8xf32>, vector<7x8xf32> -> vector<7x8xf32>
    %200 = vector.extract_strided_slice %122 {offsets = [24, 0], sizes = [8, 32], strides = [1, 1]} : vector<32x32xf32> to vector<8x32xf32>
    %cst_69 = arith.constant dense<0.000000e+00> : vector<7x32xf32>
    %201 = tpu.matmul %199, %200, %cst_69 {dimension_numbers = #tpu.dot_dimension_numbers<[1], [0], [0], [1], [0, 0, 1, 1], [], []>} : vector<7x8xf32>, vector<8x32xf32>, vector<7x32xf32> -> vector<7x32xf32>
    %202 = arith.addf %195, %201 : vector<7x32xf32>
    %203 = arith.addf %202, %118 : vector<7x32xf32>
    %cst_70 = arith.constant dense<0.000000e+00> : vector<7xf32>
    %204 = vector.multi_reduction <add>, %203, %cst_70 [1] : vector<7x32xf32> to vector<7xf32>
    %205 = vector.shape_cast %204 : vector<7xf32> to vector<7x1xf32>
    %cst_71 = arith.constant 3.200000e+01 : f32
    %206 = vector.broadcast %cst_71 : f32 to vector<7x1xf32>
    %207 = arith.divf %205, %206 : vector<7x1xf32>
    %208 = vector.broadcast %207 : vector<7x1xf32> to vector<7x32xf32>
    %209 = arith.subf %203, %208 : vector<7x32xf32>
    %210 = arith.mulf %209, %209 : vector<7x32xf32>
    %cst_72 = arith.constant dense<0.000000e+00> : vector<7xf32>
    %211 = vector.multi_reduction <add>, %210, %cst_72 [1] : vector<7x32xf32> to vector<7xf32>
    %212 = vector.shape_cast %211 : vector<7xf32> to vector<7x1xf32>
    %cst_73 = arith.constant 3.200000e+01 : f32
    %213 = vector.broadcast %cst_73 : f32 to vector<7x1xf32>
    %214 = arith.divf %212, %213 : vector<7x1xf32>
    %215 = vector.broadcast %207 : vector<7x1xf32> to vector<7x32xf32>
    %216 = arith.subf %203, %215 : vector<7x32xf32>
    %cst_74 = arith.constant 9.99999974E-6 : f32
    %217 = vector.broadcast %cst_74 : f32 to vector<7x1xf32>
    %218 = arith.addf %214, %217 : vector<7x1xf32>
    %219 = math.rsqrt %218 : vector<7x1xf32>
    %220 = vector.broadcast %219 : vector<7x1xf32> to vector<7x32xf32>
    %221 = arith.mulf %216, %220 : vector<7x32xf32>
    %222 = vector.broadcast %126 : vector<1x32xf32> to vector<7x32xf32>
    %223 = arith.mulf %221, %222 : vector<7x32xf32>
    %224 = vector.broadcast %127 : vector<1x32xf32> to vector<7x32xf32>
    %225 = arith.addf %223, %224 : vector<7x32xf32>
    %226 = vector.broadcast %9 : vector<7x1xf32> to vector<7x32xf32>
    %227 = arith.mulf %225, %226 : vector<7x32xf32>
    %c0_75 = arith.constant 0 : index
    %c0_76 = arith.constant 0 : index
    %c0_77 = arith.constant 0 : index
    %228 = vector.load %arg10[%c0_75, %c0_76, %c0_77] : memref<2x32x64xf32, #tpu.memory_space<vmem>>, vector<1x32x64xf32>
    %229 = vector.shape_cast %228 : vector<1x32x64xf32> to vector<32x64xf32>
    %c0_78 = arith.constant 0 : index
    %c0_79 = arith.constant 0 : index
    %c0_80 = arith.constant 0 : index
    %230 = vector.load %arg11[%c0_78, %c0_79, %c0_80] : memref<2x64x32xf32, #tpu.memory_space<vmem>>, vector<1x64x32xf32>
    %231 = vector.shape_cast %230 : vector<1x64x32xf32> to vector<64x32xf32>
    %232 = vector.extract_strided_slice %11 {offsets = [8, 0], sizes = [4, 96], strides = [1, 1]} : vector<12x96xf32> to vector<4x96xf32>
    %233 = vector.extract_strided_slice %232 {offsets = [0, 0], sizes = [1, 64], strides = [1, 1]} : vector<4x96xf32> to vector<1x64xf32>
    %234 = vector.extract_strided_slice %232 {offsets = [1, 0], sizes = [1, 32], strides = [1, 1]} : vector<4x96xf32> to vector<1x32xf32>
    %235 = vector.extract_strided_slice %232 {offsets = [2, 0], sizes = [1, 32], strides = [1, 1]} : vector<4x96xf32> to vector<1x32xf32>
    %236 = vector.extract_strided_slice %232 {offsets = [3, 0], sizes = [1, 32], strides = [1, 1]} : vector<4x96xf32> to vector<1x32xf32>
    %cst_81 = arith.constant dense<0.000000e+00> : vector<7x64xf32>
    %237 = tpu.matmul %227, %229, %cst_81 {dimension_numbers = #tpu.dot_dimension_numbers<[1], [0], [0], [1], [0, 0, 1, 1], [], []>} : vector<7x32xf32>, vector<32x64xf32>, vector<7x64xf32> -> vector<7x64xf32>
    %238 = vector.broadcast %233 : vector<1x64xf32> to vector<7x64xf32>
    %239 = arith.addf %237, %238 : vector<7x64xf32>
    %cst_82 = arith.constant 0.000000e+00 : f32
    %240 = vector.broadcast %cst_82 : f32 to vector<7x64xf32>
    %241 = arith.maximumf %239, %240 : vector<7x64xf32>
    %cst_83 = arith.constant dense<0.000000e+00> : vector<7x32xf32>
    %242 = tpu.matmul %241, %231, %cst_83 {dimension_numbers = #tpu.dot_dimension_numbers<[1], [0], [0], [1], [0, 0, 1, 1], [], []>} : vector<7x64xf32>, vector<64x32xf32>, vector<7x32xf32> -> vector<7x32xf32>
    %243 = vector.broadcast %234 : vector<1x32xf32> to vector<7x32xf32>
    %244 = arith.addf %242, %243 : vector<7x32xf32>
    %245 = arith.addf %244, %227 : vector<7x32xf32>
    %cst_84 = arith.constant dense<0.000000e+00> : vector<7xf32>
    %246 = vector.multi_reduction <add>, %245, %cst_84 [1] : vector<7x32xf32> to vector<7xf32>
    %247 = vector.shape_cast %246 : vector<7xf32> to vector<7x1xf32>
    %cst_85 = arith.constant 3.200000e+01 : f32
    %248 = vector.broadcast %cst_85 : f32 to vector<7x1xf32>
    %249 = arith.divf %247, %248 : vector<7x1xf32>
    %250 = vector.broadcast %249 : vector<7x1xf32> to vector<7x32xf32>
    %251 = arith.subf %245, %250 : vector<7x32xf32>
    %252 = arith.mulf %251, %251 : vector<7x32xf32>
    %cst_86 = arith.constant dense<0.000000e+00> : vector<7xf32>
    %253 = vector.multi_reduction <add>, %252, %cst_86 [1] : vector<7x32xf32> to vector<7xf32>
    %254 = vector.shape_cast %253 : vector<7xf32> to vector<7x1xf32>
    %cst_87 = arith.constant 3.200000e+01 : f32
    %255 = vector.broadcast %cst_87 : f32 to vector<7x1xf32>
    %256 = arith.divf %254, %255 : vector<7x1xf32>
    %257 = vector.broadcast %249 : vector<7x1xf32> to vector<7x32xf32>
    %258 = arith.subf %245, %257 : vector<7x32xf32>
    %cst_88 = arith.constant 9.99999974E-6 : f32
    %259 = vector.broadcast %cst_88 : f32 to vector<7x1xf32>
    %260 = arith.addf %256, %259 : vector<7x1xf32>
    %261 = math.rsqrt %260 : vector<7x1xf32>
    %262 = vector.broadcast %261 : vector<7x1xf32> to vector<7x32xf32>
    %263 = arith.mulf %258, %262 : vector<7x32xf32>
    %264 = vector.broadcast %235 : vector<1x32xf32> to vector<7x32xf32>
    %265 = arith.mulf %263, %264 : vector<7x32xf32>
    %266 = vector.broadcast %236 : vector<1x32xf32> to vector<7x32xf32>
    %267 = arith.addf %265, %266 : vector<7x32xf32>
    %268 = vector.broadcast %9 : vector<7x1xf32> to vector<7x32xf32>
    %269 = arith.mulf %267, %268 : vector<7x32xf32>
    %c1 = arith.constant 1 : index
    %c0_89 = arith.constant 0 : index
    %c0_90 = arith.constant 0 : index
    %270 = vector.load %arg12[%c1, %c0_89, %c0_90] : memref<2x12x96xf32, #tpu.memory_space<vmem>>, vector<1x12x96xf32>
    %271 = vector.shape_cast %270 : vector<1x12x96xf32> to vector<12x96xf32>
    %c1_91 = arith.constant 1 : index
    %c0_92 = arith.constant 0 : index
    %c0_93 = arith.constant 0 : index
    %272 = vector.load %arg6[%c1_91, %c0_92, %c0_93] : memref<2x32x96xf32, #tpu.memory_space<vmem>>, vector<1x32x96xf32>
    %273 = vector.shape_cast %272 : vector<1x32x96xf32> to vector<32x96xf32>
    %c1_94 = arith.constant 1 : index
    %c0_95 = arith.constant 0 : index
    %c0_96 = arith.constant 0 : index
    %274 = vector.load %arg7[%c1_94, %c0_95, %c0_96] : memref<2x32x32xf32, #tpu.memory_space<vmem>>, vector<1x32x32xf32>
    %275 = vector.shape_cast %274 : vector<1x32x32xf32> to vector<32x32xf32>
    %276 = vector.extract_strided_slice %271 {offsets = [0, 0], sizes = [4, 96], strides = [1, 1]} : vector<12x96xf32> to vector<4x96xf32>
    %277 = vector.extract_strided_slice %276 {offsets = [0, 0], sizes = [1, 96], strides = [1, 1]} : vector<4x96xf32> to vector<1x96xf32>
    %278 = vector.extract_strided_slice %276 {offsets = [1, 0], sizes = [1, 32], strides = [1, 1]} : vector<4x96xf32> to vector<1x32xf32>
    %279 = vector.extract_strided_slice %276 {offsets = [2, 0], sizes = [1, 32], strides = [1, 1]} : vector<4x96xf32> to vector<1x32xf32>
    %280 = vector.extract_strided_slice %276 {offsets = [3, 0], sizes = [1, 32], strides = [1, 1]} : vector<4x96xf32> to vector<1x32xf32>
    %cst_97 = arith.constant dense<0.000000e+00> : vector<7x96xf32>
    %281 = tpu.matmul %269, %273, %cst_97 {dimension_numbers = #tpu.dot_dimension_numbers<[1], [0], [0], [1], [0, 0, 1, 1], [], []>} : vector<7x32xf32>, vector<32x96xf32>, vector<7x96xf32> -> vector<7x96xf32>
    %282 = vector.broadcast %277 : vector<1x96xf32> to vector<7x96xf32>
    %283 = arith.addf %281, %282 : vector<7x96xf32>
    %284 = vector.extract_strided_slice %283 {offsets = [0, 0], sizes = [7, 32], strides = [1, 1]} : vector<7x96xf32> to vector<7x32xf32>
    %285 = vector.extract_strided_slice %283 {offsets = [0, 32], sizes = [7, 32], strides = [1, 1]} : vector<7x96xf32> to vector<7x32xf32>
    %286 = vector.extract_strided_slice %283 {offsets = [0, 64], sizes = [7, 32], strides = [1, 1]} : vector<7x96xf32> to vector<7x32xf32>
    %287 = vector.extract_strided_slice %284 {offsets = [0, 0], sizes = [7, 8], strides = [1, 1]} : vector<7x32xf32> to vector<7x8xf32>
    %288 = vector.extract_strided_slice %285 {offsets = [0, 0], sizes = [7, 8], strides = [1, 1]} : vector<7x32xf32> to vector<7x8xf32>
    %cst_98 = arith.constant dense<0.000000e+00> : vector<7x7xf32>
    %289 = tpu.matmul %287, %288, %cst_98 {dimension_numbers = #tpu.dot_dimension_numbers<[1], [1], [0], [0], [0, 0, 1, 0], [], []>} : vector<7x8xf32>, vector<7x8xf32>, vector<7x7xf32> -> vector<7x7xf32>
    %290 = vector.extract_strided_slice %284 {offsets = [0, 8], sizes = [7, 8], strides = [1, 1]} : vector<7x32xf32> to vector<7x8xf32>
    %291 = vector.extract_strided_slice %285 {offsets = [0, 8], sizes = [7, 8], strides = [1, 1]} : vector<7x32xf32> to vector<7x8xf32>
    %cst_99 = arith.constant dense<0.000000e+00> : vector<7x7xf32>
    %292 = tpu.matmul %290, %291, %cst_99 {dimension_numbers = #tpu.dot_dimension_numbers<[1], [1], [0], [0], [0, 0, 1, 0], [], []>} : vector<7x8xf32>, vector<7x8xf32>, vector<7x7xf32> -> vector<7x7xf32>
    %293 = vector.extract_strided_slice %284 {offsets = [0, 16], sizes = [7, 8], strides = [1, 1]} : vector<7x32xf32> to vector<7x8xf32>
    %294 = vector.extract_strided_slice %285 {offsets = [0, 16], sizes = [7, 8], strides = [1, 1]} : vector<7x32xf32> to vector<7x8xf32>
    %cst_100 = arith.constant dense<0.000000e+00> : vector<7x7xf32>
    %295 = tpu.matmul %293, %294, %cst_100 {dimension_numbers = #tpu.dot_dimension_numbers<[1], [1], [0], [0], [0, 0, 1, 0], [], []>} : vector<7x8xf32>, vector<7x8xf32>, vector<7x7xf32> -> vector<7x7xf32>
    %296 = vector.extract_strided_slice %284 {offsets = [0, 24], sizes = [7, 8], strides = [1, 1]} : vector<7x32xf32> to vector<7x8xf32>
    %297 = vector.extract_strided_slice %285 {offsets = [0, 24], sizes = [7, 8], strides = [1, 1]} : vector<7x32xf32> to vector<7x8xf32>
    %cst_101 = arith.constant dense<0.000000e+00> : vector<7x7xf32>
    %298 = tpu.matmul %296, %297, %cst_101 {dimension_numbers = #tpu.dot_dimension_numbers<[1], [1], [0], [0], [0, 0, 1, 0], [], []>} : vector<7x8xf32>, vector<7x8xf32>, vector<7x7xf32> -> vector<7x7xf32>
    %299 = vector.shape_cast %289 : vector<7x7xf32> to vector<1x7x7xf32>
    %300 = vector.shape_cast %292 : vector<7x7xf32> to vector<1x7x7xf32>
    %301 = vector.shape_cast %295 : vector<7x7xf32> to vector<1x7x7xf32>
    %302 = vector.shape_cast %298 : vector<7x7xf32> to vector<1x7x7xf32>
    %303 = tpu.concatenate %299, %300, %301, %302 in 0 : vector<1x7x7xf32>, vector<1x7x7xf32>, vector<1x7x7xf32>, vector<1x7x7xf32> -> vector<4x7x7xf32>
    %cst_102 = arith.constant 0.353553385 : f32
    %304 = vector.broadcast %cst_102 : f32 to vector<4x7x7xf32>
    %305 = arith.mulf %303, %304 : vector<4x7x7xf32>
    %cst_103 = arith.constant 0.000000e+00 : f32
    %306 = vector.broadcast %cst_103 : f32 to vector<1x7xf32>
    %307 = arith.cmpf ogt, %7, %306 : vector<1x7xf32>
    %308 = tpu.iota {dimensions = array<i32: 1>} : vector<4x7x7xi32>
    %309 = tpu.iota {dimensions = array<i32: 2>} : vector<4x7x7xi32>
    %310 = arith.cmpi sgt, %309, %308 : vector<4x7x7xi32>
    %311 = vector.shape_cast %307 : vector<1x7xi1> to vector<1x1x7xi1>
    %312 = vector.broadcast %311 : vector<1x1x7xi1> to vector<4x7x7xi1>
    %313 = arith.ori %312, %310 : vector<4x7x7xi1>
    %cst_104 = arith.constant -1.000000e+09 : f32
    %314 = vector.broadcast %cst_104 : f32 to vector<4x7x7xf32>
    %315 = arith.select %313, %314, %305 : vector<4x7x7xi1>, vector<4x7x7xf32>
    %cst_105 = arith.constant dense<0xFF800000> : vector<4x7xf32>
    %316 = vector.multi_reduction <maximumf>, %315, %cst_105 [2] : vector<4x7x7xf32> to vector<4x7xf32>
    %317 = vector.shape_cast %316 : vector<4x7xf32> to vector<4x7x1xf32>
    %318 = vector.broadcast %317 : vector<4x7x1xf32> to vector<4x7x7xf32>
    %319 = arith.subf %315, %318 : vector<4x7x7xf32>
    %320 = math.exp %319 : vector<4x7x7xf32>
    %cst_106 = arith.constant dense<0.000000e+00> : vector<4x7xf32>
    %321 = vector.multi_reduction <add>, %320, %cst_106 [2] : vector<4x7x7xf32> to vector<4x7xf32>
    %322 = vector.shape_cast %321 : vector<4x7xf32> to vector<4x7x1xf32>
    %323 = vector.broadcast %322 : vector<4x7x1xf32> to vector<4x7x7xf32>
    %324 = arith.divf %320, %323 : vector<4x7x7xf32>
    %325 = vector.extract_strided_slice %324 {offsets = [0, 0, 0], sizes = [1, 7, 7], strides = [1, 1, 1]} : vector<4x7x7xf32> to vector<1x7x7xf32>
    %326 = vector.shape_cast %325 : vector<1x7x7xf32> to vector<7x7xf32>
    %327 = vector.extract_strided_slice %286 {offsets = [0, 0], sizes = [7, 8], strides = [1, 1]} : vector<7x32xf32> to vector<7x8xf32>
    %cst_107 = arith.constant dense<0.000000e+00> : vector<7x8xf32>
    %328 = tpu.matmul %326, %327, %cst_107 {dimension_numbers = #tpu.dot_dimension_numbers<[1], [0], [0], [1], [0, 0, 1, 1], [], []>} : vector<7x7xf32>, vector<7x8xf32>, vector<7x8xf32> -> vector<7x8xf32>
    %329 = vector.extract_strided_slice %275 {offsets = [0, 0], sizes = [8, 32], strides = [1, 1]} : vector<32x32xf32> to vector<8x32xf32>
    %cst_108 = arith.constant dense<0.000000e+00> : vector<7x32xf32>
    %330 = tpu.matmul %328, %329, %cst_108 {dimension_numbers = #tpu.dot_dimension_numbers<[1], [0], [0], [1], [0, 0, 1, 1], [], []>} : vector<7x8xf32>, vector<8x32xf32>, vector<7x32xf32> -> vector<7x32xf32>
    %331 = vector.broadcast %278 : vector<1x32xf32> to vector<7x32xf32>
    %332 = arith.addf %331, %330 : vector<7x32xf32>
    %333 = vector.extract_strided_slice %324 {offsets = [1, 0, 0], sizes = [1, 7, 7], strides = [1, 1, 1]} : vector<4x7x7xf32> to vector<1x7x7xf32>
    %334 = vector.shape_cast %333 : vector<1x7x7xf32> to vector<7x7xf32>
    %335 = vector.extract_strided_slice %286 {offsets = [0, 8], sizes = [7, 8], strides = [1, 1]} : vector<7x32xf32> to vector<7x8xf32>
    %cst_109 = arith.constant dense<0.000000e+00> : vector<7x8xf32>
    %336 = tpu.matmul %334, %335, %cst_109 {dimension_numbers = #tpu.dot_dimension_numbers<[1], [0], [0], [1], [0, 0, 1, 1], [], []>} : vector<7x7xf32>, vector<7x8xf32>, vector<7x8xf32> -> vector<7x8xf32>
    %337 = vector.extract_strided_slice %275 {offsets = [8, 0], sizes = [8, 32], strides = [1, 1]} : vector<32x32xf32> to vector<8x32xf32>
    %cst_110 = arith.constant dense<0.000000e+00> : vector<7x32xf32>
    %338 = tpu.matmul %336, %337, %cst_110 {dimension_numbers = #tpu.dot_dimension_numbers<[1], [0], [0], [1], [0, 0, 1, 1], [], []>} : vector<7x8xf32>, vector<8x32xf32>, vector<7x32xf32> -> vector<7x32xf32>
    %339 = arith.addf %332, %338 : vector<7x32xf32>
    %340 = vector.extract_strided_slice %324 {offsets = [2, 0, 0], sizes = [1, 7, 7], strides = [1, 1, 1]} : vector<4x7x7xf32> to vector<1x7x7xf32>
    %341 = vector.shape_cast %340 : vector<1x7x7xf32> to vector<7x7xf32>
    %342 = vector.extract_strided_slice %286 {offsets = [0, 16], sizes = [7, 8], strides = [1, 1]} : vector<7x32xf32> to vector<7x8xf32>
    %cst_111 = arith.constant dense<0.000000e+00> : vector<7x8xf32>
    %343 = tpu.matmul %341, %342, %cst_111 {dimension_numbers = #tpu.dot_dimension_numbers<[1], [0], [0], [1], [0, 0, 1, 1], [], []>} : vector<7x7xf32>, vector<7x8xf32>, vector<7x8xf32> -> vector<7x8xf32>
    %344 = vector.extract_strided_slice %275 {offsets = [16, 0], sizes = [8, 32], strides = [1, 1]} : vector<32x32xf32> to vector<8x32xf32>
    %cst_112 = arith.constant dense<0.000000e+00> : vector<7x32xf32>
    %345 = tpu.matmul %343, %344, %cst_112 {dimension_numbers = #tpu.dot_dimension_numbers<[1], [0], [0], [1], [0, 0, 1, 1], [], []>} : vector<7x8xf32>, vector<8x32xf32>, vector<7x32xf32> -> vector<7x32xf32>
    %346 = arith.addf %339, %345 : vector<7x32xf32>
    %347 = vector.extract_strided_slice %324 {offsets = [3, 0, 0], sizes = [1, 7, 7], strides = [1, 1, 1]} : vector<4x7x7xf32> to vector<1x7x7xf32>
    %348 = vector.shape_cast %347 : vector<1x7x7xf32> to vector<7x7xf32>
    %349 = vector.extract_strided_slice %286 {offsets = [0, 24], sizes = [7, 8], strides = [1, 1]} : vector<7x32xf32> to vector<7x8xf32>
    %cst_113 = arith.constant dense<0.000000e+00> : vector<7x8xf32>
    %350 = tpu.matmul %348, %349, %cst_113 {dimension_numbers = #tpu.dot_dimension_numbers<[1], [0], [0], [1], [0, 0, 1, 1], [], []>} : vector<7x7xf32>, vector<7x8xf32>, vector<7x8xf32> -> vector<7x8xf32>
    %351 = vector.extract_strided_slice %275 {offsets = [24, 0], sizes = [8, 32], strides = [1, 1]} : vector<32x32xf32> to vector<8x32xf32>
    %cst_114 = arith.constant dense<0.000000e+00> : vector<7x32xf32>
    %352 = tpu.matmul %350, %351, %cst_114 {dimension_numbers = #tpu.dot_dimension_numbers<[1], [0], [0], [1], [0, 0, 1, 1], [], []>} : vector<7x8xf32>, vector<8x32xf32>, vector<7x32xf32> -> vector<7x32xf32>
    %353 = arith.addf %346, %352 : vector<7x32xf32>
    %354 = arith.addf %353, %269 : vector<7x32xf32>
    %cst_115 = arith.constant dense<0.000000e+00> : vector<7xf32>
    %355 = vector.multi_reduction <add>, %354, %cst_115 [1] : vector<7x32xf32> to vector<7xf32>
    %356 = vector.shape_cast %355 : vector<7xf32> to vector<7x1xf32>
    %cst_116 = arith.constant 3.200000e+01 : f32
    %357 = vector.broadcast %cst_116 : f32 to vector<7x1xf32>
    %358 = arith.divf %356, %357 : vector<7x1xf32>
    %359 = vector.broadcast %358 : vector<7x1xf32> to vector<7x32xf32>
    %360 = arith.subf %354, %359 : vector<7x32xf32>
    %361 = arith.mulf %360, %360 : vector<7x32xf32>
    %cst_117 = arith.constant dense<0.000000e+00> : vector<7xf32>
    %362 = vector.multi_reduction <add>, %361, %cst_117 [1] : vector<7x32xf32> to vector<7xf32>
    %363 = vector.shape_cast %362 : vector<7xf32> to vector<7x1xf32>
    %cst_118 = arith.constant 3.200000e+01 : f32
    %364 = vector.broadcast %cst_118 : f32 to vector<7x1xf32>
    %365 = arith.divf %363, %364 : vector<7x1xf32>
    %366 = vector.broadcast %358 : vector<7x1xf32> to vector<7x32xf32>
    %367 = arith.subf %354, %366 : vector<7x32xf32>
    %cst_119 = arith.constant 9.99999974E-6 : f32
    %368 = vector.broadcast %cst_119 : f32 to vector<7x1xf32>
    %369 = arith.addf %365, %368 : vector<7x1xf32>
    %370 = math.rsqrt %369 : vector<7x1xf32>
    %371 = vector.broadcast %370 : vector<7x1xf32> to vector<7x32xf32>
    %372 = arith.mulf %367, %371 : vector<7x32xf32>
    %373 = vector.broadcast %279 : vector<1x32xf32> to vector<7x32xf32>
    %374 = arith.mulf %372, %373 : vector<7x32xf32>
    %375 = vector.broadcast %280 : vector<1x32xf32> to vector<7x32xf32>
    %376 = arith.addf %374, %375 : vector<7x32xf32>
    %377 = vector.broadcast %9 : vector<7x1xf32> to vector<7x32xf32>
    %378 = arith.mulf %376, %377 : vector<7x32xf32>
    %c1_120 = arith.constant 1 : index
    %c0_121 = arith.constant 0 : index
    %c0_122 = arith.constant 0 : index
    %379 = vector.load %arg8[%c1_120, %c0_121, %c0_122] : memref<2x32x96xf32, #tpu.memory_space<vmem>>, vector<1x32x96xf32>
    %380 = vector.shape_cast %379 : vector<1x32x96xf32> to vector<32x96xf32>
    %c1_123 = arith.constant 1 : index
    %c0_124 = arith.constant 0 : index
    %c0_125 = arith.constant 0 : index
    %381 = vector.load %arg9[%c1_123, %c0_124, %c0_125] : memref<2x32x32xf32, #tpu.memory_space<vmem>>, vector<1x32x32xf32>
    %382 = vector.shape_cast %381 : vector<1x32x32xf32> to vector<32x32xf32>
    %383 = vector.extract_strided_slice %271 {offsets = [4, 0], sizes = [4, 96], strides = [1, 1]} : vector<12x96xf32> to vector<4x96xf32>
    %384 = vector.extract_strided_slice %383 {offsets = [0, 0], sizes = [1, 96], strides = [1, 1]} : vector<4x96xf32> to vector<1x96xf32>
    %385 = vector.extract_strided_slice %383 {offsets = [1, 0], sizes = [1, 32], strides = [1, 1]} : vector<4x96xf32> to vector<1x32xf32>
    %386 = vector.extract_strided_slice %383 {offsets = [2, 0], sizes = [1, 32], strides = [1, 1]} : vector<4x96xf32> to vector<1x32xf32>
    %387 = vector.extract_strided_slice %383 {offsets = [3, 0], sizes = [1, 32], strides = [1, 1]} : vector<4x96xf32> to vector<1x32xf32>
    %388 = vector.extract_strided_slice %380 {offsets = [0, 0], sizes = [32, 32], strides = [1, 1]} : vector<32x96xf32> to vector<32x32xf32>
    %cst_126 = arith.constant dense<0.000000e+00> : vector<7x32xf32>
    %389 = tpu.matmul %378, %388, %cst_126 {dimension_numbers = #tpu.dot_dimension_numbers<[1], [0], [0], [1], [0, 0, 1, 1], [], []>} : vector<7x32xf32>, vector<32x32xf32>, vector<7x32xf32> -> vector<7x32xf32>
    %390 = vector.extract_strided_slice %384 {offsets = [0, 0], sizes = [1, 32], strides = [1, 1]} : vector<1x96xf32> to vector<1x32xf32>
    %391 = vector.broadcast %390 : vector<1x32xf32> to vector<7x32xf32>
    %392 = arith.addf %389, %391 : vector<7x32xf32>
    %393 = vector.extract_strided_slice %380 {offsets = [0, 32], sizes = [32, 64], strides = [1, 1]} : vector<32x96xf32> to vector<32x64xf32>
    %cst_127 = arith.constant dense<0.000000e+00> : vector<8x64xf32>
    %394 = tpu.matmul %3, %393, %cst_127 {dimension_numbers = #tpu.dot_dimension_numbers<[1], [0], [0], [1], [0, 0, 1, 1], [], []>} : vector<8x32xf32>, vector<32x64xf32>, vector<8x64xf32> -> vector<8x64xf32>
    %395 = vector.extract_strided_slice %384 {offsets = [0, 32], sizes = [1, 64], strides = [1, 1]} : vector<1x96xf32> to vector<1x64xf32>
    %396 = vector.broadcast %395 : vector<1x64xf32> to vector<8x64xf32>
    %397 = arith.addf %394, %396 : vector<8x64xf32>
    %398 = vector.extract_strided_slice %397 {offsets = [0, 0], sizes = [8, 32], strides = [1, 1]} : vector<8x64xf32> to vector<8x32xf32>
    %399 = vector.extract_strided_slice %397 {offsets = [0, 32], sizes = [8, 32], strides = [1, 1]} : vector<8x64xf32> to vector<8x32xf32>
    %400 = vector.extract_strided_slice %392 {offsets = [0, 0], sizes = [7, 8], strides = [1, 1]} : vector<7x32xf32> to vector<7x8xf32>
    %401 = vector.extract_strided_slice %398 {offsets = [0, 0], sizes = [8, 8], strides = [1, 1]} : vector<8x32xf32> to vector<8x8xf32>
    %cst_128 = arith.constant dense<0.000000e+00> : vector<7x8xf32>
    %402 = tpu.matmul %400, %401, %cst_128 {dimension_numbers = #tpu.dot_dimension_numbers<[1], [1], [0], [0], [0, 0, 1, 0], [], []>} : vector<7x8xf32>, vector<8x8xf32>, vector<7x8xf32> -> vector<7x8xf32>
    %403 = vector.extract_strided_slice %392 {offsets = [0, 8], sizes = [7, 8], strides = [1, 1]} : vector<7x32xf32> to vector<7x8xf32>
    %404 = vector.extract_strided_slice %398 {offsets = [0, 8], sizes = [8, 8], strides = [1, 1]} : vector<8x32xf32> to vector<8x8xf32>
    %cst_129 = arith.constant dense<0.000000e+00> : vector<7x8xf32>
    %405 = tpu.matmul %403, %404, %cst_129 {dimension_numbers = #tpu.dot_dimension_numbers<[1], [1], [0], [0], [0, 0, 1, 0], [], []>} : vector<7x8xf32>, vector<8x8xf32>, vector<7x8xf32> -> vector<7x8xf32>
    %406 = vector.extract_strided_slice %392 {offsets = [0, 16], sizes = [7, 8], strides = [1, 1]} : vector<7x32xf32> to vector<7x8xf32>
    %407 = vector.extract_strided_slice %398 {offsets = [0, 16], sizes = [8, 8], strides = [1, 1]} : vector<8x32xf32> to vector<8x8xf32>
    %cst_130 = arith.constant dense<0.000000e+00> : vector<7x8xf32>
    %408 = tpu.matmul %406, %407, %cst_130 {dimension_numbers = #tpu.dot_dimension_numbers<[1], [1], [0], [0], [0, 0, 1, 0], [], []>} : vector<7x8xf32>, vector<8x8xf32>, vector<7x8xf32> -> vector<7x8xf32>
    %409 = vector.extract_strided_slice %392 {offsets = [0, 24], sizes = [7, 8], strides = [1, 1]} : vector<7x32xf32> to vector<7x8xf32>
    %410 = vector.extract_strided_slice %398 {offsets = [0, 24], sizes = [8, 8], strides = [1, 1]} : vector<8x32xf32> to vector<8x8xf32>
    %cst_131 = arith.constant dense<0.000000e+00> : vector<7x8xf32>
    %411 = tpu.matmul %409, %410, %cst_131 {dimension_numbers = #tpu.dot_dimension_numbers<[1], [1], [0], [0], [0, 0, 1, 0], [], []>} : vector<7x8xf32>, vector<8x8xf32>, vector<7x8xf32> -> vector<7x8xf32>
    %412 = vector.shape_cast %402 : vector<7x8xf32> to vector<1x7x8xf32>
    %413 = vector.shape_cast %405 : vector<7x8xf32> to vector<1x7x8xf32>
    %414 = vector.shape_cast %408 : vector<7x8xf32> to vector<1x7x8xf32>
    %415 = vector.shape_cast %411 : vector<7x8xf32> to vector<1x7x8xf32>
    %416 = tpu.concatenate %412, %413, %414, %415 in 0 : vector<1x7x8xf32>, vector<1x7x8xf32>, vector<1x7x8xf32>, vector<1x7x8xf32> -> vector<4x7x8xf32>
    %cst_132 = arith.constant 0.353553385 : f32
    %417 = vector.broadcast %cst_132 : f32 to vector<4x7x8xf32>
    %418 = arith.mulf %416, %417 : vector<4x7x8xf32>
    %cst_133 = arith.constant 0.000000e+00 : f32
    %419 = vector.broadcast %cst_133 : f32 to vector<1x8xf32>
    %420 = arith.cmpf ogt, %5, %419 : vector<1x8xf32>
    %cst_134 = arith.constant -1.000000e+09 : f32
    %421 = vector.shape_cast %420 : vector<1x8xi1> to vector<1x1x8xi1>
    %422 = vector.broadcast %421 : vector<1x1x8xi1> to vector<4x7x8xi1>
    %423 = vector.broadcast %cst_134 : f32 to vector<4x7x8xf32>
    %424 = arith.select %422, %423, %418 : vector<4x7x8xi1>, vector<4x7x8xf32>
    %cst_135 = arith.constant dense<0xFF800000> : vector<4x7xf32>
    %425 = vector.multi_reduction <maximumf>, %424, %cst_135 [2] : vector<4x7x8xf32> to vector<4x7xf32>
    %426 = vector.shape_cast %425 : vector<4x7xf32> to vector<4x7x1xf32>
    %427 = vector.broadcast %426 : vector<4x7x1xf32> to vector<4x7x8xf32>
    %428 = arith.subf %424, %427 : vector<4x7x8xf32>
    %429 = math.exp %428 : vector<4x7x8xf32>
    %cst_136 = arith.constant dense<0.000000e+00> : vector<4x7xf32>
    %430 = vector.multi_reduction <add>, %429, %cst_136 [2] : vector<4x7x8xf32> to vector<4x7xf32>
    %431 = vector.shape_cast %430 : vector<4x7xf32> to vector<4x7x1xf32>
    %432 = vector.broadcast %431 : vector<4x7x1xf32> to vector<4x7x8xf32>
    %433 = arith.divf %429, %432 : vector<4x7x8xf32>
    %434 = vector.extract_strided_slice %433 {offsets = [0, 0, 0], sizes = [1, 7, 8], strides = [1, 1, 1]} : vector<4x7x8xf32> to vector<1x7x8xf32>
    %435 = vector.shape_cast %434 : vector<1x7x8xf32> to vector<7x8xf32>
    %436 = vector.extract_strided_slice %399 {offsets = [0, 0], sizes = [8, 8], strides = [1, 1]} : vector<8x32xf32> to vector<8x8xf32>
    %cst_137 = arith.constant dense<0.000000e+00> : vector<7x8xf32>
    %437 = tpu.matmul %435, %436, %cst_137 {dimension_numbers = #tpu.dot_dimension_numbers<[1], [0], [0], [1], [0, 0, 1, 1], [], []>} : vector<7x8xf32>, vector<8x8xf32>, vector<7x8xf32> -> vector<7x8xf32>
    %438 = vector.extract_strided_slice %382 {offsets = [0, 0], sizes = [8, 32], strides = [1, 1]} : vector<32x32xf32> to vector<8x32xf32>
    %cst_138 = arith.constant dense<0.000000e+00> : vector<7x32xf32>
    %439 = tpu.matmul %437, %438, %cst_138 {dimension_numbers = #tpu.dot_dimension_numbers<[1], [0], [0], [1], [0, 0, 1, 1], [], []>} : vector<7x8xf32>, vector<8x32xf32>, vector<7x32xf32> -> vector<7x32xf32>
    %440 = vector.broadcast %385 : vector<1x32xf32> to vector<7x32xf32>
    %441 = arith.addf %440, %439 : vector<7x32xf32>
    %442 = vector.extract_strided_slice %433 {offsets = [1, 0, 0], sizes = [1, 7, 8], strides = [1, 1, 1]} : vector<4x7x8xf32> to vector<1x7x8xf32>
    %443 = vector.shape_cast %442 : vector<1x7x8xf32> to vector<7x8xf32>
    %444 = vector.extract_strided_slice %399 {offsets = [0, 8], sizes = [8, 8], strides = [1, 1]} : vector<8x32xf32> to vector<8x8xf32>
    %cst_139 = arith.constant dense<0.000000e+00> : vector<7x8xf32>
    %445 = tpu.matmul %443, %444, %cst_139 {dimension_numbers = #tpu.dot_dimension_numbers<[1], [0], [0], [1], [0, 0, 1, 1], [], []>} : vector<7x8xf32>, vector<8x8xf32>, vector<7x8xf32> -> vector<7x8xf32>
    %446 = vector.extract_strided_slice %382 {offsets = [8, 0], sizes = [8, 32], strides = [1, 1]} : vector<32x32xf32> to vector<8x32xf32>
    %cst_140 = arith.constant dense<0.000000e+00> : vector<7x32xf32>
    %447 = tpu.matmul %445, %446, %cst_140 {dimension_numbers = #tpu.dot_dimension_numbers<[1], [0], [0], [1], [0, 0, 1, 1], [], []>} : vector<7x8xf32>, vector<8x32xf32>, vector<7x32xf32> -> vector<7x32xf32>
    %448 = arith.addf %441, %447 : vector<7x32xf32>
    %449 = vector.extract_strided_slice %433 {offsets = [2, 0, 0], sizes = [1, 7, 8], strides = [1, 1, 1]} : vector<4x7x8xf32> to vector<1x7x8xf32>
    %450 = vector.shape_cast %449 : vector<1x7x8xf32> to vector<7x8xf32>
    %451 = vector.extract_strided_slice %399 {offsets = [0, 16], sizes = [8, 8], strides = [1, 1]} : vector<8x32xf32> to vector<8x8xf32>
    %cst_141 = arith.constant dense<0.000000e+00> : vector<7x8xf32>
    %452 = tpu.matmul %450, %451, %cst_141 {dimension_numbers = #tpu.dot_dimension_numbers<[1], [0], [0], [1], [0, 0, 1, 1], [], []>} : vector<7x8xf32>, vector<8x8xf32>, vector<7x8xf32> -> vector<7x8xf32>
    %453 = vector.extract_strided_slice %382 {offsets = [16, 0], sizes = [8, 32], strides = [1, 1]} : vector<32x32xf32> to vector<8x32xf32>
    %cst_142 = arith.constant dense<0.000000e+00> : vector<7x32xf32>
    %454 = tpu.matmul %452, %453, %cst_142 {dimension_numbers = #tpu.dot_dimension_numbers<[1], [0], [0], [1], [0, 0, 1, 1], [], []>} : vector<7x8xf32>, vector<8x32xf32>, vector<7x32xf32> -> vector<7x32xf32>
    %455 = arith.addf %448, %454 : vector<7x32xf32>
    %456 = vector.extract_strided_slice %433 {offsets = [3, 0, 0], sizes = [1, 7, 8], strides = [1, 1, 1]} : vector<4x7x8xf32> to vector<1x7x8xf32>
    %457 = vector.shape_cast %456 : vector<1x7x8xf32> to vector<7x8xf32>
    %458 = vector.extract_strided_slice %399 {offsets = [0, 24], sizes = [8, 8], strides = [1, 1]} : vector<8x32xf32> to vector<8x8xf32>
    %cst_143 = arith.constant dense<0.000000e+00> : vector<7x8xf32>
    %459 = tpu.matmul %457, %458, %cst_143 {dimension_numbers = #tpu.dot_dimension_numbers<[1], [0], [0], [1], [0, 0, 1, 1], [], []>} : vector<7x8xf32>, vector<8x8xf32>, vector<7x8xf32> -> vector<7x8xf32>
    %460 = vector.extract_strided_slice %382 {offsets = [24, 0], sizes = [8, 32], strides = [1, 1]} : vector<32x32xf32> to vector<8x32xf32>
    %cst_144 = arith.constant dense<0.000000e+00> : vector<7x32xf32>
    %461 = tpu.matmul %459, %460, %cst_144 {dimension_numbers = #tpu.dot_dimension_numbers<[1], [0], [0], [1], [0, 0, 1, 1], [], []>} : vector<7x8xf32>, vector<8x32xf32>, vector<7x32xf32> -> vector<7x32xf32>
    %462 = arith.addf %455, %461 : vector<7x32xf32>
    %463 = arith.addf %462, %378 : vector<7x32xf32>
    %cst_145 = arith.constant dense<0.000000e+00> : vector<7xf32>
    %464 = vector.multi_reduction <add>, %463, %cst_145 [1] : vector<7x32xf32> to vector<7xf32>
    %465 = vector.shape_cast %464 : vector<7xf32> to vector<7x1xf32>
    %cst_146 = arith.constant 3.200000e+01 : f32
    %466 = vector.broadcast %cst_146 : f32 to vector<7x1xf32>
    %467 = arith.divf %465, %466 : vector<7x1xf32>
    %468 = vector.broadcast %467 : vector<7x1xf32> to vector<7x32xf32>
    %469 = arith.subf %463, %468 : vector<7x32xf32>
    %470 = arith.mulf %469, %469 : vector<7x32xf32>
    %cst_147 = arith.constant dense<0.000000e+00> : vector<7xf32>
    %471 = vector.multi_reduction <add>, %470, %cst_147 [1] : vector<7x32xf32> to vector<7xf32>
    %472 = vector.shape_cast %471 : vector<7xf32> to vector<7x1xf32>
    %cst_148 = arith.constant 3.200000e+01 : f32
    %473 = vector.broadcast %cst_148 : f32 to vector<7x1xf32>
    %474 = arith.divf %472, %473 : vector<7x1xf32>
    %475 = vector.broadcast %467 : vector<7x1xf32> to vector<7x32xf32>
    %476 = arith.subf %463, %475 : vector<7x32xf32>
    %cst_149 = arith.constant 9.99999974E-6 : f32
    %477 = vector.broadcast %cst_149 : f32 to vector<7x1xf32>
    %478 = arith.addf %474, %477 : vector<7x1xf32>
    %479 = math.rsqrt %478 : vector<7x1xf32>
    %480 = vector.broadcast %479 : vector<7x1xf32> to vector<7x32xf32>
    %481 = arith.mulf %476, %480 : vector<7x32xf32>
    %482 = vector.broadcast %386 : vector<1x32xf32> to vector<7x32xf32>
    %483 = arith.mulf %481, %482 : vector<7x32xf32>
    %484 = vector.broadcast %387 : vector<1x32xf32> to vector<7x32xf32>
    %485 = arith.addf %483, %484 : vector<7x32xf32>
    %486 = vector.broadcast %9 : vector<7x1xf32> to vector<7x32xf32>
    %487 = arith.mulf %485, %486 : vector<7x32xf32>
    %c1_150 = arith.constant 1 : index
    %c0_151 = arith.constant 0 : index
    %c0_152 = arith.constant 0 : index
    %488 = vector.load %arg10[%c1_150, %c0_151, %c0_152] : memref<2x32x64xf32, #tpu.memory_space<vmem>>, vector<1x32x64xf32>
    %489 = vector.shape_cast %488 : vector<1x32x64xf32> to vector<32x64xf32>
    %c1_153 = arith.constant 1 : index
    %c0_154 = arith.constant 0 : index
    %c0_155 = arith.constant 0 : index
    %490 = vector.load %arg11[%c1_153, %c0_154, %c0_155] : memref<2x64x32xf32, #tpu.memory_space<vmem>>, vector<1x64x32xf32>
    %491 = vector.shape_cast %490 : vector<1x64x32xf32> to vector<64x32xf32>
    %492 = vector.extract_strided_slice %271 {offsets = [8, 0], sizes = [4, 96], strides = [1, 1]} : vector<12x96xf32> to vector<4x96xf32>
    %493 = vector.extract_strided_slice %492 {offsets = [0, 0], sizes = [1, 64], strides = [1, 1]} : vector<4x96xf32> to vector<1x64xf32>
    %494 = vector.extract_strided_slice %492 {offsets = [1, 0], sizes = [1, 32], strides = [1, 1]} : vector<4x96xf32> to vector<1x32xf32>
    %495 = vector.extract_strided_slice %492 {offsets = [2, 0], sizes = [1, 32], strides = [1, 1]} : vector<4x96xf32> to vector<1x32xf32>
    %496 = vector.extract_strided_slice %492 {offsets = [3, 0], sizes = [1, 32], strides = [1, 1]} : vector<4x96xf32> to vector<1x32xf32>
    %cst_156 = arith.constant dense<0.000000e+00> : vector<7x64xf32>
    %497 = tpu.matmul %487, %489, %cst_156 {dimension_numbers = #tpu.dot_dimension_numbers<[1], [0], [0], [1], [0, 0, 1, 1], [], []>} : vector<7x32xf32>, vector<32x64xf32>, vector<7x64xf32> -> vector<7x64xf32>
    %498 = vector.broadcast %493 : vector<1x64xf32> to vector<7x64xf32>
    %499 = arith.addf %497, %498 : vector<7x64xf32>
    %cst_157 = arith.constant 0.000000e+00 : f32
    %500 = vector.broadcast %cst_157 : f32 to vector<7x64xf32>
    %501 = arith.maximumf %499, %500 : vector<7x64xf32>
    %cst_158 = arith.constant dense<0.000000e+00> : vector<7x32xf32>
    %502 = tpu.matmul %501, %491, %cst_158 {dimension_numbers = #tpu.dot_dimension_numbers<[1], [0], [0], [1], [0, 0, 1, 1], [], []>} : vector<7x64xf32>, vector<64x32xf32>, vector<7x32xf32> -> vector<7x32xf32>
    %503 = vector.broadcast %494 : vector<1x32xf32> to vector<7x32xf32>
    %504 = arith.addf %502, %503 : vector<7x32xf32>
    %505 = arith.addf %504, %487 : vector<7x32xf32>
    %cst_159 = arith.constant dense<0.000000e+00> : vector<7xf32>
    %506 = vector.multi_reduction <add>, %505, %cst_159 [1] : vector<7x32xf32> to vector<7xf32>
    %507 = vector.shape_cast %506 : vector<7xf32> to vector<7x1xf32>
    %cst_160 = arith.constant 3.200000e+01 : f32
    %508 = vector.broadcast %cst_160 : f32 to vector<7x1xf32>
    %509 = arith.divf %507, %508 : vector<7x1xf32>
    %510 = vector.broadcast %509 : vector<7x1xf32> to vector<7x32xf32>
    %511 = arith.subf %505, %510 : vector<7x32xf32>
    %512 = arith.mulf %511, %511 : vector<7x32xf32>
    %cst_161 = arith.constant dense<0.000000e+00> : vector<7xf32>
    %513 = vector.multi_reduction <add>, %512, %cst_161 [1] : vector<7x32xf32> to vector<7xf32>
    %514 = vector.shape_cast %513 : vector<7xf32> to vector<7x1xf32>
    %cst_162 = arith.constant 3.200000e+01 : f32
    %515 = vector.broadcast %cst_162 : f32 to vector<7x1xf32>
    %516 = arith.divf %514, %515 : vector<7x1xf32>
    %517 = vector.broadcast %509 : vector<7x1xf32> to vector<7x32xf32>
    %518 = arith.subf %505, %517 : vector<7x32xf32>
    %cst_163 = arith.constant 9.99999974E-6 : f32
    %519 = vector.broadcast %cst_163 : f32 to vector<7x1xf32>
    %520 = arith.addf %516, %519 : vector<7x1xf32>
    %521 = math.rsqrt %520 : vector<7x1xf32>
    %522 = vector.broadcast %521 : vector<7x1xf32> to vector<7x32xf32>
    %523 = arith.mulf %518, %522 : vector<7x32xf32>
    %524 = vector.broadcast %495 : vector<1x32xf32> to vector<7x32xf32>
    %525 = arith.mulf %523, %524 : vector<7x32xf32>
    %526 = vector.broadcast %496 : vector<1x32xf32> to vector<7x32xf32>
    %527 = arith.addf %525, %526 : vector<7x32xf32>
    %528 = vector.broadcast %9 : vector<7x1xf32> to vector<7x32xf32>
    %529 = arith.mulf %527, %528 : vector<7x32xf32>
    %c0_164 = arith.constant 0 : index
    %c0_165 = arith.constant 0 : index
    %530 = vector.load %arg13[%c0_164, %c0_165] : memref<32x128xf32, #tpu.memory_space<vmem>>, vector<32x128xf32>
    %cst_166 = arith.constant dense<0.000000e+00> : vector<7x128xf32>
    %531 = tpu.matmul %529, %530, %cst_166 {dimension_numbers = #tpu.dot_dimension_numbers<[1], [0], [0], [1], [0, 0, 1, 1], [], []>} : vector<7x32xf32>, vector<32x128xf32>, vector<7x128xf32> -> vector<7x128xf32>
    %c0_167 = arith.constant 0 : index
    %c0_168 = arith.constant 0 : index
    %c0_169 = arith.constant 0 : index
    %532 = vector.load %arg14[%c0_167, %c0_168, %c0_169] : memref<1x7x128xf32, #tpu.memory_space<vmem>>, vector<1x7x128xf32>
    %533 = vector.shape_cast %532 : vector<1x7x128xf32> to vector<7x128xf32>
    %534 = vector.shape_cast %531 : vector<7x128xf32> to vector<1x7x128xf32>
    tpu.vector_store %arg14[%c0_167, %c0_168, %c0_169], %534 {strides = array<i32>} : memref<1x7x128xf32, #tpu.memory_space<vmem>>, vector<1x7x128xf32>,
    return
  }
  func.func @transform_0(%arg0: i32) -> (i32, i32, i32) {
    %c0_i32 = arith.constant 0 : i32
    %c0_i32_0 = arith.constant 0 : i32
    %c0_i32_1 = arith.constant 0 : i32
    return %arg0, %c0_i32, %c0_i32_0 : i32, i32, i32
  }
  func.func @transform_1(%arg0: i32) -> (i32, i32, i32) {
    %c0_i32 = arith.constant 0 : i32
    %c0_i32_0 = arith.constant 0 : i32
    %c0_i32_1 = arith.constant 0 : i32
    return %arg0, %c0_i32, %c0_i32_0 : i32, i32, i32
  }
  func.func @transform_2(%arg0: i32) -> (i32, i32, i32) {
    %c0_i32 = arith.constant 0 : i32
    %c0_i32_0 = arith.constant 0 : i32
    %c0_i32_1 = arith.constant 0 : i32
    return %arg0, %c0_i32, %c0_i32_0 : i32, i32, i32
  }
  func.func @transform_3(%arg0: i32) -> (i32, i32, i32) {
    %c0_i32 = arith.constant 0 : i32
    %c0_i32_0 = arith.constant 0 : i32
    %c0_i32_1 = arith.constant 0 : i32
    return %arg0, %c0_i32, %c0_i32_0 : i32, i32, i32
  }
  func.func @transform_4(%arg0: i32) -> (i32, i32, i32) {
    %c0_i32 = arith.constant 0 : i32
    %c0_i32_0 = arith.constant 0 : i32
    %c0_i32_1 = arith.constant 0 : i32
    return %arg0, %c0_i32, %c0_i32_0 : i32, i32, i32
  }
  func.func @transform_5(%arg0: i32) -> (i32, i32, i32) {
    %c0_i32 = arith.constant 0 : i32
    %c0_i32_0 = arith.constant 0 : i32
    %c0_i32_1 = arith.constant 0 : i32
    %c0_i32_2 = arith.constant 0 : i32
    return %c0_i32, %c0_i32_0, %c0_i32_1 : i32, i32, i32
  }
  func.func @transform_6(%arg0: i32) -> (i32, i32, i32) {
    %c0_i32 = arith.constant 0 : i32
    %c0_i32_0 = arith.constant 0 : i32
    %c0_i32_1 = arith.constant 0 : i32
    %c0_i32_2 = arith.constant 0 : i32
    return %c0_i32, %c0_i32_0, %c0_i32_1 : i32, i32, i32
  }
  func.func @transform_7(%arg0: i32) -> (i32, i32, i32) {
    %c0_i32 = arith.constant 0 : i32
    %c0_i32_0 = arith.constant 0 : i32
    %c0_i32_1 = arith.constant 0 : i32
    %c0_i32_2 = arith.constant 0 : i32
    return %c0_i32, %c0_i32_0, %c0_i32_1 : i32, i32, i32
  }
  func.func @transform_8(%arg0: i32) -> (i32, i32, i32) {
    %c0_i32 = arith.constant 0 : i32
    %c0_i32_0 = arith.constant 0 : i32
    %c0_i32_1 = arith.constant 0 : i32
    %c0_i32_2 = arith.constant 0 : i32
    return %c0_i32, %c0_i32_0, %c0_i32_1 : i32, i32, i32
  }
  func.func @transform_9(%arg0: i32) -> (i32, i32, i32) {
    %c0_i32 = arith.constant 0 : i32
    %c0_i32_0 = arith.constant 0 : i32
    %c0_i32_1 = arith.constant 0 : i32
    %c0_i32_2 = arith.constant 0 : i32
    return %c0_i32, %c0_i32_0, %c0_i32_1 : i32, i32, i32
  }
  func.func @transform_10(%arg0: i32) -> (i32, i32, i32) {
    %c0_i32 = arith.constant 0 : i32
    %c0_i32_0 = arith.constant 0 : i32
    %c0_i32_1 = arith.constant 0 : i32
    %c0_i32_2 = arith.constant 0 : i32
    return %c0_i32, %c0_i32_0, %c0_i32_1 : i32, i32, i32
  }
  func.func @transform_11(%arg0: i32) -> (i32, i32, i32) {
    %c0_i32 = arith.constant 0 : i32
    %c0_i32_0 = arith.constant 0 : i32
    %c0_i32_1 = arith.constant 0 : i32
    %c0_i32_2 = arith.constant 0 : i32
    return %c0_i32, %c0_i32_0, %c0_i32_1 : i32, i32, i32
  }
  func.func @transform_12(%arg0: i32) -> (i32, i32) {
    %c0_i32 = arith.constant 0 : i32
    %c0_i32_0 = arith.constant 0 : i32
    %c0_i32_1 = arith.constant 0 : i32
    return %c0_i32, %c0_i32_0 : i32, i32
  }
  func.func @transform_13(%arg0: i32) -> (i32, i32, i32) {
    %c0_i32 = arith.constant 0 : i32
    %c0_i32_0 = arith.constant 0 : i32
    %c0_i32_1 = arith.constant 0 : i32
    return %arg0, %c0_i32, %c0_i32_0 : i32, i32, i32
  }
}

</mosaic_0001>

<bundles_post_ra>
// kernel: transformer_forward.2
= control target key start
LH: loop header
LB: loop body
LE: loop exit
PB: predicated region body
PF: predicated region fallthrough
CT: control target
= control target key end

     0   :  { %s3508_s27 = smov 0   ;;  %s3972_s0 = inlined_call_operand.vmem [shape: f32[2,8,32], index: 0, kind: input, shape index: {}]   ;;  %s3973_s1 = inlined_call_operand.vmem [shape: f32[2,1,8], index: 1, kind: input, shape index: {}]   ;;  %s3974_s2 = inlined_call_operand.vmem [shape: f32[2,8,1], index: 2, kind: input, shape index: {}]   ;;  %s3975_s3 = inlined_call_operand.vmem [shape: f32[2,32,96], index: 3, kind: input, shape index: {}]   ;;  %s3976_s4 = inlined_call_operand.vmem [shape: f32[2,32,32], index: 4, kind: input, shape index: {}]   ;;  %s3977_s5 = inlined_call_operand.vmem [shape: f32[2,32,64], index: 5, kind: input, shape index: {}]   ;;  %s3978_s6 = inlined_call_operand.vmem [shape: f32[2,64,32], index: 6, kind: input, shape index: {}]   ;;  %s3979_s7 = inlined_call_operand.vmem [shape: f32[2,8,96], index: 7, kind: input, shape index: {}]   ;;  %s3980_s8 = inlined_call_operand.vmem [shape: f32[2,8,32], index: 8, kind: output, shape index: {}]  }
   0x1 LB: > { %s2971_s28 = sadd.s32 4294967295, %s3446_s27   ;;  %p2975_p0 = scmp.ge.s32.totalorder %s3446_s27, 1  ;;  %s3446_s27 = sphi %s3508_s27, %s18_s27  }
   0x2   : > { %p278_p1 = scmp.lt.s32.totalorder %s3446_s27, 3 }
   0x4   : > { %p279_p2 = pnand %p2975_p0, %p278_p1 }
   0x5   : > { %v336_v0 = vld [vmem:[%s3975_s3] sm:$0xff] (!%p279_p2)  ;;  %v337_v1 = vld [vmem:[%s3975_s3 + $0x8] sm:$0xff] (!%p279_p2)  ;;  %v338_v2 = vld [vmem:[%s3975_s3 + $0x10] sm:$0xff] (!%p279_p2)  ;;  %v3448_v3 = vmov (!%p279_p2), 0.0|0.0   ;;  %vm3449_vm0 = vmmov (!%p279_p2), 0   ;;  %v3450_v6 = vmov (!%p279_p2), 0.0   ;;  %v344_v12 = vlaneseq (!%p279_p2) }
   0x6   : > { %282 = sbr.rel (%p279_p2) target bundleno = 4834 (0x12e2), region = 52  ;;  %3328 = vmatprep.subr.bf16.mxu0 (!%p279_p2), %v3448_v3  ;;  %v3329_v4 = vpack.c.bf16 (!%p279_p2), %v337_v1, %v336_v0  ;;  %v339_v5 = vld [vmem:[%s3975_s3 + $0x18] sm:$0xff] (!%p279_p2)  ;;  %3134 = vmatprep.mubr.msk.f32.mxu0 (!%p279_p2), %vm3449_vm0, %v3450_v6  ;;  %p317_p3 = scmp.lt.s32.totalorder (!%p279_p2), %s2971_s28, 1  ;;  %v3451_v8 = vmov (!%p279_p2), 0   ;;  %vm348_vm1 = vcmask (!%p279_p2), 261120   ;;  %v3559_v15 = vld [vmem:[%s3979_s7] sm:$0xff] (!%p279_p2) }
   0x7   : > { %3142 = vmatprep.subr.mxu1 (!%p279_p2), %v3450_v6  ;;  %3144 = vmatprep.mubr.msk.f32.mxu1 (!%p279_p2), %vm3449_vm0, %v3450_v6  ;;  %v3332_v7 = vpack.c.bf16 (!%p279_p2), %v339_v5, %v338_v2  ;;  %v3551_v13 = vshrl.u32 (!%p279_p2), %v344_v12, 7  ;;  %s3452_s24 = smov (!%p279_p2), 120   ;;  %s3453_s25 = smov (!%p279_p2), 96   ;;  %vm425_vm3 = vcmask (!%p279_p2), 64512   ;;  %vm1522_vm5 = vcmask (!%p279_p2), 523264  }
   0x8   : > { %3330 = vmatpush3.bf16.msra.mxu0 (!%p279_p2), %v3329_v4  ;;  %3399 = vset.pattern.permute.xlu0 (!%p279_p2), %v3451_v8  ;;  %s3454_s26 = smov (!%p279_p2), 80   ;;  %s3456_s29 = smov (!%p279_p2), 72  }
   0x9   : > { %3331 = vmatprep.subr.bf16.mxu0 (!%p279_p2), %v3448_v3  ;;  %v3554_v14 = vsub.s32 (!%p279_p2), 0, %v3551_v13  ;;  %s3457_s30 = smov (!%p279_p2), 112   ;;  %s3458_s9 = smov (!%p279_p2), 104  }
   0xa   : > { %s3459_s10 = smov (!%p279_p2), 56   ;;  %s3460_s11 = smov (!%p279_p2), 64  }
   0xb   : > { %v347_v16 = vrot.slane (!%p279_p2), %v3559_v15, %v3554_v14  ;;  %s3982_s12 = smov (!%p279_p2), 48   ;;  %s3981_s13 = smov (!%p279_p2), 40  }
   0xc   : > { %3333 = vmatpush3.bf16.msra.mxu0 (!%p279_p2), %v3332_v7 }
   0xd   : > { %s3988_s28 = smov (!%p317_p3, %s2971_s28), 1  ;;  %3137 = vmatprep.subr.mxu0 %v3450_v6 }
   0xe   : > { %s3535_s15 = sshll.u32 %s3988_s28, 3  ;;  %s323_s18 = scalar_lea.vmem %s3973_s1, %s3988_s28 }
   0xf   : > { %s320_s21 = scalar_lea.vmem %s3972_s0, %s3535_s15  ;;  %v333_v9 = vld [vmem:[%s323_s18] sm:$0x1]  ;;  %s3455_s28 = smov 88  }
  0x10   : > { %v3544_v10 = vld [vmem:[%s320_s21] sm:$0xff]  ;;  %vm738_vm2 = vcmp.gt.f32.partialorder %v333_v9, 0.0  ;;  %s327_s16 = scalar_lea.vmem %s3974_s2, %s3535_s15  ;;  %s331_s23 = scalar_lea.vmem %s3980_s8, %s3535_s15 }
  0x11   : > { %v739_v11 = vsel %vm738_vm2, 1, %v3451_v8  ;;  %3135 = vmatmul.mubr.msk.f32.vlgmr.msra.gmra.mrb[0].mxu0 %vm348_vm1, %v3544_v10 }
  0x12   : > { %3139 = vmatprep.mubr.msk.f32.mxu0 %vm3449_vm0, %v3450_v6  ;;  %v743_v27 = vrot.slane %v739_v11, %v3554_v14 }
  0x14   : > { %vm3601_vm4 = vcmp.eq.s32.totalorder %v743_v27, 1  ;;  %v340_v27 = vld [vmem:[%s3976_s4] sm:$0xff] }
  0xe4   : > { %v418_v17 = vpop.f32.mrb[0].mxu0 }
  0xe5   : > { %v3563_v18 = vadd.f32 %v418_v17, %v347_v16  ;;  %v3136_v19 = vpop.f32.mrb[1].mxu0 }
  0xe7   : > { %500 = vrot.lane.b32.xlu1 %v3563_v18, %s3452_s24  ;;  %423 = vrot.lane.b32.xlu0 %v3563_v18, %s3453_s25 }
  0xeb   : > { %580 = vrot.lane.b32.xlu1 %v3563_v18, %s3454_s26  ;;  %502 = vrot.lane.b32.xlu0 %v3563_v18, %s3455_s28 }
  0xef   : > { %658 = vrot.lane.b32.xlu1 %v3563_v18, %s3456_s29  ;;  %578 = vrot.lane.b32.xlu0 %v3563_v18, %s3457_s30 }
  0xf3   : > { %656 = vrot.lane.b32.xlu0 %v3563_v18, %s3458_s9 }
 0x159   : > { %v501_v20 = vpop.permute.xlu1 %500  ;;  %v424_v21 = vpop.permute.xlu0 %423 }
 0x15a   : > { %3138 = vmatpush3.xpose.msk.msra.mxu0 %vm425_vm3, %v424_v21 }
 0x15b   : > { %3147 = vmatprep.subr.mxu0 %v3450_v6 }
 0x15d   : > { %v581_v22 = vpop.permute.xlu1 %580  ;;  %3140 = vmatmul.mubr.msk.f32.vlgmr.msra.gmra.mrb[2].mxu0 %vm425_vm3, %v3563_v18  ;;  %v503_v23 = vpop.permute.xlu0 %502 }
 0x15e   : > { %3143 = vmatpush3.xpose.msk.msra.mxu1 %vm425_vm3, %v503_v23  ;;  %3148 = vmatpush3.xpose.msk.msra.mxu0 %vm425_vm3, %v581_v22 }
 0x15f   : > { %3149 = vmatprep.mubr.msk.f32.mxu0 %vm3449_vm0, %v3450_v6  ;;  %3152 = vmatprep.subr.mxu1 %v3450_v6 }
 0x160   : > { %3157 = vmatprep.subr.mxu0 %v3450_v6 }
 0x161   : > { %v659_v24 = vpop.permute.xlu1 %658  ;;  %3145 = vmatmul.mubr.msk.f32.vlgmr.msra.gmra.mrb[0].mxu1 %vm425_vm3, %v501_v20  ;;  %v579_v25 = vpop.permute.xlu0 %578 }
 0x162   : > { %3150 = vmatmul.mubr.msk.f32.vlgmr.msra.gmra.mrb[4].mxu0 %vm425_vm3, %v579_v25  ;;  %3153 = vmatpush3.xpose.msk.msra.mxu1 %vm425_vm3, %v659_v24 }
 0x163   : > { %3154 = vmatprep.mubr.msk.f32.mxu1 %vm3449_vm0, %v3450_v6  ;;  %3159 = vmatprep.mubr.msk.f32.mxu0 %vm3449_vm0, %v3450_v6 }
 0x164   : > { %3162 = vmatprep.subr.mxu1 %v3450_v6 }
 0x165   : > { %v657_v26 = vpop.permute.xlu0 %656 }
 0x166   : > { %3155 = vmatmul.mubr.msk.f32.vlgmr.msra.gmra.mrb[2].mxu1 %vm425_vm3, %v657_v26 }
 0x167   : > { %3164 = vmatprep.mubr.msk.f32.mxu1 %vm3449_vm0, %v3450_v6  ;;  %3163 = vmatpush3.msra.mxu1 %v340_v27 }
 0x168   : > { %3172 = vmatprep.subr.mxu1 %v3450_v6 }
 0x230   : > { %v496_v29 = vpop.f32.mrb[2].mxu0 }
 0x231   : > { %v734_v30 = vmul.f32 0.35355338, %v496_v29  ;;  %v3141_v31 = vpop.f32.mrb[3].mxu0  ;;  %v341_v29 = vld [vmem:[%s3976_s4 + $0x8] sm:$0xff] }
 0x233   : > { %v745_v32 = vsel %vm3601_vm4, -1e+09, %v734_v30 }
 0x234   : > { %v574_v33 = vpop.f32.mrb[0].mxu1  ;;  %v749_v34 = vsel %vm425_vm3, %v745_v32, -inf }
 0x235   : > { %v735_v35 = vmul.f32 0.35355338, %v574_v33  ;;  %v3146_v36 = vpop.f32.mrb[1].mxu1  ;;  %750 = vmax.xlane.f32.xlu1 %v749_v34  ;;  %v652_v37 = vpop.f32.mrb[4].mxu0 }
 0x236   : > { %v736_v38 = vmul.f32 0.35355338, %v652_v37  ;;  %v3151_v39 = vpop.f32.mrb[5].mxu0 }
 0x237   : > { %v746_v40 = vsel %vm3601_vm4, -1e+09, %v735_v35  ;;  %v343_v35 = vld [vmem:[%s3976_s4 + $0x18] sm:$0xff] }
 0x238   : > { %v752_v41 = vsel %vm425_vm3, %v746_v40, -inf  ;;  %v747_v43 = vsel %vm3601_vm4, -1e+09, %v736_v38 }
 0x239   : > { %753 = vmax.xlane.f32.xlu0 %v752_v41  ;;  %v730_v42 = vpop.f32.mrb[2].mxu1  ;;  %v755_v46 = vsel %vm425_vm3, %v747_v43, -inf }
 0x23a   : > { %v737_v44 = vmul.f32 0.35355338, %v730_v42  ;;  %v3156_v45 = vpop.f32.mrb[3].mxu1 }
 0x23c   : > { %v748_v47 = vsel %vm3601_vm4, -1e+09, %v737_v44 }
 0x23d   : > { %756 = vmax.xlane.f32.xlu0 %v755_v46  ;;  %v758_v48 = vsel %vm425_vm3, %v748_v47, -inf }
 0x23e   : > { %759 = vmax.xlane.f32.xlu1 %v758_v48 }
 0x24f   : > { %947 = vrot.lane.b32.xlu1 %v3563_v18, %s3459_s10 }
 0x2c2   : > { %v751_v49 = vpop.xlane.xlu1 %750 }
 0x2c3   : > { %v761_v50 = vsub.f32 %v745_v32, %v751_v49  ;;  %v342_v32 = vld [vmem:[%s3976_s4 + $0x10] sm:$0xff] }
 0x2c5   : > { %v765_v51 = vmul.f32 1.442695, %v761_v50 }
 0x2c6   : > { %v754_v52 = vpop.xlane.xlu0 %753 }
 0x2c7   : > { %3400 = vpow2.f32 %v765_v51  ;;  %v762_v53 = vsub.f32 %v746_v40, %v754_v52  ;;  %v944_v40 = vsub.s32 1, %v3551_v13 }
 0x2c9   : > { %v767_v54 = vmul.f32 1.442695, %v762_v53  ;;  %v945_v41 = vrot.slane %v3559_v15, %v944_v40 }
 0x2ca   : > { %v757_v0 = vpop.xlane.xlu0 %756 }
 0x2cb   : > { %3402 = vpow2.f32 %v767_v54  ;;  %v760_v55 = vpop.xlane.xlu1 %759  ;;  %v763_v1 = vsub.f32 %v747_v43, %v757_v0 }
 0x2cc   : > { %v764_v56 = vsub.f32 %v748_v47, %v760_v55 }
 0x2cd   : > { %v769_v2 = vmul.f32 1.442695, %v763_v1  ;;  %v1431_v1 = vld [vmem:[%s3977_s5 + $0x18] sm:$0xff] }
 0x2ce   : > { %v771_v57 = vmul.f32 1.442695, %v764_v56 }
 0x2cf   : > { %v948_v7 = vpop.permute.xlu1 %947 }
 0x2d0   : > { %3404 = vpow2.f32 %v771_v57 }
 0x2d1   : > { %v3401_v58 = vpop.eup %3400  ;;  %3406 = vpow2.f32 %v769_v2 }
 0x2d2   : > { %v773_v59 = vsel %vm425_vm3, %v3401_v58, 0.0 }
 0x2d3   : > { %774 = vadd.xlane.f32.xlu0 %v773_v59 }
 0x2d5   : > { %v3403_v60 = vpop.eup %3402 }
 0x2d6   : > { %v776_v61 = vsel %vm425_vm3, %v3403_v60, 0.0 }
 0x2d7   : > { %777 = vadd.xlane.f32.xlu1 %v776_v61  ;;  %v1428_v61 = vld [vmem:[%s3977_s5] sm:$0xff] }
 0x2da   : > { %v3405_v62 = vpop.eup %3404 }
 0x2db   : > { %v782_v63 = vsel %vm425_vm3, %v3405_v62, 0.0  ;;  %v3407_v4 = vpop.eup %3406 }
 0x2dc   : > { %783 = vadd.xlane.f32.xlu1 %v782_v63  ;;  %v779_v5 = vsel %vm425_vm3, %v3407_v4, 0.0  ;;  %v334_v63 = vld [vmem:[%s327_s16] sm:$0xff] }
 0x2e9   : > { %793 = vrot.lane.b32.xlu0 %v3563_v18, %s3460_s11 }
 0x2ed   : > { %1097 = vrot.lane.b32.xlu1 %v3563_v18, %s3982_s12 }
 0x308   : > { %780 = vadd.xlane.f32.xlu0 %v779_v5  ;;  %v1433_v5 = vld [vmem:[%s3978_s6 + $0x8] sm:$0xff] }
 0x31e   : > { %1247 = vrot.lane.b32.xlu0 %v3563_v18, %s3981_s13 }
 0x360   : > { %v775_v8 = vpop.xlane.xlu0 %774 }
 0x361   : > { %3408 = vrcp.f32 %v775_v8 }
 0x364   : > { %v778_v9 = vpop.xlane.xlu1 %777  ;;  %v794_v11 = vpop.permute.xlu0 %793 }
 0x365   : > { %3410 = vrcp.f32 %v778_v9  ;;  %3158 = vmatpush3.msra.mxu0 %v794_v11  ;;  %v1435_v9 = vld [vmem:[%s3978_s6 + $0x18] sm:$0xff] }
 0x366   : > { %3167 = vmatprep.subr.mxu0 %v3450_v6 }
 0x369   : > { %v784_v17 = vpop.xlane.xlu1 %783 }
 0x36b   : > { %v3409_v12 = vpop.eup %3408 }
 0x36c   : > { %v786_v16 = vmul.f32 %v3409_v12, %v3401_v58  ;;  %v1436_v12 = vld [vmem:[%s3978_s6 + $0x20] sm:$0xff] }
 0x36d   : > { %v1098_v20 = vpop.permute.xlu1 %1097 }
 0x36e   : > { %3160 = vmatmul.mubr.msk.f32.vlgmr.msra.gmra.mrb[6].mxu0 %vm425_vm3, %v786_v16  ;;  %v1437_v16 = vld [vmem:[%s3978_s6 + $0x28] sm:$0xff] }
 0x36f   : > { %v3411_v19 = vpop.eup %3410  ;;  %3168 = vmatpush3.msra.mxu0 %v948_v7  ;;  %3169 = vmatprep.mubr.msk.f32.mxu0 %vm3449_vm0, %v3450_v6  ;;  %v1434_v7 = vld [vmem:[%s3978_s6 + $0x10] sm:$0xff] }
 0x370   : > { %v788_v18 = vmul.f32 %v3411_v19, %v3403_v60  ;;  %3177 = vmatprep.subr.mxu0 %v3450_v6  ;;  %v3344_v11 = vpack.c.bf16 %v1435_v9, %v1434_v7  ;;  %v3785_v9 = vld [vmem:[%s3979_s7 + $0x8] sm:$0xff] }
 0x372   : > { %3170 = vmatmul.mubr.msk.f32.vlgmr.msra.gmra.mrb[8].mxu0 %vm425_vm3, %v788_v18 }
 0x373   : > { %3178 = vmatpush3.msra.mxu0 %v1098_v20  ;;  %3179 = vmatprep.mubr.msk.f32.mxu0 %vm3449_vm0, %v3450_v6 }
 0x374   : > { %3187 = vmatprep.subr.mxu0 %v3450_v6 }
 0x395   : > { %v781_v21 = vpop.xlane.xlu0 %780 }
 0x396   : > { %3412 = vrcp.f32 %v781_v21  ;;  %v1414_v21 = vsub.s32 2, %v3551_v13 }
 0x397   : > { %3414 = vrcp.f32 %v784_v17  ;;  %v3347_v17 = vpack.c.bf16 %v1437_v16, %v1436_v12 }
 0x399   : > { %v1248_v25 = vpop.permute.xlu0 %1247 }
 0x3a0   : > { %v3413_v22 = vpop.eup %3412 }
 0x3a1   : > { %v790_v23 = vmul.f32 %v3413_v22, %v3407_v4  ;;  %v3415_v24 = vpop.eup %3414  ;;  %v1432_v4 = vld [vmem:[%s3978_s6] sm:$0xff]  ;;  %v1419_v22 = vsub.s32 3, %v3551_v13 }
 0x3a2   : > { %v792_v26 = vmul.f32 %v3415_v24, %v3405_v62  ;;  %v1430_v62 = vld [vmem:[%s3977_s5 + $0x10] sm:$0xff]  ;;  %v3341_v8 = vpack.c.bf16 %v1433_v5, %v1432_v4 }
 0x3a3   : > { %3180 = vmatmul.mubr.msk.f32.vlgmr.msra.gmra.mrb[10].mxu0 %vm425_vm3, %v790_v23  ;;  %v3338_v2 = vpack.c.bf16 %v1431_v1, %v1430_v62  ;;  %v1415_v23 = vrot.slane %v3559_v15, %v1414_v21  ;;  %v1612_v62 = vsub.s32 6, %v3551_v13 }
 0x3a4   : > { %3188 = vmatpush3.msra.mxu0 %v1248_v25  ;;  %3189 = vmatprep.mubr.msk.f32.mxu0 %vm3449_vm0, %v3450_v6 }
 0x3a5   : > { %3334 = vmatprep.subr.bf16.mxu0 %v3448_v3 }
 0x3a7   : > { %3190 = vmatmul.mubr.msk.f32.vlgmr.msra.gmra.mrb[12].mxu0 %vm425_vm3, %v792_v26  ;;  %v1420_v26 = vrot.slane %v3559_v15, %v1419_v22 }
 0x3a8   : > { %3205 = vmatprep.mubr.msk.f32.mxu0 %vm3449_vm0, %v3450_v6 }
 0x441   : > { %v865_v30 = vpop.f32.mrb[6].mxu0 }
 0x442   : > { %v3161_v31 = vpop.f32.mrb[7].mxu0  ;;  %3165 = vmatmul.mubr.msk.f32.vlgmr.msra.gmra.mrb[4].mxu1 %vm425_vm3, %v865_v30 }
 0x443   : > { %3173 = vmatpush3.msra.mxu1 %v341_v29  ;;  %3174 = vmatprep.mubr.msk.f32.mxu1 %vm3449_vm0, %v3450_v6 }
 0x444   : > { %3182 = vmatprep.subr.mxu1 %v3450_v6 }
 0x445   : > { %v1019_v33 = vpop.f32.mrb[8].mxu0 }
 0x446   : > { %v3171_v34 = vpop.f32.mrb[9].mxu0  ;;  %3175 = vmatmul.mubr.msk.f32.vlgmr.msra.gmra.mrb[6].mxu1 %vm425_vm3, %v1019_v33  ;;  %v1439_v33 = vld [vmem:[%s3978_s6 + $0x38] sm:$0xff] }
 0x447   : > { %3183 = vmatpush3.msra.mxu1 %v342_v32  ;;  %3184 = vmatprep.mubr.msk.f32.mxu1 %vm3449_vm0, %v3450_v6  ;;  %v1438_v32 = vld [vmem:[%s3978_s6 + $0x30] sm:$0xff] }
 0x448   : > { %3192 = vmatprep.subr.mxu1 %v3450_v6  ;;  %v3350_v34 = vpack.c.bf16 %v1439_v33, %v1438_v32 }
 0x476   : > { %v1169_v36 = vpop.f32.mrb[10].mxu0 }
 0x477   : > { %v3181_v37 = vpop.f32.mrb[11].mxu0  ;;  %3185 = vmatmul.mubr.msk.f32.vlgmr.msra.gmra.mrb[8].mxu1 %vm425_vm3, %v1169_v36 }
 0x478   : > { %3193 = vmatpush3.msra.mxu1 %v343_v35  ;;  %3194 = vmatprep.mubr.msk.f32.mxu1 %vm3449_vm0, %v3450_v6  ;;  %v1442_v35 = vsub.s32 4, %v3551_v13 }
 0x479   : > { %3340 = vmatprep.subr.bf16.mxu1 %v3448_v3 }
 0x47a   : > { %v1319_v38 = vpop.f32.mrb[12].mxu0  ;;  %v1443_v36 = vrot.slane %v3559_v15, %v1442_v35 }
 0x47b   : > { %v3191_v39 = vpop.f32.mrb[13].mxu0  ;;  %3195 = vmatmul.mubr.msk.f32.vlgmr.msra.gmra.mrb[10].mxu1 %vm425_vm3, %v1319_v38 }
 0x47c   : > { %3224 = vmatprep.mubr.msk.f32.mxu1 %vm3449_vm0, %v3450_v6  ;;  %3342 = vmatpush3.bf16.msra.mxu1 %v3341_v8 }
 0x47d   : > { %3343 = vmatprep.subr.bf16.mxu1 %v3448_v3 }
 0x480   : > { %3345 = vmatpush3.bf16.msra.mxu1 %v3344_v11  ;;  %v1636_v11 = vrot.slane %v3785_v9, %v3554_v14 }
 0x481   : > { %3346 = vmatprep.subr.bf16.mxu1 %v3448_v3 }
 0x484   : > { %3348 = vmatpush3.bf16.msra.mxu1 %v3347_v17 }
 0x485   : > { %3349 = vmatprep.subr.bf16.mxu1 %v3448_v3 }
 0x488   : > { %3351 = vmatpush3.bf16.msra.mxu1 %v3350_v34 }
 0x489   : > { %3243 = vmatprep.subr.mxu1 %v3450_v6 }
 0x515   : > { %v938_v42 = vpop.f32.mrb[4].mxu1 }
 0x516   : > { %v3166_v43 = vpop.f32.mrb[5].mxu1  ;;  %v946_v44 = vadd.f32 %v945_v41, %v938_v42  ;;  %v1520_v42 = vsub.s32 5, %v3551_v13 }
 0x518   : > { %v1521_v43 = vrot.slane %v3559_v15, %v1520_v42 }
 0x519   : > { %v1092_v45 = vpop.f32.mrb[6].mxu1 }
 0x51a   : > { %v1096_v46 = vadd.f32 %v1092_v45, %v946_v44  ;;  %v3176_v47 = vpop.f32.mrb[7].mxu1 }
 0x54a   : > { %v1242_v48 = vpop.f32.mrb[8].mxu1 }
 0x54b   : > { %v1246_v49 = vadd.f32 %v1242_v48, %v1096_v46  ;;  %v3186_v50 = vpop.f32.mrb[9].mxu1 }
 0x54e   : > { %v1392_v51 = vpop.f32.mrb[10].mxu1 }
 0x54f   : > { %v1396_v52 = vadd.f32 %v1392_v51, %v1246_v49  ;;  %v3196_v53 = vpop.f32.mrb[11].mxu1 }
 0x551   : > { %v1397_v54 = vadd.f32 %v1396_v52, %v3544_v10  ;;  %v1429_v10 = vld [vmem:[%s3977_s5 + $0x8] sm:$0xff] }
 0x552   : > { %v3335_v0 = vpack.c.bf16 %v1429_v10, %v1428_v61 }
 0x553   : > { %v1398_v55 = vsel %vm348_vm1, %v1397_v54, 0.0 }
 0x554   : > { %1399 = vadd.xlane.f32.xlu1 %v1398_v55  ;;  %3336 = vmatpush3.bf16.msra.mxu0 %v3335_v0  ;;  %v3000_v55 = vld [vmem:[%s3975_s3 + $0x28] sm:$0xff]  ;;  %v1613_v0 = vrot.slane %v3559_v15, %v1612_v62 }
 0x555   : > { %3337 = vmatprep.subr.bf16.mxu0 %v3448_v3 }
 0x558   : > { %3339 = vmatpush3.bf16.msra.mxu0 %v3338_v2 }
 0x559   : > { %3352 = vmatprep.subr.bf16.mxu0 %v3448_v3 }
 0x5e1   : > { %v1400_v56 = vpop.xlane.xlu1 %1399 }
 0x5e2   : > { %v1402_v57 = vmul.f32 0.03125, %v1400_v56 }
 0x5e4   : > { %v1403_v58 = vsub.f32 %v1397_v54, %v1402_v57  ;;  %v2999_v54 = vld [vmem:[%s3975_s3 + $0x20] sm:$0xff]  ;;  %v3001_v57 = vld [vmem:[%s3975_s3 + $0x30] sm:$0xff] }
 0x5e5   : > { %v3353_v56 = vpack.c.bf16 %v3000_v55, %v2999_v54 }
 0x5e6   : > { %v1404_v59 = vmul.f32 %v1403_v58, %v1403_v58 }
 0x5e8   : > { %v1405_v60 = vsel %vm348_vm1, %v1404_v59, 0.0 }
 0x5e9   : > { %1406 = vadd.xlane.f32.xlu0 %v1405_v60 }
 0x5ff   : > { %1424 = vperm.xlu0 %3399, %v334_v63   ;;  %v1617_v63 = vsub.s32 7, %v3551_v13 }
 0x601   : > { %v1618_v4 = vrot.slane %v3559_v15, %v1617_v63 }
 0x676   : > { %v1407_v19 = vpop.xlane.xlu0 %1406 }
 0x677   : > { %v1408_v18 = vmul.f32 0.03125, %v1407_v19 }
 0x679   : > { %v1409_v20 = vadd.f32 1e-05, %v1408_v18 }
 0x67b   : > { %3416 = vrsqrt.f32 %v1409_v20 }
 0x67e   : > { %v3727_v29 = vpop.permute.xlu0 %1424 }
 0x685   : > { %v3417_v24 = vpop.eup %3416 }
 0x686   : > { %v1411_v25 = vmul.f32 %v3417_v24, %v1403_v58  ;;  %v3002_v58 = vld [vmem:[%s3975_s3 + $0x38] sm:$0xff] }
 0x687   : > { %v3356_v59 = vpack.c.bf16 %v3002_v58, %v3001_v57 }
 0x688   : > { %v1416_v27 = vmul.f32 %v1415_v23, %v1411_v25 }
 0x68a   : > { %v1421_v30 = vadd.f32 %v1420_v26, %v1416_v27 }
 0x68c   : > { %v1427_v31 = vmul.f32 %v3727_v29, %v1421_v30 }
 0x68e   : > { %3206 = vmatmul.mubr.msk.f32.vlgmr.msra.gmra.mrb[14].mxu0 %vm348_vm1, %v1427_v31 }
 0x68f   : > { %3235 = vmatprep.mubr.msk.f32.mxu0 %vm3449_vm0, %v3450_v6  ;;  %3354 = vmatpush3.bf16.msra.mxu0 %v3353_v56 }
 0x690   : > { %3355 = vmatprep.subr.bf16.mxu0 %v3448_v3 }
 0x693   : > { %3357 = vmatpush3.bf16.msra.mxu0 %v3356_v59 }
 0x694   : > { %3238 = vmatprep.subr.mxu0 %v3450_v6 }
 0x761   : > { %v1513_v37 = vpop.f32.mrb[14].mxu0 }
 0x762   : > { %v1514_v38 = vadd.f32 %v1513_v37, %v1443_v36  ;;  %v3207_v39 = vpop.f32.mrb[15].mxu0 }
 0x764   : > { %v1517_v41 = vmax.f32 %v1514_v38, 0.0 }
 0x766   : > { %3225 = vmatmul.mubr.msk.f32.vlgmr.msra.gmra.mrb[12].mxu1 %vm1522_vm5, %v1517_v41 }
 0x767   : > { %3245 = vmatprep.mubr.msk.f32.mxu1 %vm3449_vm0, %v3450_v6 }
 0x839   : > { %v1592_v44 = vpop.f32.mrb[12].mxu1 }
 0x83a   : > { %v1593_v45 = vadd.f32 %v1592_v44, %v1521_v43  ;;  %v3226_v46 = vpop.f32.mrb[13].mxu1 }
 0x83c   : > { %v1596_v47 = vadd.f32 %v1593_v45, %v1427_v31 }
 0x83e   : > { %v1597_v48 = vsel %vm348_vm1, %v1596_v47, 0.0 }
 0x83f   : > { %1598 = vadd.xlane.f32.xlu1 %v1597_v48 }
 0x8cc   : > { %v1599_v49 = vpop.xlane.xlu1 %1598 }
 0x8cd   : > { %v1600_v50 = vmul.f32 0.03125, %v1599_v49 }
 0x8cf   : > { %v1601_v51 = vsub.f32 %v1596_v47, %v1600_v50 }
 0x8d1   : > { %v1602_v52 = vmul.f32 %v1601_v51, %v1601_v51 }
 0x8d3   : > { %v1603_v53 = vsel %vm348_vm1, %v1602_v52, 0.0 }
 0x8d4   : > { %1604 = vadd.xlane.f32.xlu1 %v1603_v53 }
 0x961   : > { %v1605_v60 = vpop.xlane.xlu1 %1604 }
 0x962   : > { %v1606_v61 = vmul.f32 0.03125, %v1605_v60 }
 0x964   : > { %v1607_v10 = vadd.f32 1e-05, %v1606_v61 }
 0x966   : > { %3418 = vrsqrt.f32 %v1607_v10 }
 0x970   : > { %v3419_v1 = vpop.eup %3418 }
 0x971   : > { %v1609_v2 = vmul.f32 %v3419_v1, %v1601_v51 }
 0x973   : > { %v1614_v5 = vmul.f32 %v1613_v0, %v1609_v2 }
 0x975   : > { %v1619_v7 = vadd.f32 %v1618_v4, %v1614_v5 }
 0x977   : > { %v3776_v8 = vmul.f32 %v1619_v7, %v3727_v29 }
 0x979   : > { %3236 = vmatmul.mubr.msk.f32.vlgmr.msra.gmra.mrb[16].mxu0 %vm348_vm1, %v3776_v8 }
 0x97a   : > { %3240 = vmatprep.mubr.msk.f32.mxu0 %vm3449_vm0, %v3450_v6 }
 0xa4c   : > { %v1706_v15 = vpop.f32.mrb[16].mxu0 }
 0xa4d   : > { %v3789_v12 = vadd.f32 %v1706_v15, %v1636_v11  ;;  %v3237_v16 = vpop.f32.mrb[17].mxu0 }
 0xa4f   : > { %1943 = vrot.lane.b32.xlu0 %v3789_v12, %s3458_s9  ;;  %1711 = vrot.lane.b32.xlu1 %v3789_v12, %s3453_s25  ;;  %s3986_s25 = smov 40  }
 0xa53   : > { %1789 = vrot.lane.b32.xlu1 %v3789_v12, %s3455_s28 }
 0xa57   : > { %1787 = vrot.lane.b32.xlu1 %v3789_v12, %s3452_s24  ;;  %s3985_s24 = smov 48  }
 0xa5b   : > { %1867 = vrot.lane.b32.xlu1 %v3789_v12, %s3454_s26 }
 0xa5f   : > { %1865 = vrot.lane.b32.xlu1 %v3789_v12, %s3457_s30 }
 0xa63   : > { %1945 = vrot.lane.b32.xlu1 %v3789_v12, %s3456_s29 }
 0xac1   : > { %v1712_v14 = vpop.permute.xlu1 %1711  ;;  %v1944_v24 = vpop.permute.xlu0 %1943 }
 0xac2   : > { %3239 = vmatpush3.xpose.msk.msra.mxu0 %vm425_vm3, %v1712_v14 }
 0xac3   : > { %3248 = vmatprep.subr.mxu0 %v3450_v6 }
 0xac5   : > { %3241 = vmatmul.mubr.msk.f32.vlgmr.msra.gmra.mrb[18].mxu0 %vm425_vm3, %v3789_v12  ;;  %v1790_v17 = vpop.permute.xlu1 %1789 }
 0xac6   : > { %3244 = vmatpush3.xpose.msk.msra.mxu1 %vm425_vm3, %v1790_v17  ;;  %3250 = vmatprep.mubr.msk.f32.mxu0 %vm3449_vm0, %v3450_v6 }
 0xac7   : > { %3253 = vmatprep.subr.mxu1 %v3450_v6 }
 0xac9   : > { %v1788_v19 = vpop.permute.xlu1 %1787 }
 0xaca   : > { %3246 = vmatmul.mubr.msk.f32.vlgmr.msra.gmra.mrb[14].mxu1 %vm425_vm3, %v1788_v19 }
 0xacb   : > { %3255 = vmatprep.mubr.msk.f32.mxu1 %vm3449_vm0, %v3450_v6 }
 0xacd   : > { %v1868_v18 = vpop.permute.xlu1 %1867 }
 0xace   : > { %3249 = vmatpush3.xpose.msk.msra.mxu0 %vm425_vm3, %v1868_v18 }
 0xacf   : > { %3258 = vmatprep.subr.mxu0 %v3450_v6 }
 0xad1   : > { %v1866_v20 = vpop.permute.xlu1 %1865 }
 0xad2   : > { %3251 = vmatmul.mubr.msk.f32.vlgmr.msra.gmra.mrb[20].mxu0 %vm425_vm3, %v1866_v20 }
 0xad3   : > { %3260 = vmatprep.mubr.msk.f32.mxu0 %vm3449_vm0, %v3450_v6 }
 0xad5   : > { %v1946_v23 = vpop.permute.xlu1 %1945 }
 0xad6   : > { %3254 = vmatpush3.xpose.msk.msra.mxu1 %vm425_vm3, %v1946_v23 }
 0xad7   : > { %3263 = vmatprep.subr.mxu1 %v3450_v6 }
 0xad9   : > { %3256 = vmatmul.mubr.msk.f32.vlgmr.msra.gmra.mrb[16].mxu1 %vm425_vm3, %v1944_v24 }
 0xada   : > { %3265 = vmatprep.mubr.msk.f32.mxu1 %vm3449_vm0, %v3450_v6 }
 0xb98   : > { %v1783_v25 = vpop.f32.mrb[18].mxu0 }
 0xb99   : > { %v2021_v26 = vmul.f32 0.35355338, %v1783_v25  ;;  %v3242_v27 = vpop.f32.mrb[19].mxu0 }
 0xb9b   : > { %v2025_v30 = vsel %vm3601_vm4, -1e+09, %v2021_v26 }
 0xb9c   : > { %v2029_v31 = vsel %vm425_vm3, %v2025_v30, -inf }
 0xb9d   : > { %v1861_v32 = vpop.f32.mrb[14].mxu1  ;;  %2030 = vmax.xlane.f32.xlu1 %v2029_v31 }
 0xb9e   : > { %v2022_v33 = vmul.f32 0.35355338, %v1861_v32  ;;  %v3247_v34 = vpop.f32.mrb[15].mxu1  ;;  %v3003_v32 = vld [vmem:[%s3976_s4 + $0x20] sm:$0xff] }
 0xb9f   : > { %3264 = vmatpush3.msra.mxu1 %v3003_v32 }
 0xba0   : > { %v2026_v36 = vsel %vm3601_vm4, -1e+09, %v2022_v33  ;;  %3273 = vmatprep.subr.mxu1 %v3450_v6  ;;  %v3004_v33 = vld [vmem:[%s3976_s4 + $0x28] sm:$0xff] }
 0xba1   : > { %v2032_v37 = vsel %vm425_vm3, %v2026_v36, -inf }
 0xba2   : > { %2033 = vmax.xlane.f32.xlu0 %v2032_v37  ;;  %v3005_v37 = vld [vmem:[%s3976_s4 + $0x30] sm:$0xff] }
 0xba5   : > { %v1939_v38 = vpop.f32.mrb[20].mxu0 }
 0xba6   : > { %v2023_v39 = vmul.f32 0.35355338, %v1939_v38  ;;  %v3252_v41 = vpop.f32.mrb[21].mxu0 }
 0xba7   : > { %v3006_v41 = vld [vmem:[%s3976_s4 + $0x38] sm:$0xff] }
 0xba8   : > { %v2027_v43 = vsel %vm3601_vm4, -1e+09, %v2023_v39 }
 0xba9   : > { %v2035_v44 = vsel %vm425_vm3, %v2027_v43, -inf }
 0xbaa   : > { %2036 = vmax.xlane.f32.xlu0 %v2035_v44 }
 0xbac   : > { %v2017_v45 = vpop.f32.mrb[16].mxu1 }
 0xbad   : > { %v2024_v46 = vmul.f32 0.35355338, %v2017_v45  ;;  %v3257_v47 = vpop.f32.mrb[17].mxu1 }
 0xbaf   : > { %v2028_v48 = vsel %vm3601_vm4, -1e+09, %v2024_v46 }
 0xbb0   : > { %v2038_v49 = vsel %vm425_vm3, %v2028_v48, -inf }
 0xbb1   : > { %2039 = vmax.xlane.f32.xlu1 %v2038_v49 }
 0xbc2   : > { %2227 = vrot.lane.b32.xlu1 %v3789_v12, %s3459_s10 }
 0xc2a   : > { %v2031_v50 = vpop.xlane.xlu1 %2030 }
 0xc2b   : > { %v2041_v51 = vsub.f32 %v2025_v30, %v2031_v50 }
 0xc2d   : > { %v2045_v52 = vmul.f32 1.442695, %v2041_v51 }
 0xc2f   : > { %3420 = vpow2.f32 %v2045_v52  ;;  %v2034_v53 = vpop.xlane.xlu0 %2033 }
 0xc30   : > { %v2042_v54 = vsub.f32 %v2026_v36, %v2034_v53 }
 0xc32   : > { %v2047_v55 = vmul.f32 1.442695, %v2042_v54 }
 0xc34   : > { %3422 = vpow2.f32 %v2047_v55 }
 0xc37   : > { %v2037_v1 = vpop.xlane.xlu0 %2036 }
 0xc38   : > { %v2043_v2 = vsub.f32 %v2027_v43, %v2037_v1  ;;  %v3024_v1 = vld [vmem:[%s3977_s5 + $0x20] sm:$0xff] }
 0xc39   : > { %v3421_v56 = vpop.eup %3420 }
 0xc3a   : > { %v2053_v57 = vsel %vm425_vm3, %v3421_v56, 0.0  ;;  %v2049_v4 = vmul.f32 1.442695, %v2043_v2  ;;  %v3025_v2 = vld [vmem:[%s3977_s5 + $0x28] sm:$0xff] }
 0xc3b   : > { %2054 = vadd.xlane.f32.xlu0 %v2053_v57 }
 0xc3e   : > { %v3423_v28 = vpop.eup %3422  ;;  %v2040_v58 = vpop.xlane.xlu1 %2039 }
 0xc3f   : > { %v2044_v59 = vsub.f32 %v2028_v48, %v2040_v58  ;;  %v2056_v60 = vsel %vm425_vm3, %v3423_v28, 0.0  ;;  %v2225_v48 = vrot.slane %v3785_v9, %v944_v40 }
 0xc40   : > { %2057 = vadd.xlane.f32.xlu1 %v2056_v60 }
 0xc41   : > { %v2051_v61 = vmul.f32 1.442695, %v2044_v59 }
 0xc42   : > { %v2228_v15 = vpop.permute.xlu1 %2227 }
 0xc43   : > { %3424 = vpow2.f32 %v2051_v61 }
 0xc44   : > { %3426 = vpow2.f32 %v2049_v4  ;;  %v3359_v4 = vpack.c.bf16 %v3025_v2, %v3024_v1 }
 0xc4d   : > { %v3425_v10 = vpop.eup %3424 }
 0xc4e   : > { %v2062_v0 = vsel %vm425_vm3, %v3425_v10, 0.0  ;;  %v3427_v5 = vpop.eup %3426 }
 0xc4f   : > { %2063 = vadd.xlane.f32.xlu1 %v2062_v0  ;;  %v2059_v7 = vsel %vm425_vm3, %v3427_v5, 0.0 }
 0xc51   : > { %2073 = vrot.lane.b32.xlu0 %v3789_v12, %s3460_s11 }
 0xc60   : > { %2377 = vrot.lane.b32.xlu1 %v3789_v12, %s3985_s24 }
 0xc70   : > { %2060 = vadd.xlane.f32.xlu0 %v2059_v7 }
 0xc86   : > { %2527 = vrot.lane.b32.xlu0 %v3789_v12, %s3986_s25 }
 0xcc8   : > { %v2055_v11 = vpop.xlane.xlu0 %2054 }
 0xcc9   : > { %3428 = vrcp.f32 %v2055_v11  ;;  %v3028_v11 = vld [vmem:[%s3978_s6 + $0x40] sm:$0xff] }
 0xccc   : > { %v2074_v16 = vpop.permute.xlu0 %2073 }
 0xccd   : > { %v2058_v14 = vpop.xlane.xlu1 %2057  ;;  %3259 = vmatpush3.msra.mxu0 %v2074_v16  ;;  %v3030_v16 = vld [vmem:[%s3978_s6 + $0x50] sm:$0xff] }
 0xcce   : > { %3430 = vrcp.f32 %v2058_v14  ;;  %3268 = vmatprep.subr.mxu0 %v3450_v6 }
 0xcd3   : > { %v3429_v17 = vpop.eup %3428 }
 0xcd4   : > { %v2066_v19 = vmul.f32 %v3429_v17, %v3421_v56  ;;  %v3031_v17 = vld [vmem:[%s3978_s6 + $0x58] sm:$0xff] }
 0xcd6   : > { %3261 = vmatmul.mubr.msk.f32.vlgmr.msra.gmra.mrb[22].mxu0 %vm425_vm3, %v2066_v19  ;;  %v3368_v19 = vpack.c.bf16 %v3031_v17, %v3030_v16 }
 0xcd7   : > { %3269 = vmatpush3.msra.mxu0 %v2228_v15  ;;  %3270 = vmatprep.mubr.msk.f32.mxu0 %vm3449_vm0, %v3450_v6  ;;  %v3029_v15 = vld [vmem:[%s3978_s6 + $0x48] sm:$0xff] }
 0xcd8   : > { %v3431_v18 = vpop.eup %3430  ;;  %3278 = vmatprep.subr.mxu0 %v3450_v6  ;;  %v3365_v14 = vpack.c.bf16 %v3029_v15, %v3028_v11 }
 0xcd9   : > { %v2068_v12 = vmul.f32 %v3431_v18, %v3423_v28  ;;  %v3032_v18 = vld [vmem:[%s3978_s6 + $0x60] sm:$0xff] }
 0xcdb   : > { %3271 = vmatmul.mubr.msk.f32.vlgmr.msra.gmra.mrb[24].mxu0 %vm425_vm3, %v2068_v12  ;;  %v3033_v12 = vld [vmem:[%s3978_s6 + $0x68] sm:$0xff] }
 0xcdc   : > { %v2064_v20 = vpop.xlane.xlu1 %2063  ;;  %3280 = vmatprep.mubr.msk.f32.mxu0 %vm3449_vm0, %v3450_v6 }
 0xce0   : > { %v2378_v23 = vpop.permute.xlu1 %2377 }
 0xce1   : > { %3279 = vmatpush3.msra.mxu0 %v2378_v23 }
 0xce2   : > { %3288 = vmatprep.subr.mxu0 %v3450_v6 }
 0xcfd   : > { %v2061_v24 = vpop.xlane.xlu0 %2060 }
 0xcfe   : > { %3432 = vrcp.f32 %v2061_v24 }
 0xcff   : > { %3434 = vrcp.f32 %v2064_v20  ;;  %v3371_v20 = vpack.c.bf16 %v3033_v12, %v3032_v18 }
 0xd01   : > { %v2528_v30 = vpop.permute.xlu0 %2527 }
 0xd08   : > { %v3433_v25 = vpop.eup %3432 }
 0xd09   : > { %v2070_v26 = vmul.f32 %v3433_v25, %v3427_v5  ;;  %v3435_v27 = vpop.eup %3434  ;;  %v3027_v5 = vld [vmem:[%s3977_s5 + $0x38] sm:$0xff] }
 0xd0a   : > { %v2072_v31 = vmul.f32 %v3435_v27, %v3425_v10 }
 0xd0b   : > { %3281 = vmatmul.mubr.msk.f32.vlgmr.msra.gmra.mrb[26].mxu0 %vm425_vm3, %v2070_v26  ;;  %v2694_v26 = vrot.slane %v3785_v9, %v1414_v21  ;;  %v3035_v21 = vld [vmem:[%s3978_s6 + $0x78] sm:$0xff] }
 0xd0c   : > { %3289 = vmatpush3.msra.mxu0 %v2528_v30  ;;  %3290 = vmatprep.mubr.msk.f32.mxu0 %vm3449_vm0, %v3450_v6  ;;  %v2699_v30 = vrot.slane %v3785_v9, %v1419_v22  ;;  %v2719_v22 = vrot.slane %v3785_v9, %v1442_v35 }
 0xd0d   : > { %3358 = vmatprep.subr.bf16.mxu0 %v3448_v3 }
 0xd0f   : > { %3291 = vmatmul.mubr.msk.f32.vlgmr.msra.gmra.mrb[28].mxu0 %vm425_vm3, %v2072_v31 }
 0xd10   : > { %3306 = vmatprep.mubr.msk.f32.mxu0 %vm3449_vm0, %v3450_v6  ;;  %3360 = vmatpush3.bf16.msra.mxu0 %v3359_v4 }
 0xd11   : > { %3361 = vmatprep.subr.bf16.mxu0 %v3448_v3 }
 0xda9   : > { %v2145_v34 = vpop.f32.mrb[22].mxu0 }
 0xdaa   : > { %v3262_v36 = vpop.f32.mrb[23].mxu0  ;;  %3266 = vmatmul.mubr.msk.f32.vlgmr.msra.gmra.mrb[18].mxu1 %vm425_vm3, %v2145_v34 }
 0xdab   : > { %3274 = vmatpush3.msra.mxu1 %v3004_v33  ;;  %3275 = vmatprep.mubr.msk.f32.mxu1 %vm3449_vm0, %v3450_v6 }
 0xdac   : > { %3283 = vmatprep.subr.mxu1 %v3450_v6 }
 0xdae   : > { %v2299_v38 = vpop.f32.mrb[24].mxu0 }
 0xdaf   : > { %v3272_v39 = vpop.f32.mrb[25].mxu0  ;;  %3276 = vmatmul.mubr.msk.f32.vlgmr.msra.gmra.mrb[20].mxu1 %vm425_vm3, %v2299_v38 }
 0xdb0   : > { %3284 = vmatpush3.msra.mxu1 %v3005_v37  ;;  %3285 = vmatprep.mubr.msk.f32.mxu1 %vm3449_vm0, %v3450_v6 }
 0xdb1   : > { %3293 = vmatprep.subr.mxu1 %v3450_v6 }
 0xdde   : > { %v2449_v43 = vpop.f32.mrb[26].mxu0 }
 0xddf   : > { %v3282_v44 = vpop.f32.mrb[27].mxu0  ;;  %3286 = vmatmul.mubr.msk.f32.vlgmr.msra.gmra.mrb[22].mxu1 %vm425_vm3, %v2449_v43  ;;  %v2797_v43 = vrot.slane %v3785_v9, %v1520_v42  ;;  %v2888_v42 = vrot.slane %v3785_v9, %v1612_v62 }
 0xde0   : > { %3294 = vmatpush3.msra.mxu1 %v3006_v41  ;;  %3295 = vmatprep.mubr.msk.f32.mxu1 %vm3449_vm0, %v3450_v6 }
 0xde1   : > { %3364 = vmatprep.subr.bf16.mxu1 %v3448_v3 }
 0xde2   : > { %v2599_v45 = vpop.f32.mrb[28].mxu0 }
 0xde3   : > { %v3292_v46 = vpop.f32.mrb[29].mxu0  ;;  %3296 = vmatmul.mubr.msk.f32.vlgmr.msra.gmra.mrb[24].mxu1 %vm425_vm3, %v2599_v45 }
 0xde4   : > { %3325 = vmatprep.mubr.msk.f32.mxu1 %vm3449_vm0, %v3450_v6  ;;  %3366 = vmatpush3.bf16.msra.mxu1 %v3365_v14 }
 0xde5   : > { %3367 = vmatprep.subr.bf16.mxu1 %v3448_v3 }
 0xde8   : > { %3369 = vmatpush3.bf16.msra.mxu1 %v3368_v19 }
 0xde9   : > { %3370 = vmatprep.subr.bf16.mxu1 %v3448_v3 }
 0xdec   : > { %3372 = vmatpush3.bf16.msra.mxu1 %v3371_v20 }
 0xded   : > { %3373 = vmatprep.subr.bf16.mxu1 %v3448_v3  ;;  %v3034_v3 = vld [vmem:[%s3978_s6 + $0x70] sm:$0xff] }
 0xdee   : > { %v3374_v36 = vpack.c.bf16 %v3035_v21, %v3034_v3 }
 0xdf0   : > { %3375 = vmatpush3.bf16.msra.mxu1 %v3374_v36 }
 0xe7d   : > { %v2218_v47 = vpop.f32.mrb[18].mxu1 }
 0xe7e   : > { %v3267_v49 = vpop.f32.mrb[19].mxu1  ;;  %v2226_v50 = vadd.f32 %v2225_v48, %v2218_v47 }
 0xe82   : > { %v2372_v51 = vpop.f32.mrb[20].mxu1 }
 0xe83   : > { %v2376_v52 = vadd.f32 %v2372_v51, %v2226_v50  ;;  %v3277_v53 = vpop.f32.mrb[21].mxu1 }
 0xeb2   : > { %v2522_v54 = vpop.f32.mrb[22].mxu1 }
 0xeb3   : > { %v2526_v55 = vadd.f32 %v2522_v54, %v2376_v52  ;;  %v3287_v56 = vpop.f32.mrb[23].mxu1 }
 0xeb6   : > { %v2672_v57 = vpop.f32.mrb[24].mxu1 }
 0xeb7   : > { %v2676_v28 = vadd.f32 %v2672_v57, %v2526_v55  ;;  %v3297_v58 = vpop.f32.mrb[25].mxu1  ;;  %v2893_v57 = vrot.slane %v3785_v9, %v1617_v63 }
 0xeb9   : > { %v2677_v59 = vadd.f32 %v2676_v28, %v3776_v8  ;;  %v3026_v8 = vld [vmem:[%s3977_s5 + $0x30] sm:$0xff] }
 0xeba   : > { %v3362_v7 = vpack.c.bf16 %v3027_v5, %v3026_v8 }
 0xebb   : > { %v2678_v6 = vsel %vm348_vm1, %v2677_v59, 0.0 }
 0xebc   : > { %2679 = vadd.xlane.f32.xlu1 %v2678_v6  ;;  %3363 = vmatpush3.bf16.msra.mxu0 %v3362_v7 }
 0xf49   : > { %v2680_v60 = vpop.xlane.xlu1 %2679 }
 0xf4a   : > { %v2681_v61 = vmul.f32 0.03125, %v2680_v60 }
 0xf4c   : > { %v2682_v10 = vsub.f32 %v2677_v59, %v2681_v61 }
 0xf4e   : > { %v2683_v40 = vmul.f32 %v2682_v10, %v2682_v10 }
 0xf50   : > { %v2684_v0 = vsel %vm348_vm1, %v2683_v40, 0.0 }
 0xf51   : > { %2685 = vadd.xlane.f32.xlu0 %v2684_v0 }
 0xfde   : > { %v2686_v23 = vpop.xlane.xlu0 %2685 }
 0xfdf   : > { %v2687_v24 = vmul.f32 0.03125, %v2686_v23 }
 0xfe1   : > { %v2688_v25 = vadd.f32 1e-05, %v2687_v24 }
 0xfe3   : > { %3436 = vrsqrt.f32 %v2688_v25 }
 0xfed   : > { %v3437_v27 = vpop.eup %3436 }
 0xfee   : > { %v2690_v31 = vmul.f32 %v3437_v27, %v2682_v10 }
 0xff0   : > { %v2695_v32 = vmul.f32 %v2694_v26, %v2690_v31 }
 0xff2   : > { %v2700_v33 = vadd.f32 %v2699_v30, %v2695_v32 }
 0xff4   : > { %v2701_v34 = vmul.f32 %v2700_v33, %v3727_v29 }
 0xff6   : > { %3307 = vmatmul.mubr.msk.f32.vlgmr.msra.gmra.mrb[30].mxu0 %vm348_vm1, %v2701_v34 }
0x10c9   : > { %v2789_v37 = vpop.f32.mrb[30].mxu0 }
0x10ca   : > { %v2790_v38 = vadd.f32 %v2789_v37, %v2719_v22  ;;  %v3308_v39 = vpop.f32.mrb[31].mxu0 }
0x10cc   : > { %v2793_v41 = vmax.f32 %v2790_v38, 0.0 }
0x10ce   : > { %3326 = vmatmul.mubr.msk.f32.vlgmr.msra.gmra.mrb[26].mxu1 %vm1522_vm5, %v2793_v41 }
0x11a1   : > { %v2867_v44 = vpop.f32.mrb[26].mxu1 }
0x11a2   : > { %v2868_v45 = vadd.f32 %v2867_v44, %v2797_v43  ;;  %v3327_v46 = vpop.f32.mrb[27].mxu1 }
0x11a4   : > { %v2871_v47 = vadd.f32 %v2868_v45, %v2701_v34 }
0x11a6   : > { %v2872_v48 = vsel %vm348_vm1, %v2871_v47, 0.0 }
0x11a7   : > { %2873 = vadd.xlane.f32.xlu0 %v2872_v48 }
0x1234   : > { %v2874_v49 = vpop.xlane.xlu0 %2873 }
0x1235   : > { %v2875_v35 = vmul.f32 0.03125, %v2874_v49 }
0x1237   : > { %v2876_v50 = vsub.f32 %v2871_v47, %v2875_v35 }
0x1239   : > { %v2877_v51 = vmul.f32 %v2876_v50, %v2876_v50 }
0x123b   : > { %v2878_v52 = vsel %vm348_vm1, %v2877_v51, 0.0 }
0x123c   : > { %2879 = vadd.xlane.f32.xlu1 %v2878_v52 }
0x12c9   : > { %v2880_v53 = vpop.xlane.xlu1 %2879 }
0x12ca   : > { %v2881_v54 = vmul.f32 0.03125, %v2880_v53 }
0x12cc   : > { %v2882_v55 = vadd.f32 1e-05, %v2881_v54 }
0x12ce   : > { %3438 = vrsqrt.f32 %v2882_v55 }
0x12d8   : > { %v3439_v56 = vpop.eup %3438 }
0x12d9   : > { %v2884_v28 = vmul.f32 %v3439_v56, %v2876_v50 }
0x12db   : > { %v2889_v58 = vmul.f32 %v2888_v42, %v2884_v28 }
0x12dd   : > { %v2894_v59 = vadd.f32 %v2893_v57, %v2889_v58 }
0x12df   : > { %v2895_v6 = vmul.f32 %v2894_v59, %v3727_v29 }
0x12e1   : > { %2896 = vst.msk [vmem:[%s331_s23] sm:$0xff] %vm348_vm1, %v2895_v6 }
0x12e2 PF: > { %s18_s27 = sadd.s32 1, %s3446_s27  }
0x12e3   : > { %p15_p4 = scmp.ge.s32.totalorder %s18_s27, 4  }
0x12e5   :  { %17 = sbr.rel (!%p15_p4) target bundleno = 1 (0x1), region = 93 }

// kernel: transformer_forward.3
= control target key start
LH: loop header
LB: loop body
LE: loop exit
PB: predicated region body
PF: predicated region fallthrough
CT: control target
= control target key end

     0   :  { %s6554_s25 = smov 0   ;;  %s7340_s0 = inlined_call_operand.vmem [shape: f32[2,7,32], index: 0, kind: input, shape index: {}]   ;;  %s7341_s1 = inlined_call_operand.vmem [shape: f32[2,8,32], index: 1, kind: input, shape index: {}]   ;;  %s7342_s2 = inlined_call_operand.vmem [shape: f32[2,1,8], index: 2, kind: input, shape index: {}]   ;;  %s7343_s3 = inlined_call_operand.vmem [shape: f32[2,1,7], index: 3, kind: input, shape index: {}]   ;;  %s7344_s4 = inlined_call_operand.vmem [shape: f32[2,7,1], index: 4, kind: input, shape index: {}]   ;;  %s7345_s5 = inlined_call_operand.vmem [shape: f32[2,32,96], index: 5, kind: input, shape index: {}]   ;;  %s7346_s6 = inlined_call_operand.vmem [shape: f32[2,32,32], index: 6, kind: input, shape index: {}]   ;;  %s7347_s7 = inlined_call_operand.vmem [shape: f32[2,32,96], index: 7, kind: input, shape index: {}]   ;;  %s7348_s8 = inlined_call_operand.vmem [shape: f32[2,32,32], index: 8, kind: input, shape index: {}]   ;;  %s7349_s9 = inlined_call_operand.vmem [shape: f32[2,32,64], index: 9, kind: input, shape index: {}]   ;;  %s7350_s10 = inlined_call_operand.vmem [shape: f32[2,64,32], index: 10, kind: input, shape index: {}]   ;;  %s7351_s11 = inlined_call_operand.vmem [shape: f32[2,12,96], index: 11, kind: input, shape index: {}]   ;;  %s7352_s12 = inlined_call_operand.vmem [shape: f32[32,128], index: 12, kind: input, shape index: {}]   ;;  %s7353_s13 = inlined_call_operand.vmem [shape: f32[2,7,128], index: 13, kind: output, shape index: {}]  }
   0x1 LB: > { %s5602_s26 = sadd.s32 4294967295, %s6467_s25   ;;  %p5606_p0 = scmp.ge.s32.totalorder %s6467_s25, 1  ;;  %s6467_s25 = sphi %s6554_s25, %s23_s25  }
   0x2   : > { %p420_p1 = scmp.lt.s32.totalorder %s6467_s25, 3 }
   0x4   : > { %p421_p2 = pnand %p5606_p0, %p420_p1 }
   0x5   : > { %v505_v0 = vld [vmem:[%s7345_s5] sm:$0xff] (!%p421_p2)  ;;  %v506_v1 = vld [vmem:[%s7345_s5 + $0x8] sm:$0xff] (!%p421_p2)  ;;  %v507_v2 = vld [vmem:[%s7345_s5 + $0x10] sm:$0xff] (!%p421_p2)  ;;  %v6469_v3 = vmov (!%p421_p2), 0.0|0.0   ;;  %vm6470_vm0 = vmmov (!%p421_p2), 0   ;;  %v6471_v6 = vmov (!%p421_p2), 0.0   ;;  %v513_v14 = vlaneseq (!%p421_p2) }
   0x6   : > { %424 = sbr.rel (%p421_p2) target bundleno = 8219 (0x201b), region = 72  ;;  %6262 = vmatprep.subr.bf16.mxu0 (!%p421_p2), %v6469_v3  ;;  %v6263_v4 = vpack.c.bf16 (!%p421_p2), %v506_v1, %v505_v0  ;;  %v508_v5 = vld [vmem:[%s7345_s5 + $0x18] sm:$0xff] (!%p421_p2)  ;;  %5893 = vmatprep.mubr.msk.f32.mxu0 (!%p421_p2), %vm6470_vm0, %v6471_v6  ;;  %p476_p3 = scmp.lt.s32.totalorder (!%p421_p2), %s5602_s26, 1  ;;  %v6472_v8 = vmov (!%p421_p2), 0   ;;  %vm517_vm1 = vcmask (!%p421_p2), 261120   ;;  %v6610_v17 = vld [vmem:[%s7351_s11] sm:$0xff] (!%p421_p2) }
   0x7   : > { %5896 = vmatprep.subr.mxu1 (!%p421_p2), %v6471_v6  ;;  %5898 = vmatprep.mubr.msk.f32.mxu1 (!%p421_p2), %vm6470_vm0, %v6471_v6  ;;  %v6266_v7 = vpack.c.bf16 (!%p421_p2), %v508_v5, %v507_v2  ;;  %v6602_v15 = vshrl.u32 (!%p421_p2), %v513_v14, 7  ;;  %s6473_s14 = smov (!%p421_p2), 120   ;;  %s6474_s15 = smov (!%p421_p2), 96   ;;  %vm594_vm4 = vcmask (!%p421_p2), 64512   ;;  %v911_v29 = vand.u32 (!%p421_p2), 127, %v513_v14 }
   0x8   : > { %6264 = vmatpush3.bf16.msra.mxu0 (!%p421_p2), %v6263_v4  ;;  %6368 = vset.pattern.permute.xlu1 (!%p421_p2), %v6472_v8  ;;  %s6475_s16 = smov (!%p421_p2), 80   ;;  %s6476_s17 = smov (!%p421_p2), 88   ;;  %vm924_vm8 = vcmask (!%p421_p2), 55296   ;;  %vm975_vm9 = vcmask (!%p421_p2), 1046528   ;;  %vm971_vm10 = vcmask (!%p421_p2), 56320   ;;  %vm1580_vm11 = vcmask (!%p421_p2), 260096  }
   0x9   : > { %6265 = vmatprep.subr.bf16.mxu0 (!%p421_p2), %v6469_v3  ;;  %6384 = vset.pattern.permute.xlu0 (!%p421_p2), %v6472_v8  ;;  %v6605_v16 = vsub.s32 (!%p421_p2), 0, %v6602_v15  ;;  %s7358_s19 = smov (!%p421_p2), 72   ;;  %s6478_s20 = smov (!%p421_p2), 112   ;;  %vm912_vm5 = vcmp.gt.s32.totalorder (!%p421_p2), %v911_v29, %v6602_v15  ;;  %vm2114_vm13 = vcmask (!%p421_p2), 63488   ;;  %vm2882_vm14 = vcmask (!%p421_p2), 523264  }
   0xa   : > { %s7354_s22 = smov (!%p421_p2), 56   ;;  %s7357_s23 = smov (!%p421_p2), 64  }
   0xb   : > { %v516_v18 = vrot.slane (!%p421_p2), %v6610_v17, %v6605_v16  ;;  %s7355_s27 = smov (!%p421_p2), 40   ;;  %s7371_s30 = smov (!%p421_p2), 56  }
   0xc   : > { %6267 = vmatpush3.bf16.msra.mxu0 (!%p421_p2), %v6266_v7 }
   0xd   : > { %s7373_s26 = smov (!%p476_p3, %s5602_s26), 1  ;;  %5906 = vmatprep.subr.mxu0 %v6471_v6 }
   0xe   : > { %s6581_s18 = sshll.u32 %s7373_s26, 3  ;;  %s486_s21 = scalar_lea.vmem %s7342_s2, %s7373_s26 }
   0xf   : > { %s479_s24 = scalar_lea.vmem %s7340_s0, %s6581_s18  ;;  %s489_s29 = scalar_lea.vmem %s7343_s3, %s7373_s26  ;;  %v500_v9 = vld [vmem:[%s486_s21] sm:$0x1] }
  0x10   : > { %v6593_v10 = vld [vmem:[%s479_s24] sm:$0x7f]  ;;  %vm2103_vm2 = vcmp.gt.f32.partialorder %v500_v9, 0.0  ;;  %s7360_s21 = smov 104   ;;  %s7356_s24 = smov 48  }
  0x11   : > { %v501_v11 = vld [vmem:[%s489_s29] sm:$0x1]  ;;  %v6595_v12 = vsel %vm2103_vm2, 1, %v6472_v8  ;;  %5894 = vmatmul.mubr.msk.f32.vlgmr.msra.gmra.mrb[0].mxu0 %vm517_vm1, %v6593_v10  ;;  %s493_s28 = scalar_lea.vmem %s7344_s4, %s6581_s18  ;;  %s7367_s29 = smov 104  }
  0x12   : > { %vm907_vm3 = vcmp.gt.f32.partialorder %v501_v11, 0.0  ;;  %5908 = vmatprep.mubr.msk.f32.mxu0 %vm6470_vm0, %v6471_v6  ;;  %s7368_s26 = smov 64  }
  0x13   : > { %v913_v13 = vsel %vm907_vm3, 1, %v6472_v8 }
  0x14   : > { %v917_v30 = vrot.slane %v913_v13, %v6605_v16 }
  0x16   : > { %vm918_vm6 = vcmp.eq.s32.totalorder %v917_v30, 1 }
  0x17   : > { %vm6653_vm7 = vmor %vm918_vm6, %vm912_vm5 }
  0xe4   : > { %v587_v19 = vpop.f32.mrb[0].mxu0 }
  0xe5   : > { %v6614_v20 = vadd.f32 %v587_v19, %v516_v18  ;;  %v5895_v21 = vpop.f32.mrb[1].mxu0 }
  0xe7   : > { %669 = vrot.lane.b32.xlu1 %v6614_v20, %s6473_s14  ;;  %592 = vrot.lane.b32.xlu0 %v6614_v20, %s6474_s15 }
  0xeb   : > { %749 = vrot.lane.b32.xlu1 %v6614_v20, %s6475_s16  ;;  %671 = vrot.lane.b32.xlu0 %v6614_v20, %s6476_s17 }
  0xef   : > { %827 = vrot.lane.b32.xlu1 %v6614_v20, %s7358_s19  ;;  %747 = vrot.lane.b32.xlu0 %v6614_v20, %s6478_s20 }
  0xf3   : > { %825 = vrot.lane.b32.xlu0 %v6614_v20, %s7360_s21 }
 0x159   : > { %v670_v22 = vpop.permute.xlu1 %669  ;;  %v593_v23 = vpop.permute.xlu0 %592 }
 0x15a   : > { %5897 = vmatpush3.xpose.msk.msra.mxu1 %vm594_vm4, %v593_v23 }
 0x15b   : > { %5901 = vmatprep.subr.mxu1 %v6471_v6 }
 0x15d   : > { %v750_v24 = vpop.permute.xlu1 %749  ;;  %5899 = vmatmul.mubr.msk.f32.vlgmr.msra.gmra.mrb[0].mxu1 %vm594_vm4, %v6614_v20  ;;  %v672_v25 = vpop.permute.xlu0 %671 }
 0x15e   : > { %5902 = vmatpush3.xpose.msk.msra.mxu1 %vm594_vm4, %v672_v25  ;;  %5907 = vmatpush3.xpose.msk.msra.mxu0 %vm594_vm4, %v750_v24 }
 0x15f   : > { %5903 = vmatprep.mubr.msk.f32.mxu1 %vm6470_vm0, %v6471_v6  ;;  %5911 = vmatprep.subr.mxu1 %v6471_v6 }
 0x160   : > { %5916 = vmatprep.subr.mxu0 %v6471_v6 }
 0x161   : > { %v828_v26 = vpop.permute.xlu1 %827  ;;  %5904 = vmatmul.mubr.msk.f32.vlgmr.msra.gmra.mrb[2].mxu1 %vm594_vm4, %v670_v22  ;;  %v748_v27 = vpop.permute.xlu0 %747 }
 0x162   : > { %5909 = vmatmul.mubr.msk.f32.vlgmr.msra.gmra.mrb[2].mxu0 %vm594_vm4, %v748_v27  ;;  %5912 = vmatpush3.xpose.msk.msra.mxu1 %vm594_vm4, %v828_v26 }
 0x163   : > { %5913 = vmatprep.mubr.msk.f32.mxu1 %vm6470_vm0, %v6471_v6  ;;  %5918 = vmatprep.mubr.msk.f32.mxu0 %vm6470_vm0, %v6471_v6 }
 0x164   : > { %5921 = vmatprep.subr.mxu1 %v6471_v6 }
 0x165   : > { %v826_v28 = vpop.permute.xlu0 %825 }
 0x166   : > { %5914 = vmatmul.mubr.msk.f32.vlgmr.msra.gmra.mrb[4].mxu1 %vm594_vm4, %v826_v28 }
 0x167   : > { %5923 = vmatprep.mubr.msk.f32.mxu1 %vm6470_vm0, %v6471_v6 }
 0x230   : > { %v665_v31 = vpop.f32.mrb[0].mxu1 }
 0x231   : > { %v903_v33 = vmul.f32 0.35355338, %v665_v31  ;;  %v5900_v34 = vpop.f32.mrb[1].mxu1  ;;  %v509_v31 = vld [vmem:[%s7346_s6] sm:$0xff] }
 0x232   : > { %5922 = vmatpush3.msra.mxu1 %v509_v31  ;;  %v6773_v31 = vsub.s32 3, %v6602_v15 }
 0x233   : > { %v920_v35 = vsel %vm6653_vm7, -1e+09, %v903_v33  ;;  %5931 = vmatprep.subr.mxu1 %v6471_v6  ;;  %v510_v33 = vld [vmem:[%s7346_s6 + $0x8] sm:$0xff] }
 0x234   : > { %v743_v36 = vpop.f32.mrb[2].mxu1  ;;  %v925_v37 = vsel %vm924_vm8, %v920_v35, -inf }
 0x235   : > { %v904_v38 = vmul.f32 0.35355338, %v743_v36  ;;  %926 = vmax.xlane.f32.xlu1 %v925_v37  ;;  %v5905_v39 = vpop.f32.mrb[3].mxu1  ;;  %v821_v40 = vpop.f32.mrb[2].mxu0  ;;  %v511_v36 = vld [vmem:[%s7346_s6 + $0x10] sm:$0xff] }
 0x236   : > { %v905_v41 = vmul.f32 0.35355338, %v821_v40  ;;  %v5910_v42 = vpop.f32.mrb[3].mxu0  ;;  %v512_v39 = vld [vmem:[%s7346_s6 + $0x18] sm:$0xff] }
 0x237   : > { %v921_v43 = vsel %vm6653_vm7, -1e+09, %v904_v38 }
 0x238   : > { %v928_v44 = vsel %vm924_vm8, %v921_v43, -inf  ;;  %v922_v46 = vsel %vm6653_vm7, -1e+09, %v905_v41 }
 0x239   : > { %929 = vmax.xlane.f32.xlu0 %v928_v44  ;;  %v899_v45 = vpop.f32.mrb[4].mxu1  ;;  %v931_v49 = vsel %vm924_vm8, %v922_v46, -inf  ;;  %v6730_v44 = vsub.s32 1, %v6602_v15 }
 0x23a   : > { %v906_v47 = vmul.f32 0.35355338, %v899_v45  ;;  %v5915_v48 = vpop.f32.mrb[5].mxu1 }
 0x23b   : > { %v1124_v45 = vrot.slane %v6610_v17, %v6730_v44 }
 0x23c   : > { %v923_v50 = vsel %vm6653_vm7, -1e+09, %v906_v47 }
 0x23d   : > { %932 = vmax.xlane.f32.xlu0 %v931_v49  ;;  %v934_v51 = vsel %vm924_vm8, %v923_v50, -inf }
 0x23e   : > { %935 = vmax.xlane.f32.xlu1 %v934_v51 }
 0x24f   : > { %1126 = vrot.lane.b32.xlu1 %v6614_v20, %s7354_s22  ;;  %s7370_s22 = smov 40  }
 0x2c2   : > { %v927_v52 = vpop.xlane.xlu1 %926 }
 0x2c3   : > { %v937_v53 = vsub.f32 %v920_v35, %v927_v52 }
 0x2c5   : > { %v941_v54 = vmul.f32 1.442695, %v937_v53 }
 0x2c6   : > { %v930_v55 = vpop.xlane.xlu0 %929 }
 0x2c7   : > { %6385 = vpow2.f32 %v941_v54  ;;  %v938_v56 = vsub.f32 %v921_v43, %v930_v55 }
 0x2c9   : > { %v943_v57 = vmul.f32 1.442695, %v938_v56 }
 0x2ca   : > { %v933_v4 = vpop.xlane.xlu0 %932 }
 0x2cb   : > { %6387 = vpow2.f32 %v943_v57  ;;  %v936_v58 = vpop.xlane.xlu1 %935  ;;  %v939_v5 = vsub.f32 %v922_v46, %v933_v4 }
 0x2cc   : > { %v940_v59 = vsub.f32 %v923_v50, %v936_v58 }
 0x2cd   : > { %v945_v7 = vmul.f32 1.442695, %v939_v5 }
 0x2ce   : > { %v947_v60 = vmul.f32 1.442695, %v940_v59 }
 0x2cf   : > { %v1127_v11 = vpop.permute.xlu1 %1126 }
 0x2d0   : > { %6389 = vpow2.f32 %v947_v60  ;;  %v1611_v60 = vld [vmem:[%s7347_s7] sm:$0xff] }
 0x2d1   : > { %v6386_v61 = vpop.eup %6385  ;;  %6391 = vpow2.f32 %v945_v7 }
 0x2d2   : > { %v949_v62 = vsel %vm924_vm8, %v6386_v61, 0.0 }
 0x2d3   : > { %950 = vadd.xlane.f32.xlu0 %v949_v62  ;;  %v502_v62 = vld [vmem:[%s493_s28] sm:$0x7f] }
 0x2d5   : > { %v6388_v63 = vpop.eup %6387 }
 0x2d6   : > { %v952_v0 = vsel %vm924_vm8, %v6388_v63, 0.0 }
 0x2d7   : > { %953 = vadd.xlane.f32.xlu1 %v952_v0 }
 0x2da   : > { %v6390_v1 = vpop.eup %6389 }
 0x2db   : > { %v958_v2 = vsel %vm924_vm8, %v6390_v1, 0.0  ;;  %v6392_v8 = vpop.eup %6391 }
 0x2dc   : > { %959 = vadd.xlane.f32.xlu1 %v958_v2  ;;  %v955_v9 = vsel %vm924_vm8, %v6392_v8, 0.0 }
 0x2e9   : > { %969 = vrot.lane.b32.xlu0 %v6614_v20, %s7357_s23 }
 0x2ed   : > { %1277 = vrot.lane.b32.xlu1 %v6614_v20, %s7356_s24  ;;  %s483_s24 = scalar_lea.vmem %s7341_s1, %s6581_s18 }
 0x308   : > { %956 = vadd.xlane.f32.xlu0 %v955_v9 }
 0x31e   : > { %1428 = vrot.lane.b32.xlu0 %v6614_v20, %s7355_s27  ;;  %s7366_s27 = smov 72  }
 0x360   : > { %v951_v13 = vpop.xlane.xlu0 %950 }
 0x361   : > { %6393 = vrcp.f32 %v951_v13  ;;  %v1621_v13 = vsub.s32 4, %v6602_v15 }
 0x364   : > { %v954_v14 = vpop.xlane.xlu1 %953  ;;  %v970_v18 = vpop.permute.xlu0 %969 }
 0x365   : > { %6395 = vrcp.f32 %v954_v14  ;;  %5917 = vmatpush3.msk.msra.mxu0 %vm975_vm9, %v970_v18  ;;  %v1622_v14 = vrot.slane %v6610_v17, %v1621_v13 }
 0x366   : > { %5926 = vmatprep.subr.mxu0 %v6471_v6 }
 0x369   : > { %v960_v22 = vpop.xlane.xlu1 %959 }
 0x36b   : > { %v6394_v19 = vpop.eup %6393 }
 0x36c   : > { %v962_v21 = vmul.f32 %v6394_v19, %v6386_v61  ;;  %v1612_v61 = vld [vmem:[%s7347_s7 + $0x8] sm:$0xff] }
 0x36d   : > { %v1278_v24 = vpop.permute.xlu1 %1277  ;;  %v6269_v0 = vpack.c.bf16 %v1612_v61, %v1611_v60 }
 0x36e   : > { %5919 = vmatmul.mubr.msk.f32.vlgmr.msra.gmra.mrb[4].mxu0 %vm971_vm10, %v962_v21 }
 0x36f   : > { %v6396_v23 = vpop.eup %6395  ;;  %5927 = vmatpush3.msk.msra.mxu0 %vm975_vm9, %v1127_v11  ;;  %5928 = vmatprep.mubr.msk.f32.mxu0 %vm6470_vm0, %v6471_v6 }
 0x370   : > { %v964_v20 = vmul.f32 %v6396_v23, %v6388_v63  ;;  %5936 = vmatprep.subr.mxu0 %v6471_v6  ;;  %v6363_v63 = vpack.i.bf16 %v1612_v61, %v1611_v60 }
 0x372   : > { %5929 = vmatmul.mubr.msk.f32.vlgmr.msra.gmra.mrb[6].mxu0 %vm971_vm10, %v964_v20 }
 0x373   : > { %5937 = vmatpush3.msk.msra.mxu0 %vm975_vm9, %v1278_v24  ;;  %5938 = vmatprep.mubr.msk.f32.mxu0 %vm6470_vm0, %v6471_v6 }
 0x374   : > { %5946 = vmatprep.subr.mxu0 %v6471_v6 }
 0x395   : > { %v957_v25 = vpop.xlane.xlu0 %956 }
 0x396   : > { %6397 = vrcp.f32 %v957_v25 }
 0x397   : > { %6399 = vrcp.f32 %v960_v22 }
 0x399   : > { %v1429_v29 = vpop.permute.xlu0 %1428 }
 0x3a0   : > { %v6398_v26 = vpop.eup %6397 }
 0x3a1   : > { %v966_v27 = vmul.f32 %v6398_v26, %v6392_v8  ;;  %v6400_v28 = vpop.eup %6399 }
 0x3a2   : > { %v968_v30 = vmul.f32 %v6400_v28, %v6390_v1  ;;  %v1614_v1 = vld [vmem:[%s7347_s7 + $0x18] sm:$0xff] }
 0x3a3   : > { %5939 = vmatmul.mubr.msk.f32.vlgmr.msra.gmra.mrb[8].mxu0 %vm971_vm10, %v966_v27 }
 0x3a4   : > { %5947 = vmatpush3.msk.msra.mxu0 %vm975_vm9, %v1429_v29  ;;  %5948 = vmatprep.mubr.msk.f32.mxu0 %vm6470_vm0, %v6471_v6 }
 0x3a5   : > { %6268 = vmatprep.subr.bf16.mxu0 %v6469_v3 }
 0x3a7   : > { %5949 = vmatmul.mubr.msk.f32.vlgmr.msra.gmra.mrb[10].mxu0 %vm971_vm10, %v968_v30  ;;  %v6765_v30 = vsub.s32 2, %v6602_v15 }
 0x3a8   : > { %5964 = vmatprep.mubr.msk.f32.mxu0 %vm6470_vm0, %v6471_v6  ;;  %6270 = vmatpush3.bf16.msra.mxu0 %v6269_v0 }
 0x3a9   : > { %6271 = vmatprep.subr.bf16.mxu0 %v6469_v3 }
 0x441   : > { %v1044_v34 = vpop.f32.mrb[4].mxu0 }
 0x442   : > { %v5920_v35 = vpop.f32.mrb[5].mxu0  ;;  %5924 = vmatmul.mubr.msk.f32.vlgmr.msra.gmra.mrb[6].mxu1 %vm594_vm4, %v1044_v34  ;;  %v1598_v34 = vrot.slane %v6610_v17, %v6765_v30 }
 0x443   : > { %5932 = vmatpush3.msra.mxu1 %v510_v33  ;;  %5933 = vmatprep.mubr.msk.f32.mxu1 %vm6470_vm0, %v6471_v6  ;;  %v6775_v33 = vld [vmem:[%s483_s24] sm:$0xff] }
 0x444   : > { %5941 = vmatprep.subr.mxu1 %v6471_v6 }
 0x445   : > { %v1199_v37 = vpop.f32.mrb[6].mxu0 }
 0x446   : > { %v5930_v38 = vpop.f32.mrb[7].mxu0  ;;  %5934 = vmatmul.mubr.msk.f32.vlgmr.msra.gmra.mrb[8].mxu1 %vm594_vm4, %v1199_v37  ;;  %v1603_v37 = vrot.slane %v6610_v17, %v6773_v31 }
 0x447   : > { %5942 = vmatpush3.msra.mxu1 %v511_v36  ;;  %5943 = vmatprep.mubr.msk.f32.mxu1 %vm6470_vm0, %v6471_v6 }
 0x448   : > { %5951 = vmatprep.subr.mxu1 %v6471_v6 }
 0x476   : > { %v1350_v40 = vpop.f32.mrb[8].mxu0 }
 0x477   : > { %v5940_v41 = vpop.f32.mrb[9].mxu0  ;;  %5944 = vmatmul.mubr.msk.f32.vlgmr.msra.gmra.mrb[10].mxu1 %vm594_vm4, %v1350_v40 }
 0x478   : > { %5952 = vmatpush3.msra.mxu1 %v512_v39  ;;  %5953 = vmatprep.mubr.msk.f32.mxu1 %vm6470_vm0, %v6471_v6 }
 0x479   : > { %6274 = vmatprep.subr.bf16.mxu1 %v6469_v3 }
 0x47a   : > { %v1501_v42 = vpop.f32.mrb[10].mxu0 }
 0x47b   : > { %v5950_v43 = vpop.f32.mrb[11].mxu0  ;;  %5954 = vmatmul.mubr.msk.f32.vlgmr.msra.gmra.mrb[12].mxu1 %vm594_vm4, %v1501_v42 }
 0x47c   : > { %5975 = vmatprep.mubr.msk.f32.mxu1 %vm6470_vm0, %v6471_v6 }
 0x515   : > { %v1117_v46 = vpop.f32.mrb[6].mxu1 }
 0x516   : > { %v5925_v47 = vpop.f32.mrb[7].mxu1  ;;  %v1125_v48 = vadd.f32 %v1124_v45, %v1117_v46 }
 0x519   : > { %v1272_v49 = vpop.f32.mrb[8].mxu1 }
 0x51a   : > { %v1276_v50 = vadd.f32 %v1272_v49, %v1125_v48  ;;  %v5935_v51 = vpop.f32.mrb[9].mxu1 }
 0x54a   : > { %v1423_v52 = vpop.f32.mrb[10].mxu1 }
 0x54b   : > { %v1427_v53 = vadd.f32 %v1423_v52, %v1276_v50  ;;  %v5945_v54 = vpop.f32.mrb[11].mxu1 }
 0x54e   : > { %v1574_v55 = vpop.f32.mrb[12].mxu1 }
 0x54f   : > { %v1578_v56 = vadd.f32 %v1574_v55, %v1427_v53  ;;  %v5955_v57 = vpop.f32.mrb[13].mxu1  ;;  %v2108_v55 = vrot.slane %v6595_v12, %v6605_v16 }
 0x551   : > { %v1579_v58 = vadd.f32 %v1578_v56, %v6593_v10  ;;  %v1613_v10 = vld [vmem:[%s7347_s7 + $0x10] sm:$0xff]  ;;  %vm6827_vm12 = vcmp.eq.s32.totalorder %v2108_v55, 1 }
 0x552   : > { %v6369_v2 = vpack.i.bf16 %v1614_v1, %v1613_v10  ;;  %v6272_v4 = vpack.c.bf16 %v1614_v1, %v1613_v10 }
 0x553   : > { %v1581_v59 = vsel %vm1580_vm11, %v1579_v58, 0.0 }
 0x554   : > { %1582 = vadd.xlane.f32.xlu1 %v1581_v59  ;;  %6273 = vmatpush3.bf16.msra.mxu0 %v6272_v4 }
 0x555   : > { %5978 = vmatprep.subr.mxu0 %v6471_v6 }
 0x565   : > { %1607 = vperm.xlu1 %6368, %v502_v62  }
 0x569   : > { %6370 = vrot.lane.b32.xlu1 %v6369_v2, %s6474_s15 }
 0x5e1   : > { %v1583_v5 = vpop.xlane.xlu1 %1582 }
 0x5e2   : > { %v1585_v7 = vmul.f32 0.03125, %v1583_v5 }
 0x5e4   : > { %v1586_v8 = vsub.f32 %v1579_v58, %v1585_v7 }
 0x5e5   : > { %v6762_v18 = vpop.permute.xlu1 %1607 }
 0x5e6   : > { %v1587_v9 = vmul.f32 %v1586_v8, %v1586_v8 }
 0x5e8   : > { %v1588_v11 = vsel %vm1580_vm11, %v1587_v9, 0.0 }
 0x5e9   : > { %1589 = vadd.xlane.f32.xlu0 %v1588_v11  ;;  %v6371_v22 = vpop.permute.xlu1 %6370 }
 0x5ea   : > { %v6373_v24 = vunpack.i.h.bf16 %v6371_v22  ;;  %v6372_v27 = vunpack.i.l.bf16 %v6371_v22 }
 0x5ec   : > { %v6278_v29 = vpack.c.bf16 %v6373_v24, %v6372_v27 }
 0x5ff   : > { %6364 = vrot.lane.b32.xlu0 %v6363_v63, %s6474_s15 }
 0x603   : > { %1713 = vrot.lane.b32.xlu0 %v1622_v14, %s6474_s15 }
 0x676   : > { %v1590_v19 = vpop.xlane.xlu0 %1589 }
 0x677   : > { %v1591_v21 = vmul.f32 0.03125, %v1590_v19 }
 0x679   : > { %v1592_v23 = vadd.f32 1e-05, %v1591_v21 }
 0x67a   : > { %v6365_v20 = vpop.permute.xlu0 %6364 }
 0x67b   : > { %6401 = vrsqrt.f32 %v1592_v23  ;;  %v6367_v25 = vunpack.i.h.bf16 %v6365_v20  ;;  %v6366_v26 = vunpack.i.l.bf16 %v6365_v20 }
 0x67d   : > { %v6275_v28 = vpack.c.bf16 %v6367_v25, %v6366_v26 }
 0x67e   : > { %v1714_v41 = vpop.permute.xlu0 %1713 }
 0x67f   : > { %6276 = vmatpush3.bf16.msra.mxu1 %v6275_v28 }
 0x680   : > { %6277 = vmatprep.subr.bf16.mxu1 %v6469_v3 }
 0x683   : > { %6279 = vmatpush3.bf16.msra.mxu1 %v6278_v29 }
 0x684   : > { %5983 = vmatprep.subr.mxu1 %v6471_v6 }
 0x685   : > { %v6402_v35 = vpop.eup %6401 }
 0x686   : > { %v1594_v36 = vmul.f32 %v6402_v35, %v1586_v8  ;;  %5976 = vmatmul.mubr.msk.f32.vlgmr.msra.gmra.mrb[14].mxu1 %vm517_vm1, %v6775_v33 }
 0x687   : > { %5985 = vmatprep.mubr.msk.f32.mxu1 %vm6470_vm0, %v6471_v6 }
 0x688   : > { %v1599_v38 = vmul.f32 %v1598_v34, %v1594_v36 }
 0x68a   : > { %v1604_v39 = vadd.f32 %v1603_v37, %v1599_v38 }
 0x68c   : > { %v6787_v40 = vmul.f32 %v6762_v18, %v1604_v39 }
 0x68e   : > { %5965 = vmatmul.mubr.msk.f32.vlgmr.msra.gmra.mrb[12].mxu0 %vm517_vm1, %v6787_v40 }
 0x68f   : > { %5980 = vmatprep.mubr.msk.f32.mxu0 %vm6470_vm0, %v6471_v6 }
 0x759   : > { %v1785_v42 = vpop.f32.mrb[14].mxu1 }
 0x75a   : > { %v6793_v43 = vadd.f32 %v1785_v42, %v1714_v41  ;;  %v5977_v45 = vpop.f32.mrb[15].mxu1 }
 0x75c   : > { %1867 = vrot.lane.b32.xlu1 %v6793_v43, %s6473_s14  ;;  %5979 = vmatpush3.xpose.msk.msra.mxu0 %vm594_vm4, %v6793_v43 }
 0x75d   : > { %5988 = vmatprep.subr.mxu0 %v6471_v6 }
 0x760   : > { %1945 = vrot.lane.b32.xlu1 %v6793_v43, %s6478_s20 }
 0x761   : > { %v1692_v46 = vpop.f32.mrb[12].mxu0 }
 0x762   : > { %v1693_v47 = vadd.f32 %v1692_v46, %v1622_v14  ;;  %v5966_v48 = vpop.f32.mrb[13].mxu0 }
 0x764   : > { %2023 = vrot.lane.b32.xlu1 %v6793_v43, %s7360_s21  ;;  %1865 = vrot.lane.b32.xlu0 %v1693_v47, %s6473_s14 }
 0x765   : > { %5981 = vmatmul.mubr.msk.f32.vlgmr.msra.gmra.mrb[14].mxu0 %vm594_vm4, %v1693_v47 }
 0x766   : > { %5990 = vmatprep.mubr.msk.f32.mxu0 %vm6470_vm0, %v6471_v6 }
 0x768   : > { %1943 = vrot.lane.b32.xlu0 %v1693_v47, %s6478_s20 }
 0x76c   : > { %2021 = vrot.lane.b32.xlu0 %v1693_v47, %s7360_s21  ;;  %s7369_s21 = smov 48  }
 0x7ce   : > { %v1868_v49 = vpop.permute.xlu1 %1867 }
 0x7cf   : > { %5984 = vmatpush3.xpose.msk.msra.mxu1 %vm594_vm4, %v1868_v49 }
 0x7d0   : > { %5993 = vmatprep.subr.mxu1 %v6471_v6 }
 0x7d2   : > { %v1946_v50 = vpop.permute.xlu1 %1945 }
 0x7d3   : > { %5989 = vmatpush3.xpose.msk.msra.mxu0 %vm594_vm4, %v1946_v50 }
 0x7d4   : > { %5998 = vmatprep.subr.mxu0 %v6471_v6 }
 0x7d6   : > { %v2024_v51 = vpop.permute.xlu1 %2023  ;;  %v1866_v52 = vpop.permute.xlu0 %1865 }
 0x7d7   : > { %5986 = vmatmul.mubr.msk.f32.vlgmr.msra.gmra.mrb[16].mxu1 %vm594_vm4, %v1866_v52 }
 0x7d8   : > { %5994 = vmatpush3.xpose.msk.msra.mxu1 %vm594_vm4, %v2024_v51  ;;  %5995 = vmatprep.mubr.msk.f32.mxu1 %vm6470_vm0, %v6471_v6 }
 0x7d9   : > { %6003 = vmatprep.subr.mxu1 %v6471_v6 }
 0x7da   : > { %v1944_v53 = vpop.permute.xlu0 %1943 }
 0x7db   : > { %5991 = vmatmul.mubr.msk.f32.vlgmr.msra.gmra.mrb[16].mxu0 %vm594_vm4, %v1944_v53 }
 0x7dc   : > { %6000 = vmatprep.mubr.msk.f32.mxu0 %vm6470_vm0, %v6471_v6 }
 0x7de   : > { %v2022_v54 = vpop.permute.xlu0 %2021 }
 0x7df   : > { %5996 = vmatmul.mubr.msk.f32.vlgmr.msra.gmra.mrb[18].mxu1 %vm594_vm4, %v2022_v54 }
 0x7e0   : > { %6005 = vmatprep.mubr.msk.f32.mxu1 %vm6470_vm0, %v6471_v6 }
 0x838   : > { %v1861_v56 = vpop.f32.mrb[14].mxu0 }
 0x839   : > { %v2099_v58 = vmul.f32 0.35355338, %v1861_v56  ;;  %v5982_v59 = vpop.f32.mrb[15].mxu0 }
 0x83b   : > { %v2110_v60 = vsel %vm6827_vm12, -1e+09, %v2099_v58 }
 0x83c   : > { %v2115_v61 = vsel %vm2114_vm13, %v2110_v60, -inf }
 0x83d   : > { %2116 = vmax.xlane.f32.xlu1 %v2115_v61 }
 0x8aa   : > { %v1939_v62 = vpop.f32.mrb[16].mxu1 }
 0x8ab   : > { %v2100_v63 = vmul.f32 0.35355338, %v1939_v62  ;;  %v5987_v0 = vpop.f32.mrb[17].mxu1 }
 0x8ac   : > { %v1616_v0 = vld [vmem:[%s7348_s8 + $0x8] sm:$0xff] }
 0x8ad   : > { %v2111_v12 = vsel %vm6827_vm12, -1e+09, %v2100_v63 }
 0x8ae   : > { %v2017_v10 = vpop.f32.mrb[16].mxu0  ;;  %v2118_v1 = vsel %vm2114_vm13, %v2111_v12, -inf }
 0x8af   : > { %v2101_v2 = vmul.f32 0.35355338, %v2017_v10  ;;  %2119 = vmax.xlane.f32.xlu0 %v2118_v1  ;;  %v5992_v4 = vpop.f32.mrb[17].mxu0  ;;  %v1617_v1 = vld [vmem:[%s7348_s8 + $0x10] sm:$0xff] }
 0x8b1   : > { %v2112_v5 = vsel %vm6827_vm12, -1e+09, %v2101_v2 }
 0x8b2   : > { %v2095_v7 = vpop.f32.mrb[18].mxu1  ;;  %v2121_v8 = vsel %vm2114_vm13, %v2112_v5, -inf }
 0x8b3   : > { %v2102_v9 = vmul.f32 0.35355338, %v2095_v7  ;;  %v5997_v11 = vpop.f32.mrb[19].mxu1  ;;  %2122 = vmax.xlane.f32.xlu0 %v2121_v8 }
 0x8b5   : > { %v2113_v14 = vsel %vm6827_vm12, -1e+09, %v2102_v9 }
 0x8b6   : > { %v2124_v19 = vsel %vm2114_vm13, %v2113_v14, -inf }
 0x8b7   : > { %2125 = vmax.xlane.f32.xlu1 %v2124_v19 }
 0x8c8   : > { %2313 = vrot.lane.b32.xlu1 %v6793_v43, %s6476_s17 }
 0x8ca   : > { %v2117_v21 = vpop.xlane.xlu1 %2116 }
 0x8cb   : > { %v2127_v22 = vsub.f32 %v2110_v60, %v2117_v21  ;;  %v2310_v21 = vsub.s32 5, %v6602_v15 }
 0x8cd   : > { %v2131_v23 = vmul.f32 1.442695, %v2127_v22  ;;  %v2311_v22 = vrot.slane %v6610_v17, %v2310_v21 }
 0x8cf   : > { %6403 = vpow2.f32 %v2131_v23 }
 0x8d9   : > { %v6404_v20 = vpop.eup %6403 }
 0x8da   : > { %v2139_v24 = vsel %vm2114_vm13, %v6404_v20, 0.0 }
 0x8db   : > { %2140 = vadd.xlane.f32.xlu0 %v2139_v24 }
 0x8f1   : > { %2159 = vrot.lane.b32.xlu0 %v6793_v43, %s6474_s15 }
 0x93c   : > { %v2120_v25 = vpop.xlane.xlu0 %2119 }
 0x93d   : > { %v2128_v26 = vsub.f32 %v2111_v12, %v2120_v25 }
 0x93f   : > { %v2133_v27 = vmul.f32 1.442695, %v2128_v26 }
 0x940   : > { %v2123_v28 = vpop.xlane.xlu0 %2122 }
 0x941   : > { %6405 = vpow2.f32 %v2133_v27  ;;  %v2129_v29 = vsub.f32 %v2112_v5, %v2123_v28  ;;  %v1618_v5 = vld [vmem:[%s7348_s8 + $0x18] sm:$0xff] }
 0x943   : > { %v2135_v34 = vmul.f32 1.442695, %v2129_v29 }
 0x944   : > { %v2126_v35 = vpop.xlane.xlu1 %2125 }
 0x945   : > { %6407 = vpow2.f32 %v2135_v34  ;;  %v2130_v36 = vsub.f32 %v2113_v14, %v2126_v35 }
 0x947   : > { %v2137_v37 = vmul.f32 1.442695, %v2130_v36 }
 0x948   : > { %v2314_v51 = vpop.permute.xlu1 %2313 }
 0x949   : > { %6409 = vpow2.f32 %v2137_v37 }
 0x94b   : > { %v6406_v38 = vpop.eup %6405 }
 0x94c   : > { %v2142_v39 = vsel %vm2114_vm13, %v6406_v38, 0.0 }
 0x94d   : > { %2143 = vadd.xlane.f32.xlu1 %v2142_v39 }
 0x94f   : > { %v6408_v41 = vpop.eup %6407 }
 0x950   : > { %v2145_v42 = vsel %vm2114_vm13, %v6408_v41, 0.0 }
 0x951   : > { %2146 = vadd.xlane.f32.xlu0 %v2145_v42 }
 0x953   : > { %v6410_v45 = vpop.eup %6409 }
 0x954   : > { %v2148_v46 = vsel %vm2114_vm13, %v6410_v45, 0.0 }
 0x955   : > { %2149 = vadd.xlane.f32.xlu1 %v2148_v46  ;;  %v2788_v46 = vld [vmem:[%s7349_s9] sm:$0xff] }
 0x966   : > { %2463 = vrot.lane.b32.xlu1 %v6793_v43, %s6475_s16 }
 0x967   : > { %2613 = vrot.lane.b32.xlu0 %v6793_v43, %s7366_s27  ;;  %v1615_v43 = vld [vmem:[%s7348_s8] sm:$0xff] }
 0x968   : > { %v2141_v47 = vpop.xlane.xlu0 %2140  ;;  %6004 = vmatpush3.msra.mxu1 %v1615_v43  ;;  %v2793_v43 = vld [vmem:[%s7350_s10 + $0x8] sm:$0xff] }
 0x969   : > { %6411 = vrcp.f32 %v2141_v47  ;;  %6013 = vmatprep.subr.mxu1 %v6471_v6  ;;  %v2789_v47 = vld [vmem:[%s7349_s9 + $0x8] sm:$0xff] }
 0x96c   : > { %v2160_v48 = vpop.permute.xlu0 %2159 }
 0x96d   : > { %5999 = vmatpush3.msra.mxu0 %v2160_v48  ;;  %v6281_v48 = vpack.c.bf16 %v2789_v47, %v2788_v46  ;;  %v5657_v46 = vld [vmem:[%s7345_s5 + $0x38] sm:$0xff] }
 0x96e   : > { %6008 = vmatprep.subr.mxu0 %v6471_v6 }
 0x973   : > { %v6412_v49 = vpop.eup %6411 }
 0x974   : > { %v2152_v50 = vmul.f32 %v6412_v49, %v6404_v20  ;;  %v2791_v49 = vld [vmem:[%s7349_s9 + $0x18] sm:$0xff] }
 0x976   : > { %6001 = vmatmul.mubr.msk.f32.vlgmr.msra.gmra.mrb[18].mxu0 %vm594_vm4, %v2152_v50 }
 0x977   : > { %6009 = vmatpush3.msra.mxu0 %v2314_v51  ;;  %6010 = vmatprep.mubr.msk.f32.mxu0 %vm6470_vm0, %v6471_v6  ;;  %v2792_v51 = vld [vmem:[%s7350_s10] sm:$0xff] }
 0x978   : > { %6018 = vmatprep.subr.mxu0 %v6471_v6 }
 0x9da   : > { %v2144_v52 = vpop.xlane.xlu1 %2143 }
 0x9db   : > { %6413 = vrcp.f32 %v2144_v52  ;;  %v2794_v52 = vld [vmem:[%s7350_s10 + $0x10] sm:$0xff] }
 0x9de   : > { %v2147_v53 = vpop.xlane.xlu0 %2146 }
 0x9df   : > { %6415 = vrcp.f32 %v2147_v53  ;;  %v6287_v53 = vpack.c.bf16 %v2793_v43, %v2792_v51 }
 0x9e2   : > { %v2150_v54 = vpop.xlane.xlu1 %2149  ;;  %v2614_v61 = vpop.permute.xlu0 %2613 }
 0x9e3   : > { %6417 = vrcp.f32 %v2150_v54  ;;  %v2795_v54 = vld [vmem:[%s7350_s10 + $0x18] sm:$0xff] }
 0x9e5   : > { %v6414_v55 = vpop.eup %6413 }
 0x9e6   : > { %v2154_v56 = vmul.f32 %v6414_v55, %v6406_v38  ;;  %v2464_v58 = vpop.permute.xlu1 %2463  ;;  %v6290_v55 = vpack.c.bf16 %v2795_v54, %v2794_v52 }
 0x9e8   : > { %6011 = vmatmul.mubr.msk.f32.vlgmr.msra.gmra.mrb[20].mxu0 %vm594_vm4, %v2154_v56  ;;  %v2796_v56 = vld [vmem:[%s7350_s10 + $0x20] sm:$0xff] }
 0x9e9   : > { %v6416_v59 = vpop.eup %6415  ;;  %6019 = vmatpush3.msra.mxu0 %v2464_v58  ;;  %6020 = vmatprep.mubr.msk.f32.mxu0 %vm6470_vm0, %v6471_v6  ;;  %v2797_v58 = vld [vmem:[%s7350_s10 + $0x28] sm:$0xff] }
 0x9ea   : > { %v2156_v60 = vmul.f32 %v6416_v59, %v6408_v41  ;;  %6028 = vmatprep.subr.mxu0 %v6471_v6  ;;  %v6293_v59 = vpack.c.bf16 %v2797_v58, %v2796_v56  ;;  %v6996_v56 = vld [vmem:[%s7351_s11 + $0x10] sm:$0xff] }
 0x9eb   : > { %v2997_v58 = vrot.slane %v6996_v56, %v6605_v16 }
 0x9ec   : > { %6021 = vmatmul.mubr.msk.f32.vlgmr.msra.gmra.mrb[22].mxu0 %vm594_vm4, %v2156_v60 }
 0x9ed   : > { %v6418_v62 = vpop.eup %6417  ;;  %6029 = vmatpush3.msra.mxu0 %v2614_v61  ;;  %6030 = vmatprep.mubr.msk.f32.mxu0 %vm6470_vm0, %v6471_v6 }
 0x9ee   : > { %v2158_v63 = vmul.f32 %v6418_v62, %v6410_v45  ;;  %6280 = vmatprep.subr.bf16.mxu0 %v6469_v3 }
 0x9f0   : > { %6031 = vmatmul.mubr.msk.f32.vlgmr.msra.gmra.mrb[24].mxu0 %vm594_vm4, %v2158_v63  ;;  %v2779_v63 = vsub.s32 6, %v6602_v15 }
 0x9f1   : > { %6046 = vmatprep.mubr.msk.f32.mxu0 %vm6470_vm0, %v6471_v6  ;;  %6282 = vmatpush3.bf16.msra.mxu0 %v6281_v48 }
 0x9f2   : > { %6283 = vmatprep.subr.bf16.mxu0 %v6469_v3 }
 0xa49   : > { %v2231_v12 = vpop.f32.mrb[18].mxu0 }
 0xa4a   : > { %v6002_v10 = vpop.f32.mrb[19].mxu0  ;;  %6006 = vmatmul.mubr.msk.f32.vlgmr.msra.gmra.mrb[20].mxu1 %vm594_vm4, %v2231_v12  ;;  %v2780_v12 = vrot.slane %v6610_v17, %v2779_v63 }
 0xa4b   : > { %6014 = vmatpush3.msra.mxu1 %v1616_v0  ;;  %6015 = vmatprep.mubr.msk.f32.mxu1 %vm6470_vm0, %v6471_v6  ;;  %v2784_v0 = vsub.s32 7, %v6602_v15 }
 0xa4c   : > { %6023 = vmatprep.subr.mxu1 %v6471_v6 }
 0xabb   : > { %v2385_v2 = vpop.f32.mrb[20].mxu0 }
 0xabc   : > { %v6012_v4 = vpop.f32.mrb[21].mxu0  ;;  %6016 = vmatmul.mubr.msk.f32.vlgmr.msra.gmra.mrb[22].mxu1 %vm594_vm4, %v2385_v2  ;;  %v2785_v2 = vrot.slane %v6610_v17, %v2784_v0  ;;  %v504_v17 = vld [vmem:[%s7351_s11 + $0x8] sm:$0xf] }
 0xabd   : > { %6024 = vmatpush3.msra.mxu1 %v1617_v1  ;;  %6025 = vmatprep.mubr.msk.f32.mxu1 %vm6470_vm0, %v6471_v6  ;;  %v2978_v43 = vrot.slane %v504_v17, %v6773_v31 }
 0xabe   : > { %6033 = vmatprep.subr.mxu1 %v6471_v6 }
 0xabf   : > { %v2535_v7 = vpop.f32.mrb[22].mxu0 }
 0xac0   : > { %v6022_v8 = vpop.f32.mrb[23].mxu0  ;;  %6026 = vmatmul.mubr.msk.f32.vlgmr.msra.gmra.mrb[24].mxu1 %vm594_vm4, %v2535_v7 }
 0xac1   : > { %6034 = vmatpush3.msra.mxu1 %v1618_v5  ;;  %6035 = vmatprep.mubr.msk.f32.mxu1 %vm6470_vm0, %v6471_v6  ;;  %v2798_v8 = vld [vmem:[%s7350_s10 + $0x30] sm:$0xff] }
 0xac2   : > { %6286 = vmatprep.subr.bf16.mxu1 %v6469_v3 }
 0xac3   : > { %v2685_v9 = vpop.f32.mrb[24].mxu0 }
 0xac4   : > { %v6032_v11 = vpop.f32.mrb[25].mxu0  ;;  %6036 = vmatmul.mubr.msk.f32.vlgmr.msra.gmra.mrb[26].mxu1 %vm594_vm4, %v2685_v9  ;;  %v2799_v9 = vld [vmem:[%s7350_s10 + $0x38] sm:$0xff] }
 0xac5   : > { %6065 = vmatprep.mubr.msk.f32.mxu1 %vm6470_vm0, %v6471_v6  ;;  %6288 = vmatpush3.bf16.msra.mxu1 %v6287_v53  ;;  %v6296_v11 = vpack.c.bf16 %v2799_v9, %v2798_v8 }
 0xac6   : > { %6289 = vmatprep.subr.bf16.mxu1 %v6469_v3 }
 0xac9   : > { %6291 = vmatpush3.bf16.msra.mxu1 %v6290_v55 }
 0xaca   : > { %6292 = vmatprep.subr.bf16.mxu1 %v6469_v3 }
 0xacd   : > { %6294 = vmatpush3.bf16.msra.mxu1 %v6293_v59 }
 0xace   : > { %6295 = vmatprep.subr.bf16.mxu1 %v6469_v3 }
 0xad1   : > { %6297 = vmatpush3.bf16.msra.mxu1 %v6296_v11 }
 0xad2   : > { %6084 = vmatprep.subr.mxu1 %v6471_v6 }
 0xb1d   : > { %v2304_v14 = vpop.f32.mrb[20].mxu1 }
 0xb1e   : > { %v6007_v19 = vpop.f32.mrb[21].mxu1  ;;  %v2312_v23 = vadd.f32 %v2311_v22, %v2304_v14  ;;  %v2803_v14 = vrot.slane %v504_v17, %v6605_v16 }
 0xb8f   : > { %v2458_v20 = vpop.f32.mrb[22].mxu1 }
 0xb90   : > { %v2462_v24 = vadd.f32 %v2458_v20, %v2312_v23  ;;  %v6017_v25 = vpop.f32.mrb[23].mxu1 }
 0xb93   : > { %v2608_v26 = vpop.f32.mrb[24].mxu1 }
 0xb94   : > { %v2612_v27 = vadd.f32 %v2608_v26, %v2462_v24  ;;  %v6027_v28 = vpop.f32.mrb[25].mxu1  ;;  %v2881_v24 = vrot.slane %v504_v17, %v6730_v44 }
 0xb97   : > { %v2758_v29 = vpop.f32.mrb[26].mxu1 }
 0xb98   : > { %v2762_v34 = vadd.f32 %v2758_v29, %v2612_v27  ;;  %v6037_v35 = vpop.f32.mrb[27].mxu1 }
 0xb9a   : > { %v2763_v36 = vadd.f32 %v2762_v34, %v6787_v40  ;;  %v2790_v40 = vld [vmem:[%s7349_s9 + $0x10] sm:$0xff] }
 0xb9b   : > { %v6284_v50 = vpack.c.bf16 %v2791_v49, %v2790_v40 }
 0xb9c   : > { %v2764_v37 = vsel %vm1580_vm11, %v2763_v36, 0.0 }
 0xb9d   : > { %2765 = vadd.xlane.f32.xlu1 %v2764_v37  ;;  %6285 = vmatpush3.bf16.msra.mxu0 %v6284_v50  ;;  %v2973_v50 = vrot.slane %v504_v17, %v6765_v30 }
 0xb9e   : > { %6298 = vmatprep.subr.bf16.mxu0 %v6469_v3 }
 0xc2a   : > { %v2766_v38 = vpop.xlane.xlu1 %2765 }
 0xc2b   : > { %v2767_v39 = vmul.f32 0.03125, %v2766_v38 }
 0xc2d   : > { %v2768_v41 = vsub.f32 %v2763_v36, %v2767_v39  ;;  %v5654_v39 = vld [vmem:[%s7345_s5 + $0x20] sm:$0xff] }
 0xc2f   : > { %v2769_v42 = vmul.f32 %v2768_v41, %v2768_v41 }
 0xc31   : > { %v2770_v45 = vsel %vm1580_vm11, %v2769_v42, 0.0 }
 0xc32   : > { %2771 = vadd.xlane.f32.xlu0 %v2770_v45  ;;  %v5656_v45 = vld [vmem:[%s7345_s5 + $0x30] sm:$0xff] }
 0xc33   : > { %v6302_v47 = vpack.c.bf16 %v5657_v46, %v5656_v45 }
 0xcbf   : > { %v2772_v60 = vpop.xlane.xlu0 %2771 }
 0xcc0   : > { %v2773_v61 = vmul.f32 0.03125, %v2772_v60 }
 0xcc2   : > { %v2774_v62 = vadd.f32 1e-05, %v2773_v61 }
 0xcc4   : > { %6419 = vrsqrt.f32 %v2774_v62 }
 0xcce   : > { %v6420_v10 = vpop.eup %6419 }
 0xccf   : > { %v2776_v1 = vmul.f32 %v6420_v10, %v2768_v41  ;;  %v5655_v41 = vld [vmem:[%s7345_s5 + $0x28] sm:$0xff] }
 0xcd0   : > { %v6299_v42 = vpack.c.bf16 %v5655_v41, %v5654_v39 }
 0xcd1   : > { %v2781_v4 = vmul.f32 %v2780_v12, %v2776_v1 }
 0xcd3   : > { %v2786_v5 = vadd.f32 %v2785_v2, %v2781_v4 }
 0xcd5   : > { %v2787_v7 = vmul.f32 %v2786_v5, %v6762_v18 }
 0xcd7   : > { %6047 = vmatmul.mubr.msk.f32.vlgmr.msra.gmra.mrb[26].mxu0 %vm517_vm1, %v2787_v7 }
 0xcd8   : > { %6076 = vmatprep.mubr.msk.f32.mxu0 %vm6470_vm0, %v6471_v6  ;;  %6300 = vmatpush3.bf16.msra.mxu0 %v6299_v42 }
 0xcd9   : > { %6301 = vmatprep.subr.bf16.mxu0 %v6469_v3 }
 0xcdc   : > { %6303 = vmatpush3.bf16.msra.mxu0 %v6302_v47 }
 0xcdd   : > { %6079 = vmatprep.subr.mxu0 %v6471_v6 }
 0xdaa   : > { %v2873_v19 = vpop.f32.mrb[26].mxu0 }
 0xdab   : > { %v2874_v22 = vadd.f32 %v2873_v19, %v2803_v14  ;;  %v6048_v23 = vpop.f32.mrb[27].mxu0 }
 0xdad   : > { %v2877_v20 = vmax.f32 %v2874_v22, 0.0 }
 0xdaf   : > { %6066 = vmatmul.mubr.msk.f32.vlgmr.msra.gmra.mrb[28].mxu1 %vm2882_vm14, %v2877_v20 }
 0xdb0   : > { %6086 = vmatprep.mubr.msk.f32.mxu1 %vm6470_vm0, %v6471_v6 }
 0xe82   : > { %v2952_v25 = vpop.f32.mrb[28].mxu1 }
 0xe83   : > { %v2953_v26 = vadd.f32 %v2952_v25, %v2881_v24  ;;  %v6067_v27 = vpop.f32.mrb[29].mxu1 }
 0xe85   : > { %v2956_v28 = vadd.f32 %v2953_v26, %v2787_v7 }
 0xe87   : > { %v2957_v29 = vsel %vm1580_vm11, %v2956_v28, 0.0 }
 0xe88   : > { %2958 = vadd.xlane.f32.xlu0 %v2957_v29 }
 0xf15   : > { %v2959_v34 = vpop.xlane.xlu0 %2958 }
 0xf16   : > { %v2960_v35 = vmul.f32 0.03125, %v2959_v34 }
 0xf18   : > { %v2961_v36 = vsub.f32 %v2956_v28, %v2960_v35 }
 0xf1a   : > { %v2962_v37 = vmul.f32 %v2961_v36, %v2961_v36 }
 0xf1c   : > { %v2963_v38 = vsel %vm1580_vm11, %v2962_v37, 0.0 }
 0xf1d   : > { %2964 = vadd.xlane.f32.xlu1 %v2963_v38 }
 0xfaa   : > { %v2965_v48 = vpop.xlane.xlu1 %2964 }
 0xfab   : > { %v2966_v40 = vmul.f32 0.03125, %v2965_v48 }
 0xfad   : > { %v2967_v49 = vadd.f32 1e-05, %v2966_v40 }
 0xfaf   : > { %6421 = vrsqrt.f32 %v2967_v49 }
 0xfb9   : > { %v6422_v51 = vpop.eup %6421 }
 0xfba   : > { %v2969_v52 = vmul.f32 %v6422_v51, %v2961_v36 }
 0xfbc   : > { %v2974_v53 = vmul.f32 %v2973_v50, %v2969_v52 }
 0xfbe   : > { %v2979_v54 = vadd.f32 %v2978_v43, %v2974_v53 }
 0xfc0   : > { %v6987_v55 = vmul.f32 %v2979_v54, %v6762_v18 }
 0xfc2   : > { %6077 = vmatmul.mubr.msk.f32.vlgmr.msra.gmra.mrb[28].mxu0 %vm517_vm1, %v6987_v55 }
 0xfc3   : > { %6081 = vmatprep.mubr.msk.f32.mxu0 %vm6470_vm0, %v6471_v6 }
0x1095   : > { %v3067_v59 = vpop.f32.mrb[28].mxu0 }
0x1096   : > { %v7000_v60 = vadd.f32 %v3067_v59, %v2997_v58  ;;  %v6078_v61 = vpop.f32.mrb[29].mxu0 }
0x1098   : > { %3150 = vrot.lane.b32.xlu1 %v7000_v60, %s6476_s17  ;;  %3072 = vrot.lane.b32.xlu0 %v7000_v60, %s6474_s15 }
0x109c   : > { %3148 = vrot.lane.b32.xlu1 %v7000_v60, %s6473_s14  ;;  %3228 = vrot.lane.b32.xlu0 %v7000_v60, %s6475_s16 }
0x10a0   : > { %3226 = vrot.lane.b32.xlu1 %v7000_v60, %s6478_s20  ;;  %3306 = vrot.lane.b32.xlu0 %v7000_v60, %s7366_s27 }
0x10a4   : > { %3304 = vrot.lane.b32.xlu1 %v7000_v60, %s7367_s29 }
0x110a   : > { %v3151_v62 = vpop.permute.xlu1 %3150  ;;  %v3073_v12 = vpop.permute.xlu0 %3072 }
0x110b   : > { %6080 = vmatpush3.xpose.msk.msra.mxu0 %vm594_vm4, %v3073_v12  ;;  %6085 = vmatpush3.xpose.msk.msra.mxu1 %vm594_vm4, %v3151_v62  ;;  %v5658_v12 = vld [vmem:[%s7346_s6 + $0x20] sm:$0xff] }
0x110c   : > { %6089 = vmatprep.subr.mxu0 %v6471_v6  ;;  %6094 = vmatprep.subr.mxu1 %v6471_v6 }
0x110e   : > { %v3149_v10 = vpop.permute.xlu1 %3148  ;;  %6082 = vmatmul.mubr.msk.f32.vlgmr.msra.gmra.mrb[30].mxu0 %vm594_vm4, %v7000_v60  ;;  %v3229_v1 = vpop.permute.xlu0 %3228 }
0x110f   : > { %6087 = vmatmul.mubr.msk.f32.vlgmr.msra.gmra.mrb[30].mxu1 %vm594_vm4, %v3149_v10  ;;  %6090 = vmatpush3.xpose.msk.msra.mxu0 %vm594_vm4, %v3229_v1 }
0x1110   : > { %6091 = vmatprep.mubr.msk.f32.mxu0 %vm6470_vm0, %v6471_v6  ;;  %6096 = vmatprep.mubr.msk.f32.mxu1 %vm6470_vm0, %v6471_v6 }
0x1111   : > { %6099 = vmatprep.subr.mxu0 %v6471_v6 }
0x1112   : > { %v3227_v2 = vpop.permute.xlu1 %3226  ;;  %v3307_v4 = vpop.permute.xlu0 %3306 }
0x1113   : > { %6092 = vmatmul.mubr.msk.f32.vlgmr.msra.gmra.mrb[32].mxu0 %vm594_vm4, %v3227_v2  ;;  %6095 = vmatpush3.xpose.msk.msra.mxu1 %vm594_vm4, %v3307_v4 }
0x1114   : > { %6101 = vmatprep.mubr.msk.f32.mxu0 %vm6470_vm0, %v6471_v6  ;;  %6104 = vmatprep.subr.mxu1 %v6471_v6 }
0x1116   : > { %v3305_v5 = vpop.permute.xlu1 %3304 }
0x1117   : > { %6097 = vmatmul.mubr.msk.f32.vlgmr.msra.gmra.mrb[32].mxu1 %vm594_vm4, %v3305_v5 }
0x1118   : > { %6106 = vmatprep.mubr.msk.f32.mxu1 %vm6470_vm0, %v6471_v6  ;;  %6105 = vmatpush3.msra.mxu1 %v5658_v12 }
0x1119   : > { %6114 = vmatprep.subr.mxu1 %v6471_v6 }
0x11e1   : > { %v3144_v7 = vpop.f32.mrb[30].mxu0 }
0x11e2   : > { %v3382_v8 = vmul.f32 0.35355338, %v3144_v7  ;;  %v6083_v9 = vpop.f32.mrb[31].mxu0  ;;  %v3222_v11 = vpop.f32.mrb[30].mxu1 }
0x11e3   : > { %v3383_v17 = vmul.f32 0.35355338, %v3222_v11  ;;  %v6088_v14 = vpop.f32.mrb[31].mxu1 }
0x11e4   : > { %v3386_v19 = vsel %vm6653_vm7, -1e+09, %v3382_v8 }
0x11e5   : > { %v3390_v22 = vsel %vm924_vm8, %v3386_v19, -inf  ;;  %v3387_v23 = vsel %vm6653_vm7, -1e+09, %v3383_v17 }
0x11e6   : > { %3391 = vmax.xlane.f32.xlu0 %v3390_v22  ;;  %v3300_v20 = vpop.f32.mrb[32].mxu0  ;;  %v3393_v24 = vsel %vm924_vm8, %v3387_v23, -inf }
0x11e7   : > { %v3384_v25 = vmul.f32 0.35355338, %v3300_v20  ;;  %3394 = vmax.xlane.f32.xlu1 %v3393_v24  ;;  %v6093_v26 = vpop.f32.mrb[33].mxu0  ;;  %v5659_v20 = vld [vmem:[%s7346_s6 + $0x28] sm:$0xff] }
0x11e8   : > { %v5660_v26 = vld [vmem:[%s7346_s6 + $0x30] sm:$0xff] }
0x11e9   : > { %v3388_v27 = vsel %vm6653_vm7, -1e+09, %v3384_v25 }
0x11ea   : > { %v3378_v28 = vpop.f32.mrb[32].mxu1  ;;  %v3396_v29 = vsel %vm924_vm8, %v3388_v27, -inf }
0x11eb   : > { %v3385_v34 = vmul.f32 0.35355338, %v3378_v28  ;;  %v6098_v35 = vpop.f32.mrb[33].mxu1  ;;  %3397 = vmax.xlane.f32.xlu0 %v3396_v29  ;;  %v5661_v29 = vld [vmem:[%s7346_s6 + $0x38] sm:$0xff] }
0x11ed   : > { %v3389_v36 = vsel %vm6653_vm7, -1e+09, %v3385_v34 }
0x11ee   : > { %v3399_v37 = vsel %vm924_vm8, %v3389_v36, -inf }
0x11ef   : > { %3400 = vmax.xlane.f32.xlu0 %v3399_v37 }
0x11f8   : > { %3434 = vrot.lane.b32.xlu1 %v7000_v60, %s7368_s26 }
0x1273   : > { %v3392_v38 = vpop.xlane.xlu0 %3391 }
0x1274   : > { %v3402_v39 = vsub.f32 %v3386_v19, %v3392_v38  ;;  %v3395_v41 = vpop.xlane.xlu1 %3394  ;;  %v3587_v38 = vrot.slane %v6996_v56, %v6730_v44 }
0x1275   : > { %v3403_v42 = vsub.f32 %v3387_v23, %v3395_v41 }
0x1276   : > { %v3406_v45 = vmul.f32 1.442695, %v3402_v39 }
0x1277   : > { %v3408_v46 = vmul.f32 1.442695, %v3403_v42 }
0x1278   : > { %6423 = vpow2.f32 %v3406_v45  ;;  %v3435_v47 = vpop.permute.xlu1 %3434  ;;  %v3398_v48 = vpop.xlane.xlu0 %3397 }
0x1279   : > { %6425 = vpow2.f32 %v3408_v46  ;;  %v3404_v40 = vsub.f32 %v3388_v27, %v3398_v48  ;;  %6100 = vmatpush3.msk.msra.mxu0 %vm975_vm9, %v3435_v47 }
0x127a   : > { %6109 = vmatprep.subr.mxu0 %v6471_v6 }
0x127b   : > { %v3410_v32 = vmul.f32 1.442695, %v3404_v40 }
0x127c   : > { %v3401_v49 = vpop.xlane.xlu0 %3400 }
0x127d   : > { %6427 = vpow2.f32 %v3410_v32  ;;  %v3405_v50 = vsub.f32 %v3389_v36, %v3401_v49 }
0x127f   : > { %v3412_v51 = vmul.f32 1.442695, %v3405_v50 }
0x1281   : > { %6429 = vpow2.f32 %v3412_v51 }
0x1282   : > { %v6424_v43 = vpop.eup %6423 }
0x1283   : > { %v6426_v52 = vpop.eup %6425  ;;  %v3414_v53 = vsel %vm924_vm8, %v6424_v43, 0.0 }
0x1284   : > { %3415 = vadd.xlane.f32.xlu1 %v3414_v53  ;;  %v3417_v54 = vsel %vm924_vm8, %v6426_v52, 0.0  ;;  %v5683_v53 = vld [vmem:[%s7347_s7 + $0x20] sm:$0xff] }
0x1285   : > { %3418 = vadd.xlane.f32.xlu0 %v3417_v54  ;;  %v5684_v54 = vld [vmem:[%s7347_s7 + $0x28] sm:$0xff] }
0x1287   : > { %v6428_v58 = vpop.eup %6427 }
0x1288   : > { %v3420_v59 = vsel %vm924_vm8, %v6428_v58, 0.0 }
0x1289   : > { %3421 = vadd.xlane.f32.xlu1 %v3420_v59  ;;  %v6374_v59 = vpack.i.bf16 %v5684_v54, %v5683_v53 }
0x128b   : > { %v6430_v61 = vpop.eup %6429 }
0x128c   : > { %v3423_v62 = vsel %vm924_vm8, %v6430_v61, 0.0 }
0x128d   : > { %3424 = vadd.xlane.f32.xlu0 %v3423_v62 }
0x129a   : > { %3740 = vrot.lane.b32.xlu1 %v7000_v60, %s7369_s21 }
0x129e   : > { %3891 = vrot.lane.b32.xlu1 %v7000_v60, %s7370_s22 }
0x12a3   : > { %3589 = vrot.lane.b32.xlu0 %v7000_v60, %s7371_s30  ;;  %s497_s30 = scalar_lea.vmem %s7353_s13, %s6581_s18 }
0x1311   : > { %v3416_v10 = vpop.xlane.xlu1 %3415 }
0x1312   : > { %6431 = vrcp.f32 %v3416_v10  ;;  %v3419_v1 = vpop.xlane.xlu0 %3418 }
0x1313   : > { %6433 = vrcp.f32 %v3419_v1 }
0x1316   : > { %v3422_v2 = vpop.xlane.xlu1 %3421 }
0x1317   : > { %6435 = vrcp.f32 %v3422_v2 }
0x131a   : > { %v3425_v4 = vpop.xlane.xlu0 %3424  ;;  %v3741_v11 = vpop.permute.xlu1 %3740 }
0x131b   : > { %6437 = vrcp.f32 %v3425_v4 }
0x131c   : > { %v6432_v5 = vpop.eup %6431 }
0x131d   : > { %v3427_v7 = vmul.f32 %v6432_v5, %v6424_v43  ;;  %v6434_v8 = vpop.eup %6433 }
0x131e   : > { %v3590_v9 = vpop.permute.xlu0 %3589  ;;  %v3429_v60 = vmul.f32 %v6434_v8, %v6426_v52  ;;  %v3892_v22 = vpop.permute.xlu1 %3891 }
0x131f   : > { %6102 = vmatmul.mubr.msk.f32.vlgmr.msra.gmra.mrb[34].mxu0 %vm971_vm10, %v3427_v7 }
0x1320   : > { %6110 = vmatpush3.msk.msra.mxu0 %vm975_vm9, %v3590_v9  ;;  %6111 = vmatprep.mubr.msk.f32.mxu0 %vm6470_vm0, %v6471_v6 }
0x1321   : > { %6119 = vmatprep.subr.mxu0 %v6471_v6  ;;  %v6436_v17 = vpop.eup %6435 }
0x1322   : > { %v3431_v14 = vmul.f32 %v6436_v17, %v6428_v58  ;;  %v5685_v58 = vld [vmem:[%s7347_s7 + $0x30] sm:$0xff] }
0x1323   : > { %6112 = vmatmul.mubr.msk.f32.vlgmr.msra.gmra.mrb[36].mxu0 %vm971_vm10, %v3429_v60 }
0x1324   : > { %6120 = vmatpush3.msk.msra.mxu0 %vm975_vm9, %v3741_v11  ;;  %6121 = vmatprep.mubr.msk.f32.mxu0 %vm6470_vm0, %v6471_v6  ;;  %v4080_v11 = vrot.slane %v6996_v56, %v1621_v13  ;;  %v4059_v13 = vrot.slane %v6996_v56, %v6765_v30 }
0x1325   : > { %6129 = vmatprep.subr.mxu0 %v6471_v6  ;;  %v6438_v19 = vpop.eup %6437 }
0x1326   : > { %v3433_v23 = vmul.f32 %v6438_v19, %v6430_v61  ;;  %v6305_v61 = vpack.c.bf16 %v5684_v54, %v5683_v53 }
0x1327   : > { %6122 = vmatmul.mubr.msk.f32.vlgmr.msra.gmra.mrb[38].mxu0 %vm971_vm10, %v3431_v14 }
0x1328   : > { %6130 = vmatpush3.msk.msra.mxu0 %vm975_vm9, %v3892_v22  ;;  %6131 = vmatprep.mubr.msk.f32.mxu0 %vm6470_vm0, %v6471_v6 }
0x1329   : > { %6304 = vmatprep.subr.bf16.mxu0 %v6469_v3 }
0x132b   : > { %6132 = vmatmul.mubr.msk.f32.vlgmr.msra.gmra.mrb[40].mxu0 %vm971_vm10, %v3433_v23 }
0x132c   : > { %6147 = vmatprep.mubr.msk.f32.mxu0 %vm6470_vm0, %v6471_v6  ;;  %6306 = vmatpush3.bf16.msra.mxu0 %v6305_v61 }
0x132d   : > { %6307 = vmatprep.subr.bf16.mxu0 %v6469_v3 }
0x13f2   : > { %v3507_v24 = vpop.f32.mrb[34].mxu0 }
0x13f3   : > { %v6103_v25 = vpop.f32.mrb[35].mxu0  ;;  %6107 = vmatmul.mubr.msk.f32.vlgmr.msra.gmra.mrb[34].mxu1 %vm594_vm4, %v3507_v24 }
0x13f4   : > { %6115 = vmatpush3.msra.mxu1 %v5659_v20  ;;  %6116 = vmatprep.mubr.msk.f32.mxu1 %vm6470_vm0, %v6471_v6 }
0x13f5   : > { %6124 = vmatprep.subr.mxu1 %v6471_v6 }
0x13f6   : > { %v3662_v27 = vpop.f32.mrb[36].mxu0 }
0x13f7   : > { %v6113_v28 = vpop.f32.mrb[37].mxu0  ;;  %6117 = vmatmul.mubr.msk.f32.vlgmr.msra.gmra.mrb[36].mxu1 %vm594_vm4, %v3662_v27  ;;  %v4064_v27 = vrot.slane %v6996_v56, %v6773_v31 }
0x13f8   : > { %6125 = vmatpush3.msra.mxu1 %v5660_v26  ;;  %6126 = vmatprep.mubr.msk.f32.mxu1 %vm6470_vm0, %v6471_v6 }
0x13f9   : > { %6134 = vmatprep.subr.mxu1 %v6471_v6 }
0x13fa   : > { %v3813_v34 = vpop.f32.mrb[38].mxu0 }
0x13fb   : > { %v6123_v35 = vpop.f32.mrb[39].mxu0  ;;  %6127 = vmatmul.mubr.msk.f32.vlgmr.msra.gmra.mrb[38].mxu1 %vm594_vm4, %v3813_v34 }
0x13fc   : > { %6135 = vmatpush3.msra.mxu1 %v5661_v29  ;;  %6136 = vmatprep.mubr.msk.f32.mxu1 %vm6470_vm0, %v6471_v6 }
0x13fd   : > { %6310 = vmatprep.subr.bf16.mxu1 %v6469_v3 }
0x13fe   : > { %v3964_v36 = vpop.f32.mrb[40].mxu0 }
0x13ff   : > { %v6133_v37 = vpop.f32.mrb[41].mxu0  ;;  %6137 = vmatmul.mubr.msk.f32.vlgmr.msra.gmra.mrb[40].mxu1 %vm594_vm4, %v3964_v36 }
0x1400   : > { %6158 = vmatprep.mubr.msk.f32.mxu1 %vm6470_vm0, %v6471_v6 }
0x14c6   : > { %v3580_v39 = vpop.f32.mrb[34].mxu1 }
0x14c7   : > { %v6108_v41 = vpop.f32.mrb[35].mxu1  ;;  %v3588_v42 = vadd.f32 %v3587_v38, %v3580_v39 }
0x14ca   : > { %v3735_v45 = vpop.f32.mrb[36].mxu1 }
0x14cb   : > { %v3739_v46 = vadd.f32 %v3735_v45, %v3588_v42  ;;  %v6118_v47 = vpop.f32.mrb[37].mxu1 }
0x14ce   : > { %v3886_v48 = vpop.f32.mrb[38].mxu1 }
0x14cf   : > { %v3890_v40 = vadd.f32 %v3886_v48, %v3739_v46  ;;  %v6128_v32 = vpop.f32.mrb[39].mxu1 }
0x14d2   : > { %v4037_v49 = vpop.f32.mrb[40].mxu1 }
0x14d3   : > { %v4041_v50 = vadd.f32 %v4037_v49, %v3890_v40  ;;  %v6138_v51 = vpop.f32.mrb[41].mxu1 }
0x14d5   : > { %v4042_v43 = vadd.f32 %v4041_v50, %v6987_v55  ;;  %v5686_v55 = vld [vmem:[%s7347_s7 + $0x38] sm:$0xff] }
0x14d6   : > { %v6379_v62 = vpack.i.bf16 %v5686_v55, %v5685_v58  ;;  %v6308_v12 = vpack.c.bf16 %v5686_v55, %v5685_v58 }
0x14d7   : > { %v4043_v52 = vsel %vm1580_vm11, %v4042_v43, 0.0 }
0x14d8   : > { %4044 = vadd.xlane.f32.xlu0 %v4043_v52  ;;  %6309 = vmatpush3.bf16.msra.mxu0 %v6308_v12 }
0x14d9   : > { %6161 = vmatprep.subr.mxu0 %v6471_v6 }
0x14ee   : > { %6375 = vrot.lane.b32.xlu0 %v6374_v59, %s6474_s15 }
0x14f2   : > { %4171 = vrot.lane.b32.xlu0 %v4080_v11, %s6474_s15 }
0x1565   : > { %v4045_v10 = vpop.xlane.xlu0 %4044 }
0x1566   : > { %v4046_v1 = vmul.f32 0.03125, %v4045_v10 }
0x1568   : > { %v4047_v2 = vsub.f32 %v4042_v43, %v4046_v1 }
0x1569   : > { %v6376_v7 = vpop.permute.xlu0 %6375 }
0x156a   : > { %v4048_v4 = vmul.f32 %v4047_v2, %v4047_v2  ;;  %v6378_v8 = vunpack.i.h.bf16 %v6376_v7  ;;  %v6377_v9 = vunpack.i.l.bf16 %v6376_v7 }
0x156c   : > { %v4049_v5 = vsel %vm1580_vm11, %v4048_v4, 0.0  ;;  %v6311_v60 = vpack.c.bf16 %v6378_v8, %v6377_v9 }
0x156d   : > { %4050 = vadd.xlane.f32.xlu1 %v4049_v5 }
0x156e   : > { %6312 = vmatpush3.bf16.msra.mxu1 %v6311_v60 }
0x156f   : > { %6313 = vmatprep.subr.bf16.mxu1 %v6469_v3 }
0x157e   : > { %6380 = vrot.lane.b32.xlu1 %v6379_v62, %s6474_s15 }
0x15fa   : > { %v4051_v17 = vpop.xlane.xlu1 %4050 }
0x15fb   : > { %v4052_v14 = vmul.f32 0.03125, %v4051_v17 }
0x15fd   : > { %v4053_v19 = vadd.f32 1e-05, %v4052_v14 }
0x15fe   : > { %v6381_v22 = vpop.permute.xlu1 %6380 }
0x15ff   : > { %6439 = vrsqrt.f32 %v4053_v19  ;;  %v6383_v23 = vunpack.i.h.bf16 %v6381_v22  ;;  %v6382_v20 = vunpack.i.l.bf16 %v6381_v22 }
0x1601   : > { %v6314_v24 = vpack.c.bf16 %v6383_v23, %v6382_v20 }
0x1603   : > { %6315 = vmatpush3.bf16.msra.mxu1 %v6314_v24 }
0x1604   : > { %6166 = vmatprep.subr.mxu1 %v6471_v6 }
0x1606   : > { %6159 = vmatmul.mubr.msk.f32.vlgmr.msra.gmra.mrb[42].mxu1 %vm517_vm1, %v6775_v33  ;;  %v4172_v33 = vpop.permute.xlu0 %4171 }
0x1607   : > { %6168 = vmatprep.mubr.msk.f32.mxu1 %vm6470_vm0, %v6471_v6 }
0x1609   : > { %v6440_v25 = vpop.eup %6439 }
0x160a   : > { %v4055_v26 = vmul.f32 %v6440_v25, %v4047_v2 }
0x160c   : > { %v4060_v28 = vmul.f32 %v4059_v13, %v4055_v26 }
0x160e   : > { %v4065_v29 = vadd.f32 %v4064_v27, %v4060_v28 }
0x1610   : > { %v7145_v34 = vmul.f32 %v4065_v29, %v6762_v18 }
0x1612   : > { %6148 = vmatmul.mubr.msk.f32.vlgmr.msra.gmra.mrb[42].mxu0 %vm517_vm1, %v7145_v34 }
0x1613   : > { %6163 = vmatprep.mubr.msk.f32.mxu0 %vm6470_vm0, %v6471_v6 }
0x16d9   : > { %v4240_v35 = vpop.f32.mrb[42].mxu1 }
0x16da   : > { %v7151_v36 = vadd.f32 %v4240_v35, %v4172_v33  ;;  %v6160_v37 = vpop.f32.mrb[43].mxu1 }
0x16dc   : > { %4322 = vrot.lane.b32.xlu1 %v7151_v36, %s6473_s14  ;;  %6162 = vmatpush3.xpose.msk.msra.mxu0 %vm594_vm4, %v7151_v36 }
0x16dd   : > { %6171 = vmatprep.subr.mxu0 %v6471_v6 }
0x16e0   : > { %4400 = vrot.lane.b32.xlu1 %v7151_v36, %s6478_s20 }
0x16e4   : > { %4478 = vrot.lane.b32.xlu1 %v7151_v36, %s7367_s29 }
0x16e5   : > { %v4150_v38 = vpop.f32.mrb[42].mxu0 }
0x16e6   : > { %v4151_v39 = vadd.f32 %v4150_v38, %v4080_v11  ;;  %v6149_v41 = vpop.f32.mrb[43].mxu0 }
0x16e8   : > { %4320 = vrot.lane.b32.xlu0 %v4151_v39, %s6473_s14  ;;  %6164 = vmatmul.mubr.msk.f32.vlgmr.msra.gmra.mrb[44].mxu0 %vm594_vm4, %v4151_v39 }
0x16e9   : > { %6173 = vmatprep.mubr.msk.f32.mxu0 %vm6470_vm0, %v6471_v6 }
0x16ec   : > { %4398 = vrot.lane.b32.xlu0 %v4151_v39, %s6478_s20 }
0x16f0   : > { %4476 = vrot.lane.b32.xlu0 %v4151_v39, %s7367_s29 }
0x174e   : > { %v4323_v42 = vpop.permute.xlu1 %4322 }
0x174f   : > { %6167 = vmatpush3.xpose.msk.msra.mxu1 %vm594_vm4, %v4323_v42 }
0x1750   : > { %6176 = vmatprep.subr.mxu1 %v6471_v6 }
0x1752   : > { %v4401_v45 = vpop.permute.xlu1 %4400 }
0x1753   : > { %6172 = vmatpush3.xpose.msk.msra.mxu0 %vm594_vm4, %v4401_v45 }
0x1754   : > { %6181 = vmatprep.subr.mxu0 %v6471_v6 }
0x1756   : > { %v4479_v47 = vpop.permute.xlu1 %4478 }
0x175a   : > { %v4321_v46 = vpop.permute.xlu0 %4320 }
0x175b   : > { %6169 = vmatmul.mubr.msk.f32.vlgmr.msra.gmra.mrb[44].mxu1 %vm594_vm4, %v4321_v46 }
0x175c   : > { %6177 = vmatpush3.xpose.msk.msra.mxu1 %vm594_vm4, %v4479_v47  ;;  %6178 = vmatprep.mubr.msk.f32.mxu1 %vm6470_vm0, %v6471_v6 }
0x175d   : > { %6186 = vmatprep.subr.mxu1 %v6471_v6 }
0x175e   : > { %v4399_v48 = vpop.permute.xlu0 %4398 }
0x175f   : > { %6174 = vmatmul.mubr.msk.f32.vlgmr.msra.gmra.mrb[46].mxu0 %vm594_vm4, %v4399_v48 }
0x1760   : > { %6183 = vmatprep.mubr.msk.f32.mxu0 %vm6470_vm0, %v6471_v6 }
0x1762   : > { %v4477_v40 = vpop.permute.xlu0 %4476 }
0x1763   : > { %6179 = vmatmul.mubr.msk.f32.vlgmr.msra.gmra.mrb[46].mxu1 %vm594_vm4, %v4477_v40 }
0x1764   : > { %6188 = vmatprep.mubr.msk.f32.mxu1 %vm6470_vm0, %v6471_v6 }
0x17bb   : > { %v4316_v32 = vpop.f32.mrb[44].mxu0 }
0x17bc   : > { %v4554_v49 = vmul.f32 0.35355338, %v4316_v32  ;;  %v6165_v50 = vpop.f32.mrb[45].mxu0 }
0x17be   : > { %v4558_v51 = vsel %vm6827_vm12, -1e+09, %v4554_v49 }
0x17bf   : > { %v4562_v43 = vsel %vm2114_vm13, %v4558_v51, -inf }
0x17c0   : > { %4563 = vmax.xlane.f32.xlu1 %v4562_v43 }
0x182e   : > { %v4394_v52 = vpop.f32.mrb[44].mxu1 }
0x182f   : > { %v4555_v53 = vmul.f32 0.35355338, %v4394_v52  ;;  %v6170_v54 = vpop.f32.mrb[45].mxu1 }
0x1831   : > { %v4559_v58 = vsel %vm6827_vm12, -1e+09, %v4555_v53  ;;  %v5688_v53 = vld [vmem:[%s7348_s8 + $0x28] sm:$0xff] }
0x1832   : > { %v4472_v59 = vpop.f32.mrb[46].mxu0  ;;  %v4565_v61 = vsel %vm2114_vm13, %v4559_v58, -inf }
0x1833   : > { %v4556_v55 = vmul.f32 0.35355338, %v4472_v59  ;;  %4566 = vmax.xlane.f32.xlu0 %v4565_v61  ;;  %v6175_v62 = vpop.f32.mrb[47].mxu0  ;;  %v5689_v59 = vld [vmem:[%s7348_s8 + $0x30] sm:$0xff] }
0x1834   : > { %v5690_v62 = vld [vmem:[%s7348_s8 + $0x38] sm:$0xff] }
0x1835   : > { %v4560_v12 = vsel %vm6827_vm12, -1e+09, %v4556_v55 }
0x1836   : > { %v4550_v10 = vpop.f32.mrb[46].mxu1  ;;  %v4568_v1 = vsel %vm2114_vm13, %v4560_v12, -inf }
0x1837   : > { %v4557_v2 = vmul.f32 0.35355338, %v4550_v10  ;;  %v6180_v4 = vpop.f32.mrb[47].mxu1  ;;  %4569 = vmax.xlane.f32.xlu0 %v4568_v1 }
0x1839   : > { %v4561_v5 = vsel %vm6827_vm12, -1e+09, %v4557_v2 }
0x183a   : > { %v4571_v7 = vsel %vm2114_vm13, %v4561_v5, -inf }
0x183b   : > { %4572 = vmax.xlane.f32.xlu1 %v4571_v7  ;;  %v4758_v7 = vrot.slane %v6996_v56, %v2310_v21 }
0x184c   : > { %4760 = vrot.lane.b32.xlu1 %v7151_v36, %s6476_s17 }
0x184d   : > { %v4564_v8 = vpop.xlane.xlu1 %4563 }
0x184e   : > { %v4574_v9 = vsub.f32 %v4558_v51, %v4564_v8 }
0x1850   : > { %v4578_v60 = vmul.f32 1.442695, %v4574_v9 }
0x1852   : > { %6441 = vpow2.f32 %v4578_v60 }
0x185c   : > { %v6442_v11 = vpop.eup %6441 }
0x185d   : > { %v4586_v17 = vsel %vm2114_vm13, %v6442_v11, 0.0 }
0x185e   : > { %4587 = vadd.xlane.f32.xlu0 %v4586_v17 }
0x1874   : > { %4606 = vrot.lane.b32.xlu0 %v7151_v36, %s6474_s15 }
0x18c0   : > { %v4567_v14 = vpop.xlane.xlu0 %4566 }
0x18c1   : > { %v4575_v57 = vsub.f32 %v4559_v58, %v4567_v14 }
0x18c3   : > { %v4580_v19 = vmul.f32 1.442695, %v4575_v57 }
0x18c4   : > { %v4570_v22 = vpop.xlane.xlu0 %4569 }
0x18c5   : > { %6443 = vpow2.f32 %v4580_v19  ;;  %v4576_v23 = vsub.f32 %v4560_v12, %v4570_v22 }
0x18c7   : > { %v4582_v20 = vmul.f32 1.442695, %v4576_v23 }
0x18c8   : > { %v4573_v24 = vpop.xlane.xlu1 %4572 }
0x18c9   : > { %6445 = vpow2.f32 %v4582_v20  ;;  %v4577_v13 = vsub.f32 %v4561_v5, %v4573_v24 }
0x18cb   : > { %v4584_v25 = vmul.f32 1.442695, %v4577_v13 }
0x18cc   : > { %v4761_v42 = vpop.permute.xlu1 %4760 }
0x18cd   : > { %6447 = vpow2.f32 %v4584_v25 }
0x18cf   : > { %v6444_v26 = vpop.eup %6443 }
0x18d0   : > { %v4589_v27 = vsel %vm2114_vm13, %v6444_v26, 0.0 }
0x18d1   : > { %4590 = vadd.xlane.f32.xlu1 %v4589_v27 }
0x18d3   : > { %v6446_v28 = vpop.eup %6445 }
0x18d4   : > { %v4592_v29 = vsel %vm2114_vm13, %v6446_v28, 0.0 }
0x18d5   : > { %4593 = vadd.xlane.f32.xlu0 %v4592_v29  ;;  %v5710_v29 = vld [vmem:[%s7349_s9 + $0x28] sm:$0xff] }
0x18d7   : > { %v6448_v33 = vpop.eup %6447 }
0x18d8   : > { %v4595_v35 = vsel %vm2114_vm13, %v6448_v33, 0.0 }
0x18d9   : > { %4596 = vadd.xlane.f32.xlu1 %v4595_v35  ;;  %v5712_v35 = vld [vmem:[%s7349_s9 + $0x38] sm:$0xff] }
0x18ea   : > { %4910 = vrot.lane.b32.xlu1 %v7151_v36, %s6475_s16 }
0x18eb   : > { %5060 = vrot.lane.b32.xlu0 %v7151_v36, %s7366_s27  ;;  %v4588_v37 = vpop.xlane.xlu0 %4587  ;;  %v5687_v36 = vld [vmem:[%s7348_s8 + $0x20] sm:$0xff] }
0x18ec   : > { %6449 = vrcp.f32 %v4588_v37  ;;  %6187 = vmatpush3.msra.mxu1 %v5687_v36  ;;  %v5716_v36 = vld [vmem:[%s7350_s10 + $0x58] sm:$0xff] }
0x18ed   : > { %6196 = vmatprep.subr.mxu1 %v6471_v6 }
0x18ef   : > { %v4607_v38 = vpop.permute.xlu0 %4606 }
0x18f0   : > { %6182 = vmatpush3.msra.mxu0 %v4607_v38  ;;  %v5713_v38 = vld [vmem:[%s7350_s10 + $0x40] sm:$0xff] }
0x18f1   : > { %6191 = vmatprep.subr.mxu0 %v6471_v6 }
0x18f6   : > { %v6450_v39 = vpop.eup %6449 }
0x18f7   : > { %v4599_v41 = vmul.f32 %v6450_v39, %v6442_v11  ;;  %v5714_v39 = vld [vmem:[%s7350_s10 + $0x48] sm:$0xff] }
0x18f9   : > { %6184 = vmatmul.mubr.msk.f32.vlgmr.msra.gmra.mrb[48].mxu0 %vm594_vm4, %v4599_v41  ;;  %v5715_v41 = vld [vmem:[%s7350_s10 + $0x50] sm:$0xff] }
0x18fa   : > { %6192 = vmatpush3.msra.mxu0 %v4761_v42  ;;  %6193 = vmatprep.mubr.msk.f32.mxu0 %vm6470_vm0, %v6471_v6  ;;  %v6323_v42 = vpack.c.bf16 %v5714_v39, %v5713_v38 }
0x18fb   : > { %6201 = vmatprep.subr.mxu0 %v6471_v6 }
0x195e   : > { %v4591_v45 = vpop.xlane.xlu1 %4590 }
0x195f   : > { %6451 = vrcp.f32 %v4591_v45  ;;  %v6326_v45 = vpack.c.bf16 %v5716_v36, %v5715_v41 }
0x1962   : > { %v4594_v46 = vpop.xlane.xlu0 %4593 }
0x1963   : > { %6453 = vrcp.f32 %v4594_v46  ;;  %v5717_v46 = vld [vmem:[%s7350_s10 + $0x60] sm:$0xff] }
0x1966   : > { %v4597_v47 = vpop.xlane.xlu1 %4596  ;;  %v5061_v51 = vpop.permute.xlu0 %5060 }
0x1967   : > { %6455 = vrcp.f32 %v4597_v47  ;;  %v5718_v47 = vld [vmem:[%s7350_s10 + $0x68] sm:$0xff] }
0x1969   : > { %v6452_v48 = vpop.eup %6451 }
0x196a   : > { %v4601_v40 = vmul.f32 %v6452_v48, %v6444_v26  ;;  %v4911_v32 = vpop.permute.xlu1 %4910  ;;  %v6329_v48 = vpack.c.bf16 %v5718_v47, %v5717_v46 }
0x196c   : > { %6194 = vmatmul.mubr.msk.f32.vlgmr.msra.gmra.mrb[50].mxu0 %vm594_vm4, %v4601_v40 }
0x196d   : > { %v6454_v49 = vpop.eup %6453  ;;  %6202 = vmatpush3.msra.mxu0 %v4911_v32  ;;  %6203 = vmatprep.mubr.msk.f32.mxu0 %vm6470_vm0, %v6471_v6 }
0x196e   : > { %v4603_v50 = vmul.f32 %v6454_v49, %v6446_v28  ;;  %6211 = vmatprep.subr.mxu0 %v6471_v6  ;;  %v5709_v28 = vld [vmem:[%s7349_s9 + $0x20] sm:$0xff] }
0x1970   : > { %6204 = vmatmul.mubr.msk.f32.vlgmr.msra.gmra.mrb[52].mxu0 %vm594_vm4, %v4603_v50  ;;  %v5227_v50 = vrot.slane %v6996_v56, %v2779_v63  ;;  %v5720_v63 = vld [vmem:[%s7350_s10 + $0x78] sm:$0xff] }
0x1971   : > { %v6456_v43 = vpop.eup %6455  ;;  %6212 = vmatpush3.msra.mxu0 %v5061_v51  ;;  %6213 = vmatprep.mubr.msk.f32.mxu0 %vm6470_vm0, %v6471_v6 }
0x1972   : > { %v4605_v52 = vmul.f32 %v6456_v43, %v6448_v33  ;;  %6316 = vmatprep.subr.bf16.mxu0 %v6469_v3  ;;  %v6317_v33 = vpack.c.bf16 %v5710_v29, %v5709_v28 }
0x1974   : > { %6214 = vmatmul.mubr.msk.f32.vlgmr.msra.gmra.mrb[54].mxu0 %vm594_vm4, %v4605_v52  ;;  %v5232_v52 = vrot.slane %v6996_v56, %v2784_v0  ;;  %v5653_v0 = vld [vmem:[%s7351_s11 + $0x18] sm:$0xf] }
0x1975   : > { %6229 = vmatprep.mubr.msk.f32.mxu0 %vm6470_vm0, %v6471_v6  ;;  %6318 = vmatpush3.bf16.msra.mxu0 %v6317_v33  ;;  %v5252_v56 = vrot.slane %v5653_v0, %v6605_v16 }
0x1976   : > { %6319 = vmatprep.subr.bf16.mxu0 %v6469_v3 }
0x19cc   : > { %v4678_v54 = vpop.f32.mrb[48].mxu0 }
0x19cd   : > { %v6185_v58 = vpop.f32.mrb[49].mxu0  ;;  %6189 = vmatmul.mubr.msk.f32.vlgmr.msra.gmra.mrb[48].mxu1 %vm594_vm4, %v4678_v54 }
0x19ce   : > { %6197 = vmatpush3.msra.mxu1 %v5688_v53  ;;  %6198 = vmatprep.mubr.msk.f32.mxu1 %vm6470_vm0, %v6471_v6 }
0x19cf   : > { %6206 = vmatprep.subr.mxu1 %v6471_v6 }
0x1a3f   : > { %v4832_v61 = vpop.f32.mrb[50].mxu0 }
0x1a40   : > { %v6195_v55 = vpop.f32.mrb[51].mxu0  ;;  %6199 = vmatmul.mubr.msk.f32.vlgmr.msra.gmra.mrb[50].mxu1 %vm594_vm4, %v4832_v61 }
0x1a41   : > { %6207 = vmatpush3.msra.mxu1 %v5689_v59  ;;  %6208 = vmatprep.mubr.msk.f32.mxu1 %vm6470_vm0, %v6471_v6  ;;  %v5719_v59 = vld [vmem:[%s7350_s10 + $0x70] sm:$0xff] }
0x1a42   : > { %6216 = vmatprep.subr.mxu1 %v6471_v6  ;;  %v6332_v15 = vpack.c.bf16 %v5720_v63, %v5719_v59 }
0x1a43   : > { %v4982_v12 = vpop.f32.mrb[52].mxu0 }
0x1a44   : > { %v6205_v10 = vpop.f32.mrb[53].mxu0  ;;  %6209 = vmatmul.mubr.msk.f32.vlgmr.msra.gmra.mrb[52].mxu1 %vm594_vm4, %v4982_v12  ;;  %v5330_v12 = vrot.slane %v5653_v0, %v6730_v44  ;;  %v5430_v44 = vld [vmem:[%s7352_s12 + $0x8] sm:$0xff] }
0x1a45   : > { %6217 = vmatpush3.msra.mxu1 %v5690_v62  ;;  %6218 = vmatprep.mubr.msk.f32.mxu1 %vm6470_vm0, %v6471_v6 }
0x1a46   : > { %6322 = vmatprep.subr.bf16.mxu1 %v6469_v3 }
0x1a47   : > { %v5132_v1 = vpop.f32.mrb[54].mxu0 }
0x1a48   : > { %v6215_v2 = vpop.f32.mrb[55].mxu0  ;;  %6219 = vmatmul.mubr.msk.f32.vlgmr.msra.gmra.mrb[54].mxu1 %vm594_vm4, %v5132_v1 }
0x1a49   : > { %6248 = vmatprep.mubr.msk.f32.mxu1 %vm6470_vm0, %v6471_v6  ;;  %6324 = vmatpush3.bf16.msra.mxu1 %v6323_v42 }
0x1a4a   : > { %6325 = vmatprep.subr.bf16.mxu1 %v6469_v3 }
0x1a4d   : > { %6327 = vmatpush3.bf16.msra.mxu1 %v6326_v45 }
0x1a4e   : > { %6328 = vmatprep.subr.bf16.mxu1 %v6469_v3 }
0x1a51   : > { %6330 = vmatpush3.bf16.msra.mxu1 %v6329_v48 }
0x1a52   : > { %6331 = vmatprep.subr.bf16.mxu1 %v6469_v3 }
0x1a55   : > { %6333 = vmatpush3.bf16.msra.mxu1 %v6332_v15 }
0x1aa0   : > { %v4751_v4 = vpop.f32.mrb[48].mxu1 }
0x1aa1   : > { %v6190_v5 = vpop.f32.mrb[49].mxu1  ;;  %v4759_v8 = vadd.f32 %v4758_v7, %v4751_v4 }
0x1b13   : > { %v4905_v9 = vpop.f32.mrb[50].mxu1 }
0x1b14   : > { %v4909_v60 = vadd.f32 %v4905_v9, %v4759_v8  ;;  %v6200_v11 = vpop.f32.mrb[51].mxu1 }
0x1b15   : > { %v5429_v11 = vld [vmem:[%s7352_s12] sm:$0xff] }
0x1b17   : > { %v5055_v17 = vpop.f32.mrb[52].mxu1 }
0x1b18   : > { %v5059_v14 = vadd.f32 %v5055_v17, %v4909_v60  ;;  %v6210_v57 = vpop.f32.mrb[53].mxu1  ;;  %v6335_v17 = vpack.c.bf16 %v5430_v44, %v5429_v11 }
0x1b19   : > { %v5432_v57 = vld [vmem:[%s7352_s12 + $0x18] sm:$0xff] }
0x1b1b   : > { %v5205_v19 = vpop.f32.mrb[54].mxu1 }
0x1b1c   : > { %v5209_v22 = vadd.f32 %v5205_v19, %v5059_v14  ;;  %v6220_v23 = vpop.f32.mrb[55].mxu1  ;;  %v5431_v14 = vld [vmem:[%s7352_s12 + $0x10] sm:$0xff] }
0x1b1d   : > { %v6338_v19 = vpack.c.bf16 %v5432_v57, %v5431_v14 }
0x1b1e   : > { %v5210_v20 = vadd.f32 %v5209_v22, %v7145_v34  ;;  %v5711_v34 = vld [vmem:[%s7349_s9 + $0x30] sm:$0xff] }
0x1b1f   : > { %v6320_v37 = vpack.c.bf16 %v5712_v35, %v5711_v34 }
0x1b20   : > { %v5211_v24 = vsel %vm1580_vm11, %v5210_v20, 0.0 }
0x1b21   : > { %5212 = vadd.xlane.f32.xlu1 %v5211_v24  ;;  %6321 = vmatpush3.bf16.msra.mxu0 %v6320_v37  ;;  %v5421_v24 = vrot.slane %v5653_v0, %v6765_v30 }
0x1b22   : > { %6334 = vmatprep.subr.bf16.mxu0 %v6469_v3 }
0x1bae   : > { %v5213_v13 = vpop.xlane.xlu1 %5212 }
0x1baf   : > { %v5214_v25 = vmul.f32 0.03125, %v5213_v13 }
0x1bb1   : > { %v5215_v26 = vsub.f32 %v5210_v20, %v5214_v25  ;;  %v5426_v25 = vrot.slane %v5653_v0, %v6773_v31 }
0x1bb3   : > { %v5216_v27 = vmul.f32 %v5215_v26, %v5215_v26 }
0x1bb5   : > { %v5217_v21 = vsel %vm1580_vm11, %v5216_v27, 0.0 }
0x1bb6   : > { %5218 = vadd.xlane.f32.xlu0 %v5217_v21 }
0x1c43   : > { %v5219_v40 = vpop.xlane.xlu0 %5218 }
0x1c44   : > { %v5220_v32 = vmul.f32 0.03125, %v5219_v40 }
0x1c46   : > { %v5221_v49 = vadd.f32 1e-05, %v5220_v32 }
0x1c48   : > { %6457 = vrsqrt.f32 %v5221_v49 }
0x1c52   : > { %v6458_v51 = vpop.eup %6457 }
0x1c53   : > { %v5223_v43 = vmul.f32 %v6458_v51, %v5215_v26 }
0x1c55   : > { %v5228_v53 = vmul.f32 %v5227_v50, %v5223_v43 }
0x1c57   : > { %v5233_v54 = vadd.f32 %v5232_v52, %v5228_v53 }
0x1c59   : > { %v5234_v58 = vmul.f32 %v5233_v54, %v6762_v18 }
0x1c5b   : > { %6230 = vmatmul.mubr.msk.f32.vlgmr.msra.gmra.mrb[56].mxu0 %vm517_vm1, %v5234_v58 }
0x1c5c   : > { %6259 = vmatprep.mubr.msk.f32.mxu0 %vm6470_vm0, %v6471_v6  ;;  %6336 = vmatpush3.bf16.msra.mxu0 %v6335_v17 }
0x1c5d   : > { %6337 = vmatprep.subr.bf16.mxu0 %v6469_v3 }
0x1c60   : > { %6339 = vmatpush3.bf16.msra.mxu0 %v6338_v19 }
0x1d2e   : > { %v5322_v61 = vpop.f32.mrb[56].mxu0 }
0x1d2f   : > { %v5323_v55 = vadd.f32 %v5322_v61, %v5252_v56  ;;  %v6231_v62 = vpop.f32.mrb[57].mxu0 }
0x1d31   : > { %v5326_v6 = vmax.f32 %v5323_v55, 0.0 }
0x1d33   : > { %6249 = vmatmul.mubr.msk.f32.vlgmr.msra.gmra.mrb[56].mxu1 %vm2882_vm14, %v5326_v6 }
0x1e06   : > { %v5400_v10 = vpop.f32.mrb[56].mxu1 }
0x1e07   : > { %v5401_v1 = vadd.f32 %v5400_v10, %v5330_v12  ;;  %v6250_v2 = vpop.f32.mrb[57].mxu1 }
0x1e09   : > { %v5404_v4 = vadd.f32 %v5401_v1, %v5234_v58 }
0x1e0b   : > { %v5405_v5 = vsel %vm1580_vm11, %v5404_v4, 0.0 }
0x1e0c   : > { %5406 = vadd.xlane.f32.xlu0 %v5405_v5 }
0x1e99   : > { %v5407_v7 = vpop.xlane.xlu0 %5406 }
0x1e9a   : > { %v5408_v8 = vmul.f32 0.03125, %v5407_v7 }
0x1e9c   : > { %v5409_v9 = vsub.f32 %v5404_v4, %v5408_v8 }
0x1e9e   : > { %v5410_v60 = vmul.f32 %v5409_v9, %v5409_v9 }
0x1ea0   : > { %v5411_v16 = vsel %vm1580_vm11, %v5410_v60, 0.0 }
0x1ea1   : > { %5412 = vadd.xlane.f32.xlu1 %v5411_v16 }
0x1f2e   : > { %v5413_v22 = vpop.xlane.xlu1 %5412 }
0x1f2f   : > { %v5414_v23 = vmul.f32 0.03125, %v5413_v22 }
0x1f31   : > { %v5415_v20 = vadd.f32 1e-05, %v5414_v23 }
0x1f33   : > { %6459 = vrsqrt.f32 %v5415_v20 }
0x1f3d   : > { %v6460_v13 = vpop.eup %6459 }
0x1f3e   : > { %v5417_v26 = vmul.f32 %v6460_v13, %v5409_v9 }
0x1f40   : > { %v5422_v27 = vmul.f32 %v5421_v24, %v5417_v26 }
0x1f42   : > { %v5427_v21 = vadd.f32 %v5426_v25, %v5422_v27 }
0x1f44   : > { %v5428_v28 = vmul.f32 %v5427_v21, %v6762_v18 }
0x1f46   : > { %6260 = vmatmul.mubr.msk.f32.vlgmr.msra.gmra.mrb[58].mxu0 %vm517_vm1, %v5428_v28 }
0x2019   : > { %v5502_v3 = vpop.f32.mrb[58].mxu0 }
0x201a   : > { %5506 = vst [vmem:[%s497_s30] sm:$0x7f] %v5502_v3  ;;  %v6261_v29 = vpop.f32.mrb[59].mxu0 }
0x201b PF: > { %s23_s25 = sadd.s32 1, %s6467_s25  }
0x201c   : > { %p20_p4 = scmp.ge.s32.totalorder %s23_s25, 4  }
0x201e   :  { %22 = sbr.rel (!%p20_p4) target bundleno = 1 (0x1), region = 121 }

</bundles_post_ra>
